<compile_context>
chip_gen: v7x
topology: tpu7x:2x2x1
jax: 0.10.0
libtpu: 0.0.40
codegen_flags: <defaults>
</compile_context>

<pallas_src>
import math
import jax
import jax.numpy as jnp
from jax import lax
from jax.experimental import pallas as pl
from jax.experimental.pallas import tpu as pltpu

# ----------------------------- configuration -----------------------------
N_DIMS = 4          # n_dims
D_MODEL = 32        # d_model
N_LAYER = 2         # n_layer
N_HEAD = 2          # n_head
D_FFN = 4 * D_MODEL
POINTS = 8          # number of (x, y) pairs
SEQ = 2 * POINTS    # interleaved sequence length
BATCH = 8
LN_EPS = 1e-5

PACK_W = 128        # lane width of the packed parameter buffer


def _round_up(n, m):
    return ((n + m - 1) // m) * m


def _build_layout():
    """Row layout of the single packed (rows, 128) f32 parameter buffer."""
    hd = D_MODEL // N_HEAD
    entries = {}
    rows = [0]

    def add(name, r, c):
        entries[name] = (rows[0], r, c)
        rows[0] += _round_up(r, 8)          # keep every slab sublane-aligned

    add("w_in", N_DIMS, D_MODEL)
    add("b_in", 1, D_MODEL)
    add("pe", SEQ, D_MODEL)
    for l in range(N_LAYER):
        add(f"ln1_g_{l}", 1, D_MODEL)
        add(f"ln1_b_{l}", 1, D_MODEL)
        for h in range(N_HEAD):
            add(f"w_q_{l}_{h}", D_MODEL, hd)
            add(f"w_k_{l}_{h}", D_MODEL, hd)
            add(f"w_v_{l}_{h}", D_MODEL, hd)
            add(f"b_q_{l}_{h}", 1, hd)
            add(f"b_k_{l}_{h}", 1, hd)
            add(f"b_v_{l}_{h}", 1, hd)
            add(f"w_o_{l}_{h}", hd, D_MODEL)
        add(f"b_o_{l}", 1, D_MODEL)
        add(f"ln2_g_{l}", 1, D_MODEL)
        add(f"ln2_b_{l}", 1, D_MODEL)
        add(f"w1_{l}", D_MODEL, D_FFN)
        add(f"b1_{l}", 1, D_FFN)
        add(f"w2_{l}", D_FFN, D_MODEL)
        add(f"b2_{l}", 1, D_MODEL)
    add("lnf_g", 1, D_MODEL)
    add("lnf_b", 1, D_MODEL)
    add("w_out", 1, D_MODEL)
    add("b_out", 1, 1)
    return entries, rows[0]


LAYOUT, LAYOUT_ROWS = _build_layout()


# ----------------------------- kernel -----------------------------
def _layernorm(x, g, b):
    mu = jnp.mean(x, axis=-1, keepdims=True)
    var = jnp.mean((x - mu) ** 2, axis=-1, keepdims=True)
    return (x - mu) * lax.rsqrt(var + LN_EPS) * g + b


def transformer_clf_kernel(x_ref, w_ref, o_ref):
    B_blk, S, n_dims = x_ref.shape
    D = D_MODEL
    H = N_HEAD
    hd = D // H
    M = B_blk * S
    f32 = jnp.float32
    bf16 = jnp.bfloat16

    def ld(name):                       # static, aligned carve of the packed buffer
        off, r, c = LAYOUT[name]
        return w_ref[off:off + r, 0:c]

    def ldb(name):
        return ld(name).astype(bf16)

    def mxu(a, b):
        return jnp.dot(a, b, preferred_element_type=f32)

    # ---- _read_in: Linear(n_dims -> d_model), * sqrt(d_model), + learnable PE ----
    x = x_ref[...].reshape(M, n_dims)                               # f32, K=4 dot
    h = mxu(x, ld("w_in")) + ld("b_in")                             # (M, D)
    h = h.reshape(B_blk, S, D) * f32(math.sqrt(D)) + ld("pe")       # dropout = 0.0
    h = h.reshape(M, D)

    # ---- causal mask (per-sequence), shared across batch & heads ----
    row = lax.broadcasted_iota(jnp.int32, (S, S), 0)
    col = lax.broadcasted_iota(jnp.int32, (S, S), 1)
    causal = row >= col
    neg = f32(-1e30)                                                # scores stay f32
    scale = f32(1.0 / math.sqrt(hd))

    # ---- transformer backbone (statically unrolled over layers/heads) ----
    for l in range(N_LAYER):
        # pre-LN multi-head causal self-attention
        xn = _layernorm(h, ld(f"ln1_g_{l}"), ld(f"ln1_b_{l}"))
        xn_b = xn.astype(bf16)
        attn = jnp.zeros((M, D), f32)
        for hh in range(H):
            qh = mxu(xn_b, ldb(f"w_q_{l}_{hh}")) + ld(f"b_q_{l}_{hh}")   # (M, hd)
            kh = mxu(xn_b, ldb(f"w_k_{l}_{hh}")) + ld(f"b_k_{l}_{hh}")
            vh = mxu(xn_b, ldb(f"w_v_{l}_{hh}")) + ld(f"b_v_{l}_{hh}")
            q3 = qh.reshape(B_blk, S, hd).astype(bf16)
            k3 = kh.reshape(B_blk, S, hd).astype(bf16)
            v3 = vh.reshape(B_blk, S, hd).astype(bf16)

            s = jnp.einsum("bqd,bkd->bqk", q3, k3,
                           preferred_element_type=f32) * scale           # (B, S, S) f32
            s = jnp.where(causal, s, neg)
            s = s - jnp.max(s, axis=-1, keepdims=True)
            p = jnp.exp(s)
            p = p * pl.reciprocal(jnp.sum(p, axis=-1, keepdims=True), approx=True)

            o3 = jnp.einsum("bqk,bkd->bqd", p.astype(bf16), v3,
                            preferred_element_type=f32)                  # (B, S, hd)
            attn = attn + mxu(o3.reshape(M, hd).astype(bf16),
                              ldb(f"w_o_{l}_{hh}"))                      # (M, D)
        h = h + attn + ld(f"b_o_{l}")

        # pre-LN FFN (ReLU)
        xn2 = _layernorm(h, ld(f"ln2_g_{l}"), ld(f"ln2_b_{l}"))
        f = mxu(xn2.astype(bf16), ldb(f"w1_{l}")) + ld(f"b1_{l}")
        f = jnp.maximum(f, 0.0)
        h = h + mxu(f.astype(bf16), ldb(f"w2_{l}")) + ld(f"b2_{l}")

    # ---- final LayerNorm + _read_out: Linear(d_model -> 1), lane-dense store ----
    h = _layernorm(h, ld("lnf_g"), ld("lnf_b"))
    h3 = h.reshape(B_blk, S, D)
    pred = jnp.sum(h3 * ld("w_out")[None], axis=-1) + ld("b_out")        # (B_blk, S)
    o_ref[0] = pred


# ----------------------------- host-side glue -----------------------------
def init_params(key):
    D, L, F = D_MODEL, N_LAYER, D_FFN
    ks = jax.random.split(key, 9)
    s = 0.02
    return {
        "w_in":  s * jax.random.normal(ks[0], (N_DIMS, D), jnp.float32),
        "b_in":  jnp.zeros((D,), jnp.float32),
        "pe":    s * jax.random.normal(ks[1], (SEQ, D), jnp.float32),
        "ln1_g": jnp.ones((L, D), jnp.float32),
        "ln1_b": jnp.zeros((L, D), jnp.float32),
        "w_q":   s * jax.random.normal(ks[2], (L, D, D), jnp.float32),
        "w_k":   s * jax.random.normal(ks[3], (L, D, D), jnp.float32),
        "w_v":   s * jax.random.normal(ks[4], (L, D, D), jnp.float32),
        "b_q":   jnp.zeros((L, D), jnp.float32),
        "b_k":   jnp.zeros((L, D), jnp.float32),
        "b_v":   jnp.zeros((L, D), jnp.float32),
        "w_o":   s * jax.random.normal(ks[5], (L, D, D), jnp.float32),
        "b_o":   jnp.zeros((L, D), jnp.float32),
        "ln2_g": jnp.ones((L, D), jnp.float32),
        "ln2_b": jnp.zeros((L, D), jnp.float32),
        "w1":    s * jax.random.normal(ks[6], (L, D, F), jnp.float32),
        "b1":    jnp.zeros((L, F), jnp.float32),
        "w2":    s * jax.random.normal(ks[7], (L, F, D), jnp.float32),
        "b2":    jnp.zeros((L, D), jnp.float32),
        "lnf_g": jnp.ones((D,), jnp.float32),
        "lnf_b": jnp.zeros((D,), jnp.float32),
        "w_out": s * jax.random.normal(ks[8], (D,), jnp.float32),
        "b_out": jnp.zeros((1,), jnp.float32),
    }


def pack_params(p):
    """Pack all parameters (per-head pre-split) into one (rows, 128) f32 buffer."""
    hd = D_MODEL // N_HEAD
    buf = jnp.zeros((LAYOUT_ROWS, PACK_W), jnp.float32)

    def put(buf, name, arr):
        off, r, c = LAYOUT[name]
        return buf.at[off:off + r, :c].set(
            jnp.asarray(arr, jnp.float32).reshape(r, c))

    buf = put(buf, "w_in", p["w_in"])
    buf = put(buf, "b_in", p["b_in"])
    buf = put(buf, "pe", p["pe"])
    for l in range(N_LAYER):
        buf = put(buf, f"ln1_g_{l}", p["ln1_g"][l])
        buf = put(buf, f"ln1_b_{l}", p["ln1_b"][l])
        for h in range(N_HEAD):
            sl = slice(h * hd, (h + 1) * hd)
            buf = put(buf, f"w_q_{l}_{h}", p["w_q"][l][:, sl])
            buf = put(buf, f"w_k_{l}_{h}", p["w_k"][l][:, sl])
            buf = put(buf, f"w_v_{l}_{h}", p["w_v"][l][:, sl])
            buf = put(buf, f"b_q_{l}_{h}", p["b_q"][l][sl])
            buf = put(buf, f"b_k_{l}_{h}", p["b_k"][l][sl])
            buf = put(buf, f"b_v_{l}_{h}", p["b_v"][l][sl])
            buf = put(buf, f"w_o_{l}_{h}", p["w_o"][l][sl, :])
        buf = put(buf, f"b_o_{l}", p["b_o"][l])
        buf = put(buf, f"ln2_g_{l}", p["ln2_g"][l])
        buf = put(buf, f"ln2_b_{l}", p["ln2_b"][l])
        buf = put(buf, f"w1_{l}", p["w1"][l])
        buf = put(buf, f"b1_{l}", p["b1"][l])
        buf = put(buf, f"w2_{l}", p["w2"][l])
        buf = put(buf, f"b2_{l}", p["b2"][l])
    buf = put(buf, "lnf_g", p["lnf_g"])
    buf = put(buf, "lnf_b", p["lnf_b"])
    buf = put(buf, "w_out", p["w_out"])
    buf = put(buf, "b_out", p["b_out"])
    return buf


def _combine(xs, ys):
    """Interleave x's and y's into a single sequence (same as torch _combine)."""
    B, P, dim = xs.shape
    ys_wide = jnp.concatenate(
        [ys[..., None], jnp.zeros((B, P, dim - 1), xs.dtype)], axis=2)
    zs = jnp.stack([xs, ys_wide], axis=2).reshape(B, 2 * P, dim)
    return zs


def _default_block_b(B):
    # >= 2 grid steps whenever B >= 2 (keeps both v7x TensorCores busy),
    # up to 32 sequences per step to amortize per-step overhead.
    if B <= 2:
        return 1
    return max(1, min(32, B // 2))


def transformer_clf_forward(xs, ys, packed_w, inds=None, block_b=None):
    B, P, n_dims = xs.shape
    S = 2 * P
    zs = _combine(xs, ys)                                            # (B, S, n_dims)

    if block_b is None:
        block_b = _default_block_b(B)
    G = -(-B // block_b)                                             # num grid steps
    B_pad = G * block_b
    if B_pad != B:
        zs = jnp.concatenate(
            [zs, jnp.zeros((B_pad - B, S, n_dims), zs.dtype)], axis=0)

    pred = pl.pallas_call(
        transformer_clf_kernel,
        out_shape=jax.ShapeDtypeStruct((G, block_b, S), jnp.float32),
        grid=(G,),
        in_specs=[pl.BlockSpec((block_b, S, n_dims), lambda i: (i, 0, 0)),
                  pl.BlockSpec(packed_w.shape, lambda i: (0, 0))],
        out_specs=pl.BlockSpec((1, block_b, S), lambda i: (i, 0, 0)),
        compiler_params=pltpu.CompilerParams(
            dimension_semantics=("parallel",)),
    )(zs, packed_w)

    out = pred.reshape(B_pad, S)[:B, ::2]                            # (B, points)
    if inds is None:
        return out
    return out[:, jnp.asarray(inds)]


if __name__ == "__main__":
    key = jax.random.PRNGKey(0)
    kx, ky, kp = jax.random.split(key, 3)
    xs = jax.random.normal(kx, (BATCH, POINTS, N_DIMS), jnp.float32)
    ys = jax.random.normal(ky, (BATCH, POINTS), jnp.float32)
    params = init_params(kp)
    packed = pack_params(params)

    out = transformer_clf_forward(xs, ys, packed)
    jax.block_until_ready(out)
    assert out.shape == (BATCH, POINTS), out.shape
    assert bool(jnp.all(jnp.isfinite(out)))
    print("KERNEL_OK")
</pallas_src>

<mosaic_0001>
module attributes {stable_mosaic.version = 11 : i64} {
  func.func @transformer_clf_kernel(%arg0: i32, %arg1: memref<4x16x4xf32, #tpu.memory_space<vmem>>, %arg2: memref<1040x128xf32, #tpu.memory_space<vmem>>, %arg3: memref<1x4x16xf32, #tpu.memory_space<vmem>>) attributes {dimension_semantics = [#tpu.dimension_semantics<parallel>], iteration_bounds = array<i64: 2>, scalar_prefetch = 0 : i64, scratch_operands = 0 : i64, tpu.core_type = #tpu.core_type<tc>, window_params = [{transform_indices = @transform_0, window_bounds = array<i64: 4, 16, 4>}, {pipeline_mode = #tpu.pipeline_mode<synchronous>, transform_indices = @transform_1, window_bounds = array<i64: 1040, 128>}, {transform_indices = @transform_2, window_bounds = array<i64: 1, 4, 16>}]} {
    %c0 = arith.constant 0 : index
    %c0_0 = arith.constant 0 : index
    %c0_1 = arith.constant 0 : index
    %0 = vector.load %arg1[%c0, %c0_0, %c0_1] : memref<4x16x4xf32, #tpu.memory_space<vmem>>, vector<4x16x4xf32>
    %1 = vector.shape_cast %0 : vector<4x16x4xf32> to vector<64x4xf32>
    %c0_2 = arith.constant 0 : index
    %c0_3 = arith.constant 0 : index
    %2 = vector.load %arg2[%c0_2, %c0_3] : memref<1040x128xf32, #tpu.memory_space<vmem>>, vector<4x32xf32>
    %cst = arith.constant dense<0.000000e+00> : vector<64x32xf32>
    %3 = tpu.matmul %1, %2, %cst {dimension_numbers = #tpu.dot_dimension_numbers<[1], [0], [0], [1], [0, 0, 1, 1], [], []>} : vector<64x4xf32>, vector<4x32xf32>, vector<64x32xf32> -> vector<64x32xf32>
    %c8 = arith.constant 8 : index
    %c0_4 = arith.constant 0 : index
    %4 = vector.load %arg2[%c8, %c0_4] : memref<1040x128xf32, #tpu.memory_space<vmem>>, vector<1x32xf32>
    %5 = vector.broadcast %4 : vector<1x32xf32> to vector<64x32xf32>
    %6 = arith.addf %3, %5 : vector<64x32xf32>
    %7 = vector.shape_cast %6 : vector<64x32xf32> to vector<4x16x32xf32>
    %cst_5 = arith.constant 5.65685415 : f32
    %8 = vector.broadcast %cst_5 : f32 to vector<4x16x32xf32>
    %9 = arith.mulf %7, %8 : vector<4x16x32xf32>
    %c16 = arith.constant 16 : index
    %c0_6 = arith.constant 0 : index
    %10 = vector.load %arg2[%c16, %c0_6] : memref<1040x128xf32, #tpu.memory_space<vmem>>, vector<16x32xf32>
    %11 = vector.shape_cast %10 : vector<16x32xf32> to vector<1x16x32xf32>
    %12 = vector.broadcast %11 : vector<1x16x32xf32> to vector<4x16x32xf32>
    %13 = arith.addf %9, %12 : vector<4x16x32xf32>
    %14 = vector.shape_cast %13 : vector<4x16x32xf32> to vector<64x32xf32>
    %15 = tpu.iota {dimensions = array<i32: 0>} : vector<16x16xi32>
    %16 = tpu.iota {dimensions = array<i32: 1>} : vector<16x16xi32>
    %17 = arith.cmpi sge, %15, %16 : vector<16x16xi32>
    %c32 = arith.constant 32 : index
    %c0_7 = arith.constant 0 : index
    %18 = vector.load %arg2[%c32, %c0_7] : memref<1040x128xf32, #tpu.memory_space<vmem>>, vector<1x32xf32>
    %c40 = arith.constant 40 : index
    %c0_8 = arith.constant 0 : index
    %19 = vector.load %arg2[%c40, %c0_8] : memref<1040x128xf32, #tpu.memory_space<vmem>>, vector<1x32xf32>
    %cst_9 = arith.constant dense<0.000000e+00> : vector<64xf32>
    %20 = vector.multi_reduction <add>, %14, %cst_9 [1] : vector<64x32xf32> to vector<64xf32>
    %21 = vector.shape_cast %20 : vector<64xf32> to vector<64x1xf32>
    %cst_10 = arith.constant 3.200000e+01 : f32
    %22 = vector.broadcast %cst_10 : f32 to vector<64x1xf32>
    %23 = arith.divf %21, %22 : vector<64x1xf32>
    %24 = vector.broadcast %23 : vector<64x1xf32> to vector<64x32xf32>
    %25 = arith.subf %14, %24 : vector<64x32xf32>
    %26 = arith.mulf %25, %25 : vector<64x32xf32>
    %cst_11 = arith.constant dense<0.000000e+00> : vector<64xf32>
    %27 = vector.multi_reduction <add>, %26, %cst_11 [1] : vector<64x32xf32> to vector<64xf32>
    %28 = vector.shape_cast %27 : vector<64xf32> to vector<64x1xf32>
    %cst_12 = arith.constant 3.200000e+01 : f32
    %29 = vector.broadcast %cst_12 : f32 to vector<64x1xf32>
    %30 = arith.divf %28, %29 : vector<64x1xf32>
    %31 = vector.broadcast %23 : vector<64x1xf32> to vector<64x32xf32>
    %32 = arith.subf %14, %31 : vector<64x32xf32>
    %cst_13 = arith.constant 9.99999974E-6 : f32
    %33 = vector.broadcast %cst_13 : f32 to vector<64x1xf32>
    %34 = arith.addf %30, %33 : vector<64x1xf32>
    %35 = math.rsqrt %34 : vector<64x1xf32>
    %36 = vector.broadcast %35 : vector<64x1xf32> to vector<64x32xf32>
    %37 = arith.mulf %32, %36 : vector<64x32xf32>
    %38 = vector.broadcast %18 : vector<1x32xf32> to vector<64x32xf32>
    %39 = arith.mulf %37, %38 : vector<64x32xf32>
    %40 = vector.broadcast %19 : vector<1x32xf32> to vector<64x32xf32>
    %41 = arith.addf %39, %40 : vector<64x32xf32>
    %42 = arith.truncf %41 : vector<64x32xf32> to vector<64x32xbf16>
    %cst_14 = arith.constant 0.000000e+00 : f32
    %43 = vector.broadcast %cst_14 : f32 to vector<64x32xf32>
    %c48 = arith.constant 48 : index
    %c0_15 = arith.constant 0 : index
    %44 = vector.load %arg2[%c48, %c0_15] : memref<1040x128xf32, #tpu.memory_space<vmem>>, vector<32x16xf32>
    %45 = arith.truncf %44 : vector<32x16xf32> to vector<32x16xbf16>
    %cst_16 = arith.constant dense<0.000000e+00> : vector<64x16xf32>
    %46 = tpu.matmul %42, %45, %cst_16 {dimension_numbers = #tpu.dot_dimension_numbers<[1], [0], [0], [1], [0, 0, 1, 1], [], []>} : vector<64x32xbf16>, vector<32x16xbf16>, vector<64x16xf32> -> vector<64x16xf32>
    %c144 = arith.constant 144 : index
    %c0_17 = arith.constant 0 : index
    %47 = vector.load %arg2[%c144, %c0_17] : memref<1040x128xf32, #tpu.memory_space<vmem>>, vector<1x16xf32>
    %48 = vector.broadcast %47 : vector<1x16xf32> to vector<64x16xf32>
    %49 = arith.addf %46, %48 : vector<64x16xf32>
    %c80 = arith.constant 80 : index
    %c0_18 = arith.constant 0 : index
    %50 = vector.load %arg2[%c80, %c0_18] : memref<1040x128xf32, #tpu.memory_space<vmem>>, vector<32x16xf32>
    %51 = arith.truncf %50 : vector<32x16xf32> to vector<32x16xbf16>
    %cst_19 = arith.constant dense<0.000000e+00> : vector<64x16xf32>
    %52 = tpu.matmul %42, %51, %cst_19 {dimension_numbers = #tpu.dot_dimension_numbers<[1], [0], [0], [1], [0, 0, 1, 1], [], []>} : vector<64x32xbf16>, vector<32x16xbf16>, vector<64x16xf32> -> vector<64x16xf32>
    %c152 = arith.constant 152 : index
    %c0_20 = arith.constant 0 : index
    %53 = vector.load %arg2[%c152, %c0_20] : memref<1040x128xf32, #tpu.memory_space<vmem>>, vector<1x16xf32>
    %54 = vector.broadcast %53 : vector<1x16xf32> to vector<64x16xf32>
    %55 = arith.addf %52, %54 : vector<64x16xf32>
    %c112 = arith.constant 112 : index
    %c0_21 = arith.constant 0 : index
    %56 = vector.load %arg2[%c112, %c0_21] : memref<1040x128xf32, #tpu.memory_space<vmem>>, vector<32x16xf32>
    %57 = arith.truncf %56 : vector<32x16xf32> to vector<32x16xbf16>
    %cst_22 = arith.constant dense<0.000000e+00> : vector<64x16xf32>
    %58 = tpu.matmul %42, %57, %cst_22 {dimension_numbers = #tpu.dot_dimension_numbers<[1], [0], [0], [1], [0, 0, 1, 1], [], []>} : vector<64x32xbf16>, vector<32x16xbf16>, vector<64x16xf32> -> vector<64x16xf32>
    %c160 = arith.constant 160 : index
    %c0_23 = arith.constant 0 : index
    %59 = vector.load %arg2[%c160, %c0_23] : memref<1040x128xf32, #tpu.memory_space<vmem>>, vector<1x16xf32>
    %60 = vector.broadcast %59 : vector<1x16xf32> to vector<64x16xf32>
    %61 = arith.addf %58, %60 : vector<64x16xf32>
    %62 = vector.shape_cast %49 : vector<64x16xf32> to vector<4x16x16xf32>
    %63 = arith.truncf %62 : vector<4x16x16xf32> to vector<4x16x16xbf16>
    %64 = vector.shape_cast %55 : vector<64x16xf32> to vector<4x16x16xf32>
    %65 = arith.truncf %64 : vector<4x16x16xf32> to vector<4x16x16xbf16>
    %66 = vector.shape_cast %61 : vector<64x16xf32> to vector<4x16x16xf32>
    %67 = arith.truncf %66 : vector<4x16x16xf32> to vector<4x16x16xbf16>
    "tpu.trace_start"() <{level = 10 : i32, message = "bqd,bkd->bqk"}> : () -> ()
    %cst_24 = arith.constant dense<0.000000e+00> : vector<4x16x16xf32>
    %68 = tpu.matmul %63, %65, %cst_24 {dimension_numbers = #tpu.dot_dimension_numbers<[2], [2], [1], [1], [0, 0, 0, 1, 1, 1], [0], [0]>} : vector<4x16x16xbf16>, vector<4x16x16xbf16>, vector<4x16x16xf32> -> vector<4x16x16xf32>
    "tpu.trace_stop"() : () -> ()
    %cst_25 = arith.constant 2.500000e-01 : f32
    %69 = vector.broadcast %cst_25 : f32 to vector<4x16x16xf32>
    %70 = arith.mulf %68, %69 : vector<4x16x16xf32>
    %cst_26 = arith.constant -1.000000e+30 : f32
    %71 = vector.shape_cast %17 : vector<16x16xi1> to vector<1x16x16xi1>
    %72 = vector.broadcast %71 : vector<1x16x16xi1> to vector<4x16x16xi1>
    %73 = vector.broadcast %cst_26 : f32 to vector<4x16x16xf32>
    %74 = arith.select %72, %70, %73 : vector<4x16x16xi1>, vector<4x16x16xf32>
    %cst_27 = arith.constant dense<0xFF800000> : vector<4x16xf32>
    %75 = vector.multi_reduction <maximumf>, %74, %cst_27 [2] : vector<4x16x16xf32> to vector<4x16xf32>
    %76 = vector.shape_cast %75 : vector<4x16xf32> to vector<4x16x1xf32>
    %77 = vector.broadcast %76 : vector<4x16x1xf32> to vector<4x16x16xf32>
    %78 = arith.subf %74, %77 : vector<4x16x16xf32>
    %79 = math.exp %78 : vector<4x16x16xf32>
    %cst_28 = arith.constant dense<0.000000e+00> : vector<4x16xf32>
    %80 = vector.multi_reduction <add>, %79, %cst_28 [2] : vector<4x16x16xf32> to vector<4x16xf32>
    %81 = vector.shape_cast %80 : vector<4x16xf32> to vector<4x16x1xf32>
    %82 = tpu.reciprocal %81 {approx = true} : vector<4x16x1xf32> -> vector<4x16x1xf32>
    %83 = vector.broadcast %82 : vector<4x16x1xf32> to vector<4x16x16xf32>
    %84 = arith.mulf %79, %83 : vector<4x16x16xf32>
    %85 = arith.truncf %84 : vector<4x16x16xf32> to vector<4x16x16xbf16>
    "tpu.trace_start"() <{level = 10 : i32, message = "bqk,bkd->bqd"}> : () -> ()
    %cst_29 = arith.constant dense<0.000000e+00> : vector<4x16x16xf32>
    %86 = tpu.matmul %85, %67, %cst_29 {dimension_numbers = #tpu.dot_dimension_numbers<[2], [1], [1], [2], [0, 0, 0, 1, 1, 2], [0], [0]>} : vector<4x16x16xbf16>, vector<4x16x16xbf16>, vector<4x16x16xf32> -> vector<4x16x16xf32>
    "tpu.trace_stop"() : () -> ()
    %87 = vector.shape_cast %86 : vector<4x16x16xf32> to vector<64x16xf32>
    %88 = arith.truncf %87 : vector<64x16xf32> to vector<64x16xbf16>
    %c168 = arith.constant 168 : index
    %c0_30 = arith.constant 0 : index
    %89 = vector.load %arg2[%c168, %c0_30] : memref<1040x128xf32, #tpu.memory_space<vmem>>, vector<16x32xf32>
    %90 = arith.truncf %89 : vector<16x32xf32> to vector<16x32xbf16>
    %cst_31 = arith.constant dense<0.000000e+00> : vector<64x32xf32>
    %91 = tpu.matmul %88, %90, %cst_31 {dimension_numbers = #tpu.dot_dimension_numbers<[1], [0], [0], [1], [0, 0, 1, 1], [], []>} : vector<64x16xbf16>, vector<16x32xbf16>, vector<64x32xf32> -> vector<64x32xf32>
    %92 = arith.addf %43, %91 : vector<64x32xf32>
    %c184 = arith.constant 184 : index
    %c0_32 = arith.constant 0 : index
    %93 = vector.load %arg2[%c184, %c0_32] : memref<1040x128xf32, #tpu.memory_space<vmem>>, vector<32x16xf32>
    %94 = arith.truncf %93 : vector<32x16xf32> to vector<32x16xbf16>
    %cst_33 = arith.constant dense<0.000000e+00> : vector<64x16xf32>
    %95 = tpu.matmul %42, %94, %cst_33 {dimension_numbers = #tpu.dot_dimension_numbers<[1], [0], [0], [1], [0, 0, 1, 1], [], []>} : vector<64x32xbf16>, vector<32x16xbf16>, vector<64x16xf32> -> vector<64x16xf32>
    %c280 = arith.constant 280 : index
    %c0_34 = arith.constant 0 : index
    %96 = vector.load %arg2[%c280, %c0_34] : memref<1040x128xf32, #tpu.memory_space<vmem>>, vector<1x16xf32>
    %97 = vector.broadcast %96 : vector<1x16xf32> to vector<64x16xf32>
    %98 = arith.addf %95, %97 : vector<64x16xf32>
    %c216 = arith.constant 216 : index
    %c0_35 = arith.constant 0 : index
    %99 = vector.load %arg2[%c216, %c0_35] : memref<1040x128xf32, #tpu.memory_space<vmem>>, vector<32x16xf32>
    %100 = arith.truncf %99 : vector<32x16xf32> to vector<32x16xbf16>
    %cst_36 = arith.constant dense<0.000000e+00> : vector<64x16xf32>
    %101 = tpu.matmul %42, %100, %cst_36 {dimension_numbers = #tpu.dot_dimension_numbers<[1], [0], [0], [1], [0, 0, 1, 1], [], []>} : vector<64x32xbf16>, vector<32x16xbf16>, vector<64x16xf32> -> vector<64x16xf32>
    %c288 = arith.constant 288 : index
    %c0_37 = arith.constant 0 : index
    %102 = vector.load %arg2[%c288, %c0_37] : memref<1040x128xf32, #tpu.memory_space<vmem>>, vector<1x16xf32>
    %103 = vector.broadcast %102 : vector<1x16xf32> to vector<64x16xf32>
    %104 = arith.addf %101, %103 : vector<64x16xf32>
    %c248 = arith.constant 248 : index
    %c0_38 = arith.constant 0 : index
    %105 = vector.load %arg2[%c248, %c0_38] : memref<1040x128xf32, #tpu.memory_space<vmem>>, vector<32x16xf32>
    %106 = arith.truncf %105 : vector<32x16xf32> to vector<32x16xbf16>
    %cst_39 = arith.constant dense<0.000000e+00> : vector<64x16xf32>
    %107 = tpu.matmul %42, %106, %cst_39 {dimension_numbers = #tpu.dot_dimension_numbers<[1], [0], [0], [1], [0, 0, 1, 1], [], []>} : vector<64x32xbf16>, vector<32x16xbf16>, vector<64x16xf32> -> vector<64x16xf32>
    %c296 = arith.constant 296 : index
    %c0_40 = arith.constant 0 : index
    %108 = vector.load %arg2[%c296, %c0_40] : memref<1040x128xf32, #tpu.memory_space<vmem>>, vector<1x16xf32>
    %109 = vector.broadcast %108 : vector<1x16xf32> to vector<64x16xf32>
    %110 = arith.addf %107, %109 : vector<64x16xf32>
    %111 = vector.shape_cast %98 : vector<64x16xf32> to vector<4x16x16xf32>
    %112 = arith.truncf %111 : vector<4x16x16xf32> to vector<4x16x16xbf16>
    %113 = vector.shape_cast %104 : vector<64x16xf32> to vector<4x16x16xf32>
    %114 = arith.truncf %113 : vector<4x16x16xf32> to vector<4x16x16xbf16>
    %115 = vector.shape_cast %110 : vector<64x16xf32> to vector<4x16x16xf32>
    %116 = arith.truncf %115 : vector<4x16x16xf32> to vector<4x16x16xbf16>
    "tpu.trace_start"() <{level = 10 : i32, message = "bqd,bkd->bqk"}> : () -> ()
    %cst_41 = arith.constant dense<0.000000e+00> : vector<4x16x16xf32>
    %117 = tpu.matmul %112, %114, %cst_41 {dimension_numbers = #tpu.dot_dimension_numbers<[2], [2], [1], [1], [0, 0, 0, 1, 1, 1], [0], [0]>} : vector<4x16x16xbf16>, vector<4x16x16xbf16>, vector<4x16x16xf32> -> vector<4x16x16xf32>
    "tpu.trace_stop"() : () -> ()
    %cst_42 = arith.constant 2.500000e-01 : f32
    %118 = vector.broadcast %cst_42 : f32 to vector<4x16x16xf32>
    %119 = arith.mulf %117, %118 : vector<4x16x16xf32>
    %cst_43 = arith.constant -1.000000e+30 : f32
    %120 = vector.shape_cast %17 : vector<16x16xi1> to vector<1x16x16xi1>
    %121 = vector.broadcast %120 : vector<1x16x16xi1> to vector<4x16x16xi1>
    %122 = vector.broadcast %cst_43 : f32 to vector<4x16x16xf32>
    %123 = arith.select %121, %119, %122 : vector<4x16x16xi1>, vector<4x16x16xf32>
    %cst_44 = arith.constant dense<0xFF800000> : vector<4x16xf32>
    %124 = vector.multi_reduction <maximumf>, %123, %cst_44 [2] : vector<4x16x16xf32> to vector<4x16xf32>
    %125 = vector.shape_cast %124 : vector<4x16xf32> to vector<4x16x1xf32>
    %126 = vector.broadcast %125 : vector<4x16x1xf32> to vector<4x16x16xf32>
    %127 = arith.subf %123, %126 : vector<4x16x16xf32>
    %128 = math.exp %127 : vector<4x16x16xf32>
    %cst_45 = arith.constant dense<0.000000e+00> : vector<4x16xf32>
    %129 = vector.multi_reduction <add>, %128, %cst_45 [2] : vector<4x16x16xf32> to vector<4x16xf32>
    %130 = vector.shape_cast %129 : vector<4x16xf32> to vector<4x16x1xf32>
    %131 = tpu.reciprocal %130 {approx = true} : vector<4x16x1xf32> -> vector<4x16x1xf32>
    %132 = vector.broadcast %131 : vector<4x16x1xf32> to vector<4x16x16xf32>
    %133 = arith.mulf %128, %132 : vector<4x16x16xf32>
    %134 = arith.truncf %133 : vector<4x16x16xf32> to vector<4x16x16xbf16>
    "tpu.trace_start"() <{level = 10 : i32, message = "bqk,bkd->bqd"}> : () -> ()
    %cst_46 = arith.constant dense<0.000000e+00> : vector<4x16x16xf32>
    %135 = tpu.matmul %134, %116, %cst_46 {dimension_numbers = #tpu.dot_dimension_numbers<[2], [1], [1], [2], [0, 0, 0, 1, 1, 2], [0], [0]>} : vector<4x16x16xbf16>, vector<4x16x16xbf16>, vector<4x16x16xf32> -> vector<4x16x16xf32>
    "tpu.trace_stop"() : () -> ()
    %136 = vector.shape_cast %135 : vector<4x16x16xf32> to vector<64x16xf32>
    %137 = arith.truncf %136 : vector<64x16xf32> to vector<64x16xbf16>
    %c304 = arith.constant 304 : index
    %c0_47 = arith.constant 0 : index
    %138 = vector.load %arg2[%c304, %c0_47] : memref<1040x128xf32, #tpu.memory_space<vmem>>, vector<16x32xf32>
    %139 = arith.truncf %138 : vector<16x32xf32> to vector<16x32xbf16>
    %cst_48 = arith.constant dense<0.000000e+00> : vector<64x32xf32>
    %140 = tpu.matmul %137, %139, %cst_48 {dimension_numbers = #tpu.dot_dimension_numbers<[1], [0], [0], [1], [0, 0, 1, 1], [], []>} : vector<64x16xbf16>, vector<16x32xbf16>, vector<64x32xf32> -> vector<64x32xf32>
    %141 = arith.addf %92, %140 : vector<64x32xf32>
    %142 = arith.addf %14, %141 : vector<64x32xf32>
    %c320 = arith.constant 320 : index
    %c0_49 = arith.constant 0 : index
    %143 = vector.load %arg2[%c320, %c0_49] : memref<1040x128xf32, #tpu.memory_space<vmem>>, vector<1x32xf32>
    %144 = vector.broadcast %143 : vector<1x32xf32> to vector<64x32xf32>
    %145 = arith.addf %142, %144 : vector<64x32xf32>
    %c328 = arith.constant 328 : index
    %c0_50 = arith.constant 0 : index
    %146 = vector.load %arg2[%c328, %c0_50] : memref<1040x128xf32, #tpu.memory_space<vmem>>, vector<1x32xf32>
    %c336 = arith.constant 336 : index
    %c0_51 = arith.constant 0 : index
    %147 = vector.load %arg2[%c336, %c0_51] : memref<1040x128xf32, #tpu.memory_space<vmem>>, vector<1x32xf32>
    %cst_52 = arith.constant dense<0.000000e+00> : vector<64xf32>
    %148 = vector.multi_reduction <add>, %145, %cst_52 [1] : vector<64x32xf32> to vector<64xf32>
    %149 = vector.shape_cast %148 : vector<64xf32> to vector<64x1xf32>
    %cst_53 = arith.constant 3.200000e+01 : f32
    %150 = vector.broadcast %cst_53 : f32 to vector<64x1xf32>
    %151 = arith.divf %149, %150 : vector<64x1xf32>
    %152 = vector.broadcast %151 : vector<64x1xf32> to vector<64x32xf32>
    %153 = arith.subf %145, %152 : vector<64x32xf32>
    %154 = arith.mulf %153, %153 : vector<64x32xf32>
    %cst_54 = arith.constant dense<0.000000e+00> : vector<64xf32>
    %155 = vector.multi_reduction <add>, %154, %cst_54 [1] : vector<64x32xf32> to vector<64xf32>
    %156 = vector.shape_cast %155 : vector<64xf32> to vector<64x1xf32>
    %cst_55 = arith.constant 3.200000e+01 : f32
    %157 = vector.broadcast %cst_55 : f32 to vector<64x1xf32>
    %158 = arith.divf %156, %157 : vector<64x1xf32>
    %159 = vector.broadcast %151 : vector<64x1xf32> to vector<64x32xf32>
    %160 = arith.subf %145, %159 : vector<64x32xf32>
    %cst_56 = arith.constant 9.99999974E-6 : f32
    %161 = vector.broadcast %cst_56 : f32 to vector<64x1xf32>
    %162 = arith.addf %158, %161 : vector<64x1xf32>
    %163 = math.rsqrt %162 : vector<64x1xf32>
    %164 = vector.broadcast %163 : vector<64x1xf32> to vector<64x32xf32>
    %165 = arith.mulf %160, %164 : vector<64x32xf32>
    %166 = vector.broadcast %146 : vector<1x32xf32> to vector<64x32xf32>
    %167 = arith.mulf %165, %166 : vector<64x32xf32>
    %168 = vector.broadcast %147 : vector<1x32xf32> to vector<64x32xf32>
    %169 = arith.addf %167, %168 : vector<64x32xf32>
    %170 = arith.truncf %169 : vector<64x32xf32> to vector<64x32xbf16>
    %c344 = arith.constant 344 : index
    %c0_57 = arith.constant 0 : index
    %171 = vector.load %arg2[%c344, %c0_57] : memref<1040x128xf32, #tpu.memory_space<vmem>>, vector<32x128xf32>
    %172 = arith.truncf %171 : vector<32x128xf32> to vector<32x128xbf16>
    %cst_58 = arith.constant dense<0.000000e+00> : vector<64x128xf32>
    %173 = tpu.matmul %170, %172, %cst_58 {dimension_numbers = #tpu.dot_dimension_numbers<[1], [0], [0], [1], [0, 0, 1, 1], [], []>} : vector<64x32xbf16>, vector<32x128xbf16>, vector<64x128xf32> -> vector<64x128xf32>
    %c376 = arith.constant 376 : index
    %c0_59 = arith.constant 0 : index
    %174 = vector.load %arg2[%c376, %c0_59] : memref<1040x128xf32, #tpu.memory_space<vmem>>, vector<1x128xf32>
    %175 = vector.broadcast %174 : vector<1x128xf32> to vector<64x128xf32>
    %176 = arith.addf %173, %175 : vector<64x128xf32>
    %cst_60 = arith.constant 0.000000e+00 : f32
    %177 = vector.broadcast %cst_60 : f32 to vector<64x128xf32>
    %178 = arith.maximumf %176, %177 : vector<64x128xf32>
    %179 = arith.truncf %178 : vector<64x128xf32> to vector<64x128xbf16>
    %c384 = arith.constant 384 : index
    %c0_61 = arith.constant 0 : index
    %180 = vector.load %arg2[%c384, %c0_61] : memref<1040x128xf32, #tpu.memory_space<vmem>>, vector<128x32xf32>
    %181 = arith.truncf %180 : vector<128x32xf32> to vector<128x32xbf16>
    %cst_62 = arith.constant dense<0.000000e+00> : vector<64x32xf32>
    %182 = tpu.matmul %179, %181, %cst_62 {dimension_numbers = #tpu.dot_dimension_numbers<[1], [0], [0], [1], [0, 0, 1, 1], [], []>} : vector<64x128xbf16>, vector<128x32xbf16>, vector<64x32xf32> -> vector<64x32xf32>
    %183 = arith.addf %145, %182 : vector<64x32xf32>
    %c512 = arith.constant 512 : index
    %c0_63 = arith.constant 0 : index
    %184 = vector.load %arg2[%c512, %c0_63] : memref<1040x128xf32, #tpu.memory_space<vmem>>, vector<1x32xf32>
    %185 = vector.broadcast %184 : vector<1x32xf32> to vector<64x32xf32>
    %186 = arith.addf %183, %185 : vector<64x32xf32>
    %c520 = arith.constant 520 : index
    %c0_64 = arith.constant 0 : index
    %187 = vector.load %arg2[%c520, %c0_64] : memref<1040x128xf32, #tpu.memory_space<vmem>>, vector<1x32xf32>
    %c528 = arith.constant 528 : index
    %c0_65 = arith.constant 0 : index
    %188 = vector.load %arg2[%c528, %c0_65] : memref<1040x128xf32, #tpu.memory_space<vmem>>, vector<1x32xf32>
    %cst_66 = arith.constant dense<0.000000e+00> : vector<64xf32>
    %189 = vector.multi_reduction <add>, %186, %cst_66 [1] : vector<64x32xf32> to vector<64xf32>
    %190 = vector.shape_cast %189 : vector<64xf32> to vector<64x1xf32>
    %cst_67 = arith.constant 3.200000e+01 : f32
    %191 = vector.broadcast %cst_67 : f32 to vector<64x1xf32>
    %192 = arith.divf %190, %191 : vector<64x1xf32>
    %193 = vector.broadcast %192 : vector<64x1xf32> to vector<64x32xf32>
    %194 = arith.subf %186, %193 : vector<64x32xf32>
    %195 = arith.mulf %194, %194 : vector<64x32xf32>
    %cst_68 = arith.constant dense<0.000000e+00> : vector<64xf32>
    %196 = vector.multi_reduction <add>, %195, %cst_68 [1] : vector<64x32xf32> to vector<64xf32>
    %197 = vector.shape_cast %196 : vector<64xf32> to vector<64x1xf32>
    %cst_69 = arith.constant 3.200000e+01 : f32
    %198 = vector.broadcast %cst_69 : f32 to vector<64x1xf32>
    %199 = arith.divf %197, %198 : vector<64x1xf32>
    %200 = vector.broadcast %192 : vector<64x1xf32> to vector<64x32xf32>
    %201 = arith.subf %186, %200 : vector<64x32xf32>
    %cst_70 = arith.constant 9.99999974E-6 : f32
    %202 = vector.broadcast %cst_70 : f32 to vector<64x1xf32>
    %203 = arith.addf %199, %202 : vector<64x1xf32>
    %204 = math.rsqrt %203 : vector<64x1xf32>
    %205 = vector.broadcast %204 : vector<64x1xf32> to vector<64x32xf32>
    %206 = arith.mulf %201, %205 : vector<64x32xf32>
    %207 = vector.broadcast %187 : vector<1x32xf32> to vector<64x32xf32>
    %208 = arith.mulf %206, %207 : vector<64x32xf32>
    %209 = vector.broadcast %188 : vector<1x32xf32> to vector<64x32xf32>
    %210 = arith.addf %208, %209 : vector<64x32xf32>
    %211 = arith.truncf %210 : vector<64x32xf32> to vector<64x32xbf16>
    %cst_71 = arith.constant 0.000000e+00 : f32
    %212 = vector.broadcast %cst_71 : f32 to vector<64x32xf32>
    %c536 = arith.constant 536 : index
    %c0_72 = arith.constant 0 : index
    %213 = vector.load %arg2[%c536, %c0_72] : memref<1040x128xf32, #tpu.memory_space<vmem>>, vector<32x16xf32>
    %214 = arith.truncf %213 : vector<32x16xf32> to vector<32x16xbf16>
    %cst_73 = arith.constant dense<0.000000e+00> : vector<64x16xf32>
    %215 = tpu.matmul %211, %214, %cst_73 {dimension_numbers = #tpu.dot_dimension_numbers<[1], [0], [0], [1], [0, 0, 1, 1], [], []>} : vector<64x32xbf16>, vector<32x16xbf16>, vector<64x16xf32> -> vector<64x16xf32>
    %c632 = arith.constant 632 : index
    %c0_74 = arith.constant 0 : index
    %216 = vector.load %arg2[%c632, %c0_74] : memref<1040x128xf32, #tpu.memory_space<vmem>>, vector<1x16xf32>
    %217 = vector.broadcast %216 : vector<1x16xf32> to vector<64x16xf32>
    %218 = arith.addf %215, %217 : vector<64x16xf32>
    %c568 = arith.constant 568 : index
    %c0_75 = arith.constant 0 : index
    %219 = vector.load %arg2[%c568, %c0_75] : memref<1040x128xf32, #tpu.memory_space<vmem>>, vector<32x16xf32>
    %220 = arith.truncf %219 : vector<32x16xf32> to vector<32x16xbf16>
    %cst_76 = arith.constant dense<0.000000e+00> : vector<64x16xf32>
    %221 = tpu.matmul %211, %220, %cst_76 {dimension_numbers = #tpu.dot_dimension_numbers<[1], [0], [0], [1], [0, 0, 1, 1], [], []>} : vector<64x32xbf16>, vector<32x16xbf16>, vector<64x16xf32> -> vector<64x16xf32>
    %c640 = arith.constant 640 : index
    %c0_77 = arith.constant 0 : index
    %222 = vector.load %arg2[%c640, %c0_77] : memref<1040x128xf32, #tpu.memory_space<vmem>>, vector<1x16xf32>
    %223 = vector.broadcast %222 : vector<1x16xf32> to vector<64x16xf32>
    %224 = arith.addf %221, %223 : vector<64x16xf32>
    %c600 = arith.constant 600 : index
    %c0_78 = arith.constant 0 : index
    %225 = vector.load %arg2[%c600, %c0_78] : memref<1040x128xf32, #tpu.memory_space<vmem>>, vector<32x16xf32>
    %226 = arith.truncf %225 : vector<32x16xf32> to vector<32x16xbf16>
    %cst_79 = arith.constant dense<0.000000e+00> : vector<64x16xf32>
    %227 = tpu.matmul %211, %226, %cst_79 {dimension_numbers = #tpu.dot_dimension_numbers<[1], [0], [0], [1], [0, 0, 1, 1], [], []>} : vector<64x32xbf16>, vector<32x16xbf16>, vector<64x16xf32> -> vector<64x16xf32>
    %c648 = arith.constant 648 : index
    %c0_80 = arith.constant 0 : index
    %228 = vector.load %arg2[%c648, %c0_80] : memref<1040x128xf32, #tpu.memory_space<vmem>>, vector<1x16xf32>
    %229 = vector.broadcast %228 : vector<1x16xf32> to vector<64x16xf32>
    %230 = arith.addf %227, %229 : vector<64x16xf32>
    %231 = vector.shape_cast %218 : vector<64x16xf32> to vector<4x16x16xf32>
    %232 = arith.truncf %231 : vector<4x16x16xf32> to vector<4x16x16xbf16>
    %233 = vector.shape_cast %224 : vector<64x16xf32> to vector<4x16x16xf32>
    %234 = arith.truncf %233 : vector<4x16x16xf32> to vector<4x16x16xbf16>
    %235 = vector.shape_cast %230 : vector<64x16xf32> to vector<4x16x16xf32>
    %236 = arith.truncf %235 : vector<4x16x16xf32> to vector<4x16x16xbf16>
    "tpu.trace_start"() <{level = 10 : i32, message = "bqd,bkd->bqk"}> : () -> ()
    %cst_81 = arith.constant dense<0.000000e+00> : vector<4x16x16xf32>
    %237 = tpu.matmul %232, %234, %cst_81 {dimension_numbers = #tpu.dot_dimension_numbers<[2], [2], [1], [1], [0, 0, 0, 1, 1, 1], [0], [0]>} : vector<4x16x16xbf16>, vector<4x16x16xbf16>, vector<4x16x16xf32> -> vector<4x16x16xf32>
    "tpu.trace_stop"() : () -> ()
    %cst_82 = arith.constant 2.500000e-01 : f32
    %238 = vector.broadcast %cst_82 : f32 to vector<4x16x16xf32>
    %239 = arith.mulf %237, %238 : vector<4x16x16xf32>
    %cst_83 = arith.constant -1.000000e+30 : f32
    %240 = vector.shape_cast %17 : vector<16x16xi1> to vector<1x16x16xi1>
    %241 = vector.broadcast %240 : vector<1x16x16xi1> to vector<4x16x16xi1>
    %242 = vector.broadcast %cst_83 : f32 to vector<4x16x16xf32>
    %243 = arith.select %241, %239, %242 : vector<4x16x16xi1>, vector<4x16x16xf32>
    %cst_84 = arith.constant dense<0xFF800000> : vector<4x16xf32>
    %244 = vector.multi_reduction <maximumf>, %243, %cst_84 [2] : vector<4x16x16xf32> to vector<4x16xf32>
    %245 = vector.shape_cast %244 : vector<4x16xf32> to vector<4x16x1xf32>
    %246 = vector.broadcast %245 : vector<4x16x1xf32> to vector<4x16x16xf32>
    %247 = arith.subf %243, %246 : vector<4x16x16xf32>
    %248 = math.exp %247 : vector<4x16x16xf32>
    %cst_85 = arith.constant dense<0.000000e+00> : vector<4x16xf32>
    %249 = vector.multi_reduction <add>, %248, %cst_85 [2] : vector<4x16x16xf32> to vector<4x16xf32>
    %250 = vector.shape_cast %249 : vector<4x16xf32> to vector<4x16x1xf32>
    %251 = tpu.reciprocal %250 {approx = true} : vector<4x16x1xf32> -> vector<4x16x1xf32>
    %252 = vector.broadcast %251 : vector<4x16x1xf32> to vector<4x16x16xf32>
    %253 = arith.mulf %248, %252 : vector<4x16x16xf32>
    %254 = arith.truncf %253 : vector<4x16x16xf32> to vector<4x16x16xbf16>
    "tpu.trace_start"() <{level = 10 : i32, message = "bqk,bkd->bqd"}> : () -> ()
    %cst_86 = arith.constant dense<0.000000e+00> : vector<4x16x16xf32>
    %255 = tpu.matmul %254, %236, %cst_86 {dimension_numbers = #tpu.dot_dimension_numbers<[2], [1], [1], [2], [0, 0, 0, 1, 1, 2], [0], [0]>} : vector<4x16x16xbf16>, vector<4x16x16xbf16>, vector<4x16x16xf32> -> vector<4x16x16xf32>
    "tpu.trace_stop"() : () -> ()
    %256 = vector.shape_cast %255 : vector<4x16x16xf32> to vector<64x16xf32>
    %257 = arith.truncf %256 : vector<64x16xf32> to vector<64x16xbf16>
    %c656 = arith.constant 656 : index
    %c0_87 = arith.constant 0 : index
    %258 = vector.load %arg2[%c656, %c0_87] : memref<1040x128xf32, #tpu.memory_space<vmem>>, vector<16x32xf32>
    %259 = arith.truncf %258 : vector<16x32xf32> to vector<16x32xbf16>
    %cst_88 = arith.constant dense<0.000000e+00> : vector<64x32xf32>
    %260 = tpu.matmul %257, %259, %cst_88 {dimension_numbers = #tpu.dot_dimension_numbers<[1], [0], [0], [1], [0, 0, 1, 1], [], []>} : vector<64x16xbf16>, vector<16x32xbf16>, vector<64x32xf32> -> vector<64x32xf32>
    %261 = arith.addf %212, %260 : vector<64x32xf32>
    %c672 = arith.constant 672 : index
    %c0_89 = arith.constant 0 : index
    %262 = vector.load %arg2[%c672, %c0_89] : memref<1040x128xf32, #tpu.memory_space<vmem>>, vector<32x16xf32>
    %263 = arith.truncf %262 : vector<32x16xf32> to vector<32x16xbf16>
    %cst_90 = arith.constant dense<0.000000e+00> : vector<64x16xf32>
    %264 = tpu.matmul %211, %263, %cst_90 {dimension_numbers = #tpu.dot_dimension_numbers<[1], [0], [0], [1], [0, 0, 1, 1], [], []>} : vector<64x32xbf16>, vector<32x16xbf16>, vector<64x16xf32> -> vector<64x16xf32>
    %c768 = arith.constant 768 : index
    %c0_91 = arith.constant 0 : index
    %265 = vector.load %arg2[%c768, %c0_91] : memref<1040x128xf32, #tpu.memory_space<vmem>>, vector<1x16xf32>
    %266 = vector.broadcast %265 : vector<1x16xf32> to vector<64x16xf32>
    %267 = arith.addf %264, %266 : vector<64x16xf32>
    %c704 = arith.constant 704 : index
    %c0_92 = arith.constant 0 : index
    %268 = vector.load %arg2[%c704, %c0_92] : memref<1040x128xf32, #tpu.memory_space<vmem>>, vector<32x16xf32>
    %269 = arith.truncf %268 : vector<32x16xf32> to vector<32x16xbf16>
    %cst_93 = arith.constant dense<0.000000e+00> : vector<64x16xf32>
    %270 = tpu.matmul %211, %269, %cst_93 {dimension_numbers = #tpu.dot_dimension_numbers<[1], [0], [0], [1], [0, 0, 1, 1], [], []>} : vector<64x32xbf16>, vector<32x16xbf16>, vector<64x16xf32> -> vector<64x16xf32>
    %c776 = arith.constant 776 : index
    %c0_94 = arith.constant 0 : index
    %271 = vector.load %arg2[%c776, %c0_94] : memref<1040x128xf32, #tpu.memory_space<vmem>>, vector<1x16xf32>
    %272 = vector.broadcast %271 : vector<1x16xf32> to vector<64x16xf32>
    %273 = arith.addf %270, %272 : vector<64x16xf32>
    %c736 = arith.constant 736 : index
    %c0_95 = arith.constant 0 : index
    %274 = vector.load %arg2[%c736, %c0_95] : memref<1040x128xf32, #tpu.memory_space<vmem>>, vector<32x16xf32>
    %275 = arith.truncf %274 : vector<32x16xf32> to vector<32x16xbf16>
    %cst_96 = arith.constant dense<0.000000e+00> : vector<64x16xf32>
    %276 = tpu.matmul %211, %275, %cst_96 {dimension_numbers = #tpu.dot_dimension_numbers<[1], [0], [0], [1], [0, 0, 1, 1], [], []>} : vector<64x32xbf16>, vector<32x16xbf16>, vector<64x16xf32> -> vector<64x16xf32>
    %c784 = arith.constant 784 : index
    %c0_97 = arith.constant 0 : index
    %277 = vector.load %arg2[%c784, %c0_97] : memref<1040x128xf32, #tpu.memory_space<vmem>>, vector<1x16xf32>
    %278 = vector.broadcast %277 : vector<1x16xf32> to vector<64x16xf32>
    %279 = arith.addf %276, %278 : vector<64x16xf32>
    %280 = vector.shape_cast %267 : vector<64x16xf32> to vector<4x16x16xf32>
    %281 = arith.truncf %280 : vector<4x16x16xf32> to vector<4x16x16xbf16>
    %282 = vector.shape_cast %273 : vector<64x16xf32> to vector<4x16x16xf32>
    %283 = arith.truncf %282 : vector<4x16x16xf32> to vector<4x16x16xbf16>
    %284 = vector.shape_cast %279 : vector<64x16xf32> to vector<4x16x16xf32>
    %285 = arith.truncf %284 : vector<4x16x16xf32> to vector<4x16x16xbf16>
    "tpu.trace_start"() <{level = 10 : i32, message = "bqd,bkd->bqk"}> : () -> ()
    %cst_98 = arith.constant dense<0.000000e+00> : vector<4x16x16xf32>
    %286 = tpu.matmul %281, %283, %cst_98 {dimension_numbers = #tpu.dot_dimension_numbers<[2], [2], [1], [1], [0, 0, 0, 1, 1, 1], [0], [0]>} : vector<4x16x16xbf16>, vector<4x16x16xbf16>, vector<4x16x16xf32> -> vector<4x16x16xf32>
    "tpu.trace_stop"() : () -> ()
    %cst_99 = arith.constant 2.500000e-01 : f32
    %287 = vector.broadcast %cst_99 : f32 to vector<4x16x16xf32>
    %288 = arith.mulf %286, %287 : vector<4x16x16xf32>
    %cst_100 = arith.constant -1.000000e+30 : f32
    %289 = vector.shape_cast %17 : vector<16x16xi1> to vector<1x16x16xi1>
    %290 = vector.broadcast %289 : vector<1x16x16xi1> to vector<4x16x16xi1>
    %291 = vector.broadcast %cst_100 : f32 to vector<4x16x16xf32>
    %292 = arith.select %290, %288, %291 : vector<4x16x16xi1>, vector<4x16x16xf32>
    %cst_101 = arith.constant dense<0xFF800000> : vector<4x16xf32>
    %293 = vector.multi_reduction <maximumf>, %292, %cst_101 [2] : vector<4x16x16xf32> to vector<4x16xf32>
    %294 = vector.shape_cast %293 : vector<4x16xf32> to vector<4x16x1xf32>
    %295 = vector.broadcast %294 : vector<4x16x1xf32> to vector<4x16x16xf32>
    %296 = arith.subf %292, %295 : vector<4x16x16xf32>
    %297 = math.exp %296 : vector<4x16x16xf32>
    %cst_102 = arith.constant dense<0.000000e+00> : vector<4x16xf32>
    %298 = vector.multi_reduction <add>, %297, %cst_102 [2] : vector<4x16x16xf32> to vector<4x16xf32>
    %299 = vector.shape_cast %298 : vector<4x16xf32> to vector<4x16x1xf32>
    %300 = tpu.reciprocal %299 {approx = true} : vector<4x16x1xf32> -> vector<4x16x1xf32>
    %301 = vector.broadcast %300 : vector<4x16x1xf32> to vector<4x16x16xf32>
    %302 = arith.mulf %297, %301 : vector<4x16x16xf32>
    %303 = arith.truncf %302 : vector<4x16x16xf32> to vector<4x16x16xbf16>
    "tpu.trace_start"() <{level = 10 : i32, message = "bqk,bkd->bqd"}> : () -> ()
    %cst_103 = arith.constant dense<0.000000e+00> : vector<4x16x16xf32>
    %304 = tpu.matmul %303, %285, %cst_103 {dimension_numbers = #tpu.dot_dimension_numbers<[2], [1], [1], [2], [0, 0, 0, 1, 1, 2], [0], [0]>} : vector<4x16x16xbf16>, vector<4x16x16xbf16>, vector<4x16x16xf32> -> vector<4x16x16xf32>
    "tpu.trace_stop"() : () -> ()
    %305 = vector.shape_cast %304 : vector<4x16x16xf32> to vector<64x16xf32>
    %306 = arith.truncf %305 : vector<64x16xf32> to vector<64x16xbf16>
    %c792 = arith.constant 792 : index
    %c0_104 = arith.constant 0 : index
    %307 = vector.load %arg2[%c792, %c0_104] : memref<1040x128xf32, #tpu.memory_space<vmem>>, vector<16x32xf32>
    %308 = arith.truncf %307 : vector<16x32xf32> to vector<16x32xbf16>
    %cst_105 = arith.constant dense<0.000000e+00> : vector<64x32xf32>
    %309 = tpu.matmul %306, %308, %cst_105 {dimension_numbers = #tpu.dot_dimension_numbers<[1], [0], [0], [1], [0, 0, 1, 1], [], []>} : vector<64x16xbf16>, vector<16x32xbf16>, vector<64x32xf32> -> vector<64x32xf32>
    %310 = arith.addf %261, %309 : vector<64x32xf32>
    %311 = arith.addf %186, %310 : vector<64x32xf32>
    %c808 = arith.constant 808 : index
    %c0_106 = arith.constant 0 : index
    %312 = vector.load %arg2[%c808, %c0_106] : memref<1040x128xf32, #tpu.memory_space<vmem>>, vector<1x32xf32>
    %313 = vector.broadcast %312 : vector<1x32xf32> to vector<64x32xf32>
    %314 = arith.addf %311, %313 : vector<64x32xf32>
    %c816 = arith.constant 816 : index
    %c0_107 = arith.constant 0 : index
    %315 = vector.load %arg2[%c816, %c0_107] : memref<1040x128xf32, #tpu.memory_space<vmem>>, vector<1x32xf32>
    %c824 = arith.constant 824 : index
    %c0_108 = arith.constant 0 : index
    %316 = vector.load %arg2[%c824, %c0_108] : memref<1040x128xf32, #tpu.memory_space<vmem>>, vector<1x32xf32>
    %cst_109 = arith.constant dense<0.000000e+00> : vector<64xf32>
    %317 = vector.multi_reduction <add>, %314, %cst_109 [1] : vector<64x32xf32> to vector<64xf32>
    %318 = vector.shape_cast %317 : vector<64xf32> to vector<64x1xf32>
    %cst_110 = arith.constant 3.200000e+01 : f32
    %319 = vector.broadcast %cst_110 : f32 to vector<64x1xf32>
    %320 = arith.divf %318, %319 : vector<64x1xf32>
    %321 = vector.broadcast %320 : vector<64x1xf32> to vector<64x32xf32>
    %322 = arith.subf %314, %321 : vector<64x32xf32>
    %323 = arith.mulf %322, %322 : vector<64x32xf32>
    %cst_111 = arith.constant dense<0.000000e+00> : vector<64xf32>
    %324 = vector.multi_reduction <add>, %323, %cst_111 [1] : vector<64x32xf32> to vector<64xf32>
    %325 = vector.shape_cast %324 : vector<64xf32> to vector<64x1xf32>
    %cst_112 = arith.constant 3.200000e+01 : f32
    %326 = vector.broadcast %cst_112 : f32 to vector<64x1xf32>
    %327 = arith.divf %325, %326 : vector<64x1xf32>
    %328 = vector.broadcast %320 : vector<64x1xf32> to vector<64x32xf32>
    %329 = arith.subf %314, %328 : vector<64x32xf32>
    %cst_113 = arith.constant 9.99999974E-6 : f32
    %330 = vector.broadcast %cst_113 : f32 to vector<64x1xf32>
    %331 = arith.addf %327, %330 : vector<64x1xf32>
    %332 = math.rsqrt %331 : vector<64x1xf32>
    %333 = vector.broadcast %332 : vector<64x1xf32> to vector<64x32xf32>
    %334 = arith.mulf %329, %333 : vector<64x32xf32>
    %335 = vector.broadcast %315 : vector<1x32xf32> to vector<64x32xf32>
    %336 = arith.mulf %334, %335 : vector<64x32xf32>
    %337 = vector.broadcast %316 : vector<1x32xf32> to vector<64x32xf32>
    %338 = arith.addf %336, %337 : vector<64x32xf32>
    %339 = arith.truncf %338 : vector<64x32xf32> to vector<64x32xbf16>
    %c832 = arith.constant 832 : index
    %c0_114 = arith.constant 0 : index
    %340 = vector.load %arg2[%c832, %c0_114] : memref<1040x128xf32, #tpu.memory_space<vmem>>, vector<32x128xf32>
    %341 = arith.truncf %340 : vector<32x128xf32> to vector<32x128xbf16>
    %cst_115 = arith.constant dense<0.000000e+00> : vector<64x128xf32>
    %342 = tpu.matmul %339, %341, %cst_115 {dimension_numbers = #tpu.dot_dimension_numbers<[1], [0], [0], [1], [0, 0, 1, 1], [], []>} : vector<64x32xbf16>, vector<32x128xbf16>, vector<64x128xf32> -> vector<64x128xf32>
    %c864 = arith.constant 864 : index
    %c0_116 = arith.constant 0 : index
    %343 = vector.load %arg2[%c864, %c0_116] : memref<1040x128xf32, #tpu.memory_space<vmem>>, vector<1x128xf32>
    %344 = vector.broadcast %343 : vector<1x128xf32> to vector<64x128xf32>
    %345 = arith.addf %342, %344 : vector<64x128xf32>
    %cst_117 = arith.constant 0.000000e+00 : f32
    %346 = vector.broadcast %cst_117 : f32 to vector<64x128xf32>
    %347 = arith.maximumf %345, %346 : vector<64x128xf32>
    %348 = arith.truncf %347 : vector<64x128xf32> to vector<64x128xbf16>
    %c872 = arith.constant 872 : index
    %c0_118 = arith.constant 0 : index
    %349 = vector.load %arg2[%c872, %c0_118] : memref<1040x128xf32, #tpu.memory_space<vmem>>, vector<128x32xf32>
    %350 = arith.truncf %349 : vector<128x32xf32> to vector<128x32xbf16>
    %cst_119 = arith.constant dense<0.000000e+00> : vector<64x32xf32>
    %351 = tpu.matmul %348, %350, %cst_119 {dimension_numbers = #tpu.dot_dimension_numbers<[1], [0], [0], [1], [0, 0, 1, 1], [], []>} : vector<64x128xbf16>, vector<128x32xbf16>, vector<64x32xf32> -> vector<64x32xf32>
    %352 = arith.addf %314, %351 : vector<64x32xf32>
    %c1000 = arith.constant 1000 : index
    %c0_120 = arith.constant 0 : index
    %353 = vector.load %arg2[%c1000, %c0_120] : memref<1040x128xf32, #tpu.memory_space<vmem>>, vector<1x32xf32>
    %354 = vector.broadcast %353 : vector<1x32xf32> to vector<64x32xf32>
    %355 = arith.addf %352, %354 : vector<64x32xf32>
    %c1008 = arith.constant 1008 : index
    %c0_121 = arith.constant 0 : index
    %356 = vector.load %arg2[%c1008, %c0_121] : memref<1040x128xf32, #tpu.memory_space<vmem>>, vector<1x32xf32>
    %c1016 = arith.constant 1016 : index
    %c0_122 = arith.constant 0 : index
    %357 = vector.load %arg2[%c1016, %c0_122] : memref<1040x128xf32, #tpu.memory_space<vmem>>, vector<1x32xf32>
    %cst_123 = arith.constant dense<0.000000e+00> : vector<64xf32>
    %358 = vector.multi_reduction <add>, %355, %cst_123 [1] : vector<64x32xf32> to vector<64xf32>
    %359 = vector.shape_cast %358 : vector<64xf32> to vector<64x1xf32>
    %cst_124 = arith.constant 3.200000e+01 : f32
    %360 = vector.broadcast %cst_124 : f32 to vector<64x1xf32>
    %361 = arith.divf %359, %360 : vector<64x1xf32>
    %362 = vector.broadcast %361 : vector<64x1xf32> to vector<64x32xf32>
    %363 = arith.subf %355, %362 : vector<64x32xf32>
    %364 = arith.mulf %363, %363 : vector<64x32xf32>
    %cst_125 = arith.constant dense<0.000000e+00> : vector<64xf32>
    %365 = vector.multi_reduction <add>, %364, %cst_125 [1] : vector<64x32xf32> to vector<64xf32>
    %366 = vector.shape_cast %365 : vector<64xf32> to vector<64x1xf32>
    %cst_126 = arith.constant 3.200000e+01 : f32
    %367 = vector.broadcast %cst_126 : f32 to vector<64x1xf32>
    %368 = arith.divf %366, %367 : vector<64x1xf32>
    %369 = vector.broadcast %361 : vector<64x1xf32> to vector<64x32xf32>
    %370 = arith.subf %355, %369 : vector<64x32xf32>
    %cst_127 = arith.constant 9.99999974E-6 : f32
    %371 = vector.broadcast %cst_127 : f32 to vector<64x1xf32>
    %372 = arith.addf %368, %371 : vector<64x1xf32>
    %373 = math.rsqrt %372 : vector<64x1xf32>
    %374 = vector.broadcast %373 : vector<64x1xf32> to vector<64x32xf32>
    %375 = arith.mulf %370, %374 : vector<64x32xf32>
    %376 = vector.broadcast %356 : vector<1x32xf32> to vector<64x32xf32>
    %377 = arith.mulf %375, %376 : vector<64x32xf32>
    %378 = vector.broadcast %357 : vector<1x32xf32> to vector<64x32xf32>
    %379 = arith.addf %377, %378 : vector<64x32xf32>
    %380 = vector.shape_cast %379 : vector<64x32xf32> to vector<4x16x32xf32>
    %c1024 = arith.constant 1024 : index
    %c0_128 = arith.constant 0 : index
    %381 = vector.load %arg2[%c1024, %c0_128] : memref<1040x128xf32, #tpu.memory_space<vmem>>, vector<1x32xf32>
    %382 = vector.shape_cast %381 : vector<1x32xf32> to vector<1x1x32xf32>
    %383 = vector.broadcast %382 : vector<1x1x32xf32> to vector<4x16x32xf32>
    %384 = arith.mulf %380, %383 : vector<4x16x32xf32>
    %cst_129 = arith.constant dense<0.000000e+00> : vector<4x16xf32>
    %385 = vector.multi_reduction <add>, %384, %cst_129 [2] : vector<4x16x32xf32> to vector<4x16xf32>
    %c1032 = arith.constant 1032 : index
    %c0_130 = arith.constant 0 : index
    %386 = vector.load %arg2[%c1032, %c0_130] : memref<1040x128xf32, #tpu.memory_space<vmem>>, vector<1x1xf32>
    %387 = vector.broadcast %386 : vector<1x1xf32> to vector<4x16xf32>
    %388 = arith.addf %385, %387 : vector<4x16xf32>
    %c0_131 = arith.constant 0 : index
    %c0_132 = arith.constant 0 : index
    %c0_133 = arith.constant 0 : index
    %389 = vector.load %arg3[%c0_131, %c0_132, %c0_133] : memref<1x4x16xf32, #tpu.memory_space<vmem>>, vector<1x4x16xf32>
    %390 = vector.shape_cast %389 : vector<1x4x16xf32> to vector<4x16xf32>
    %391 = vector.shape_cast %388 : vector<4x16xf32> to vector<1x4x16xf32>
    tpu.vector_store %arg3[%c0_131, %c0_132, %c0_133], %391 {strides = array<i32>} : memref<1x4x16xf32, #tpu.memory_space<vmem>>, vector<1x4x16xf32>,
    return
  }
  func.func @transform_0(%arg0: i32) -> (i32, i32, i32) {
    %c0_i32 = arith.constant 0 : i32
    %c0_i32_0 = arith.constant 0 : i32
    %c0_i32_1 = arith.constant 0 : i32
    return %arg0, %c0_i32, %c0_i32_0 : i32, i32, i32
  }
  func.func @transform_1(%arg0: i32) -> (i32, i32) {
    %c0_i32 = arith.constant 0 : i32
    %c0_i32_0 = arith.constant 0 : i32
    %c0_i32_1 = arith.constant 0 : i32
    return %c0_i32, %c0_i32_0 : i32, i32
  }
  func.func @transform_2(%arg0: i32) -> (i32, i32, i32) {
    %c0_i32 = arith.constant 0 : i32
    %c0_i32_0 = arith.constant 0 : i32
    %c0_i32_1 = arith.constant 0 : i32
    return %arg0, %c0_i32, %c0_i32_0 : i32, i32, i32
  }
}

</mosaic_0001>

<bundles_post_ra>
// kernel: tpu_custom_call.1
= control target key start
LH: loop header
LB: loop body
LE: loop exit
PB: predicated region body
PF: predicated region fallthrough
CT: control target
= control target key end

     0   :  { %7 = vsyncpa [#allocation3], 0  ;;  %s7296_s0 = inlined_call_operand.vmem [shape: f32[8,16,4], index: 0, kind: input, shape index: {}]   ;;  %s7297_s1 = inlined_call_operand.hbm [shape: f32[1040,128], index: 1, kind: input, shape index: {}]   ;;  %s7298_s2 = inlined_call_operand.hbm [shape: f32[2,4,16], index: 2, kind: output, shape index: {}]  }
   0x1   :  { %8 = vsyncpa [#allocation4], 0 }
   0x2   :  { %10 = vsyncpa [#allocation4 + $0x1], 0  ;;  %s6091_s9 = smov 0   ;;  %s6093_s10 = smov 0  }
   0x3   :  { %s6095_s11 = smov 0   ;;  %s6097_s12 = smov 0  }
   0x4 LB: > { %s6112_s13 = sadd.s32 4294967295, %s6068_s12   ;;  %s4869_s14 = sadd.s32 4294967294, %s6068_s12   ;;  %s6068_s12 = sphi %s6097_s12, %s7318_s12   ;;  %s6064_s11 = sphi %s6095_s11, %s7317_s11   ;;  %s6060_s10 = sphi %s6093_s10, %s7316_s10   ;;  %s6056_s9 = sphi %s6091_s9, %s7315_s9  }
   0x5   : > { %s6116_s15 = sadd.s32 1, %s6068_s12   ;;  %s70_s16 = sadd.s32 1, %s6064_s11 }
   0x6   : > { %s67_s17 = ssub.s32 %s6068_s12, %s6116_s15  ;;  %p80_p0 = scmp.ne.s32.totalorder %s6064_s11, %s6060_s10 }
   0x7   : > { %p68_p1 = scmp.eq.s32.totalorder %s67_s17, 0  ;;  %p81_p2 = scmp.eq.s32.totalorder %s6112_s13, 1 }
   0x8   : > { %p86_p3 = scmp.ne.s32.totalorder %s6060_s10, %s6056_s9  ;;  %p87_p4 = scmp.eq.s32.totalorder %s4869_s14, 1 }
   0x9   : > { %s6127_s18 = scalar_select %p68_p1, %s6064_s11, %s70_s16  }
   0xa   : > { %p6129_p5 = por %p81_p2, %p80_p0  ;;  %p6133_p6 = por %p87_p4, %p86_p3 }
   0xb   : > { %p4870_p7 = scmp.ge.s32.totalorder %s6068_s12, 1  ;;  %p94_p8 = scmp.lt.s32.totalorder %s6068_s12, 3 }
   0xc   : > { %s7302_s19 = scalar_select %p6129_p5, 1, 0 }
   0xd   : > { %s7303_s20 = scalar_select %p6133_p6, 1, 0 }
   0xe   : > { %p7299_p9 = scmp.eq.s32.totalorder %s6112_s13, 0  ;;  %p6140_p10 = pnand %p4870_p7, %p94_p8 }
   0xf   : > { %s6070_s22 = smov [#allocation2]   ;;  %s5974_s27 = scalar_lea.hbm %s7297_s1, 16640 }
  0x10   : > { %s7304_s21 = scalar_select %p6140_p10, 1, 0 }
  0x11   : > { %s106_s23 = sshll.u32 %s6070_s22, 4  ;;  %p5718_p11 = pneg %p6140_p10  ;;  %s107_s23 = int_to_ptr.vmem [resolvable:$true] %s106_s23 }
  0x12   : > { %p5975_p13 = scmp.ne.s32.totalorder %s7297_s1, %s5974_s27  ;;  %p5981_p3 = scmp.lt.u32.totalorder %s5974_s27, %s7297_s1 }
  0x13   : > { %p6148_p12 = pnand %p7299_p9, %p5718_p11 }
  0x15   : > { %p5976_p0 = pneg %p6148_p12 }
  0x17   : > { %p5977_p1 = pnand %p5976_p0, %p5975_p13 }
  0x19   : > { %p5978_p2 = pneg %p5977_p1 }
  0x1b   : > { %p5983_p4 = pnand %p5981_p3, %p5978_p2 }
  0x1d   : > { %5986 = shalt.err (!%p5983_p4)
}
  0x1e   : > { %s5987_s4 = scalar_lea.vmem %s107_s23, 16640  ;;  %p5995_p9 = scmp.lt.s32.totalorder %s107_s23, %s107_s23 }
  0x1f   : > { %p5988_p7 = scmp.ne.s32.totalorder %s107_s23, %s5987_s4  ;;  %p5996_p6 = scmp.lt.s32.totalorder %s5987_s4, %s5987_s4 }
  0x21   : > { %p5990_p8 = pnand %p5988_p7, %p5976_p0  ;;  %p5997_p5 = por %p5996_p6, %p5995_p9 }
  0x23   : > { %p5991_p11 = pneg %p5990_p8 }
  0x25   : > { %p5998_p10 = pnand %p5997_p5, %p5991_p11 }
  0x27   : > { %6001 = shalt.err (!%p5998_p10)
}
  0x28   : > { %s6071_s5 = smov 128   ;;  %s6072_s6 = smov 8  }
  0x29   : > { %5721 = dma.hbm_to_vmem [thread:$0]  (!%p6148_p12), %s7297_s1, 16640, %s107_s23, [#allocation3], %s6071_s5, %s6071_s5, %s6072_s6  }
  0x2a   : > { %p7306_p13 = scmp.ne.s32.totalorder %s7304_s21, 0 }
  0x2b   : > { %p7307_p1 = scmp.eq.s32.totalorder (!%p7306_p13), %s6112_s13, 0 }
  0x2c   : > { %132 = sbr.rel (%p7306_p13) target bundleno = 6945 (0x1b21), region = 28 }
  0x33   : > { %6047 = dma.done.wait (%p7307_p1), [#allocation3], 16640   ;;  %p7308_p0 = pmov %p7307_p1 }
  0x34   : > { %s4876_s14 = sshll.u32 %s6112_s13, 2  ;;  %vm202_vm0 = vcmask 1043456   ;;  %vm177_vm1 = vcmask 31744   ;;  %v171_v0 = vld [vmem:[#allocation2] sm:$0xf]  ;;  %v319_v14 = vld [vmem:[#allocation2 + $0x10] sm:$0xff] }
  0x35   : > { %6049 = vsyncadd (%p7308_p0), [#allocation3], 4294950656  ;;  %p156_p5 = scmp.lt.s32.totalorder %s4876_s14, 7  ;;  %5228 = vmatprep.subr.msk.mxu0 %vm202_vm0, %v171_v0  ;;  %v4879_v9 = vld [vmem:[#allocation2 + $0x8] ss:$0 sm:$0xff]  ;;  %v320_v18 = vld [vmem:[#allocation2 + $0x18] sm:$0xff] }
  0x36   : > { %5229 = vmatpush3.msk.msra.mxu0 %vm202_vm0, %v171_v0  ;;  %vm338_vm2 = vcmask 261120   ;;  %vm6074_vm3 = vmmov 0   ;;  %vm724_vm4 = vcmask 130048   ;;  %s152_s24 = sand.u32 1, %s6060_s10   ;;  %vm4746_vm7 = vcmask 130112   ;;  %s5023_s26 = sshll.u32 %s6112_s13, 6 }
  0x37   : > { %s7320_s14 = smov (!%p156_p5, %s4876_s14), 7  ;;  %s7239_s25 = sshll.u32 %s152_s24, 2  ;;  %vm4775_vm8 = vcmask 1041409   ;;  %vm4777_vm9 = vcmask 1042434   ;;  %vm4779_vm10 = vcmask 1043459   ;;  %vm4782_vm11 = vcmask 125952  }
  0x38   : > { %s5026_s16 = sshll.u32 %s7320_s14, 4  ;;  %s154_s27 = scalar_lea.vmem [#allocation5], %s7239_s25 }
  0x39   : > { %s160_s23 = scalar_lea.vmem %s7296_s0, %s5026_s16  ;;  %s4798_s28 = sshll.u32 %s154_s27, 4  ;;  %s7254_s28 = int_to_ptr.vmem [resolvable:$true] %s4798_s28 }
  0x3a   : > { %v163_v1 = vld [vmem:[%s160_s23] sm:$0xff]  ;;  %v164_v2 = vld [vmem:[%s160_s23 + $0x8] sm:$0xff]  ;;  %v165_v3 = vld [vmem:[%s160_s23 + $0x10] sm:$0xff]  ;;  %s7252_s3 = scalar_lea.hbm %s7298_s2, %s5023_s26  ;;  %s4785_s13 = scalar_lea.sflag [#allocation4], %s152_s24 }
  0x3b   : > { %5230 = vmatprep.mubr.msk.f32.mxu0 %vm177_vm1, %v163_v1  ;;  %v166_v4 = vld [vmem:[%s160_s23 + $0x18] sm:$0xff]  ;;  %v167_v5 = vld [vmem:[%s160_s23 + $0x20] sm:$0xff]  ;;  %v168_v6 = vld [vmem:[%s160_s23 + $0x28] sm:$0xff]  ;;  %s6002_s4 = scalar_lea.vmem %s7254_s28, 64  ;;  %p7313_p9 = scmp.ne.s32.totalorder %s7302_s19, 0 }
  0x3c   : > { %5231 = vmatmul.mubr.msk.f32.vlgmr.msra.gmra.mrb[0].mxu0 %vm177_vm1, %v164_v2  ;;  %v169_v7 = vld [vmem:[%s160_s23 + $0x30] sm:$0xff]  ;;  %v170_v8 = vld [vmem:[%s160_s23 + $0x38] sm:$0xff]  ;;  %p6003_p6 = scmp.ne.s32.totalorder %s7254_s28, %s6002_s4  ;;  %s6075_s5 = smov [#allocation5]  }
  0x3d   : > { %5233 = vmatprep.mubr.msk.f32.mxu0 %vm177_vm1, %v165_v3  ;;  %s6006_s6 = sshll.u32 %s6075_s5, 4  ;;  %s6007_s6 = int_to_ptr.vmem [resolvable:$false] %s6006_s6 }
  0x3e   : > { %p6004_p10 = pnand %p6003_p6, %p7313_p9  ;;  %s6008_s7 = scalar_lea.vmem %s6007_s6, 128 }
  0x3f   : > { %p6009_p2 = scmp.lt.s32.totalorder %s7254_s28, %s6007_s6  ;;  %p6010_p3 = scmp.lt.s32.totalorder %s6008_s7, %s6002_s4 }
  0x40   : > { %5234 = vmatmul.mubr.msk.f32.gmra.mrb[2].mxu0 %vm177_vm1, %v166_v4  ;;  %p6005_p12 = pneg %p6004_p10 }
  0x41   : > { %5236 = vmatprep.mubr.msk.f32.mxu0 %vm177_vm1, %v167_v5  ;;  %p6011_p4 = por %p6010_p3, %p6009_p2 }
  0x43   : > { %p6012_p7 = pnand %p6011_p4, %p6005_p12 }
  0x44   : > { %5237 = vmatmul.mubr.msk.f32.gmra.mrb[4].mxu0 %vm177_vm1, %v168_v6 }
  0x45   : > { %5239 = vmatprep.mubr.msk.f32.mxu0 %vm177_vm1, %v169_v7 }
  0x48   : > { %5240 = vmatmul.mubr.msk.f32.gmra.mrb[6].mxu0 %vm177_vm1, %v170_v8 }
 0x10f   : > { %v5232_v10 = vpop.f32.mrb[0].mxu0 }
 0x110   : > { %v278_v11 = vadd.f32 %v5232_v10, %v4879_v9  ;;  %v272_v12 = vpop.f32.mrb[1].mxu0 }
 0x111   : > { %v273_v13 = vadd.f32 %v4879_v9, %v272_v12 }
 0x112   : > { %v312_v15 = vmul.f32 5.656854, %v278_v11 }
 0x113   : > { %v311_v16 = vmul.f32 5.656854, %v273_v13  ;;  %v5235_v17 = vpop.f32.mrb[2].mxu0 }
 0x114   : > { %v288_v19 = vadd.f32 %v5235_v17, %v4879_v9  ;;  %v282_v20 = vpop.f32.mrb[3].mxu0  ;;  %v6188_v23 = vadd.f32 %v320_v18, %v312_v15 }
 0x115   : > { %v6186_v21 = vadd.f32 %v319_v14, %v311_v16  ;;  %v283_v22 = vadd.f32 %v4879_v9, %v282_v20 }
 0x116   : > { %v314_v24 = vmul.f32 5.656854, %v288_v19  ;;  %v342_v37 = vsel %vm338_vm2, %v6188_v23, 0.0 }
 0x117   : > { %v313_v25 = vmul.f32 5.656854, %v283_v22  ;;  %v5238_v26 = vpop.f32.mrb[4].mxu0  ;;  %v339_v27 = vsel %vm338_vm2, %v6186_v21, 0.0 }
 0x118   : > { %v298_v28 = vadd.f32 %v5238_v26, %v4879_v9  ;;  %v292_v29 = vpop.f32.mrb[5].mxu0  ;;  %340 = vadd.xlane.f32.xlu0 %v339_v27  ;;  %v6194_v33 = vadd.f32 %v320_v18, %v314_v24 }
 0x119   : > { %v6192_v30 = vadd.f32 %v319_v14, %v313_v25  ;;  %v293_v31 = vadd.f32 %v4879_v9, %v292_v29 }
 0x11a   : > { %v316_v32 = vmul.f32 5.656854, %v298_v28  ;;  %v348_v45 = vsel %vm338_vm2, %v6194_v33, 0.0 }
 0x11b   : > { %v315_v34 = vmul.f32 5.656854, %v293_v31  ;;  %v5241_v35 = vpop.f32.mrb[6].mxu0  ;;  %v345_v36 = vsel %vm338_vm2, %v6192_v30, 0.0  ;;  %v472_v31 = vld [vmem:[#allocation2 + $0x30] sm:$0xff] }
 0x11c   : > { %v308_v38 = vadd.f32 %v5241_v35, %v4879_v9  ;;  %v302_v39 = vpop.f32.mrb[7].mxu0  ;;  %346 = vadd.xlane.f32.xlu1 %v345_v36  ;;  %343 = vadd.xlane.f32.xlu0 %v342_v37  ;;  %v6200_v40 = vadd.f32 %v320_v18, %v316_v32  ;;  %v473_v32 = vld [vmem:[#allocation2 + $0x38] sm:$0xff]  ;;  %v474_v35 = vld [vmem:[#allocation2 + $0x40] sm:$0xff]  ;;  %v475_v36 = vld [vmem:[#allocation2 + $0x48] sm:$0xff] }
 0x11d   : > { %v6202_v41 = vadd.f32 %v319_v14, %v315_v34  ;;  %v303_v42 = vadd.f32 %v4879_v9, %v302_v39  ;;  %v476_v34 = vpack.c.bf16 %v473_v32, %v472_v31  ;;  %v477_v37 = vpack.c.bf16 %v475_v36, %v474_v35  ;;  %v561_v39 = vld [vmem:[#allocation2 + $0x58] sm:$0xff] }
 0x11e   : > { %v318_v43 = vmul.f32 5.656854, %v308_v38  ;;  %v354_v49 = vsel %vm338_vm2, %v6200_v40, 0.0  ;;  %v560_v38 = vld [vmem:[#allocation2 + $0x50] sm:$0xff] }
 0x11f   : > { %v317_v44 = vmul.f32 5.656854, %v303_v42  ;;  %v351_v46 = vsel %vm338_vm2, %v6202_v41, 0.0  ;;  %5242 = vmatprep.subr.bf16.mxu0 %v476_v34  ;;  %5690 = vmatprep.subr.bf16.mxu1 %v476_v34  ;;  %v6266_v42 = vpack.c.bf16 %v561_v39, %v560_v38  ;;  %v562_v39 = vld [vmem:[#allocation2 + $0x60] sm:$0xff] }
 0x120   : > { %349 = vadd.xlane.f32.xlu1 %v348_v45  ;;  %352 = vadd.xlane.f32.xlu0 %v351_v46  ;;  %v6208_v47 = vadd.f32 %v320_v18, %v318_v43  ;;  %v636_v43 = vld [vmem:[#allocation2 + $0x70] sm:$0xff] }
 0x121   : > { %v6210_v48 = vadd.f32 %v319_v14, %v317_v44  ;;  %5243 = vmatpush3.bf16.msra.mxu0 %v476_v34  ;;  %5692 = vmatpush3.bf16.msra.mxu1 %v476_v34  ;;  %v637_v44 = vld [vmem:[#allocation2 + $0x78] sm:$0xff] }
 0x122   : > { %v360_v51 = vsel %vm338_vm2, %v6208_v47, 0.0  ;;  %5244 = vmatprep.subr.bf16.mxu0 %v477_v37  ;;  %5691 = vmatprep.subr.bf16.mxu1 %v477_v37  ;;  %v6269_v45 = vpack.c.bf16 %v637_v44, %v636_v43 }
 0x123   : > { %v357_v50 = vsel %vm338_vm2, %v6210_v48, 0.0 }
 0x124   : > { %355 = vadd.xlane.f32.xlu1 %v354_v49  ;;  %358 = vadd.xlane.f32.xlu0 %v357_v50 }
 0x125   : > { %5245 = vmatpush3.bf16.msra.mxu0 %v477_v37  ;;  %5693 = vmatpush3.bf16.msra.mxu1 %v477_v37 }
 0x126   : > { %5254 = vmatprep.subr.bf16.mxu0 %v6266_v42  ;;  %5266 = vmatprep.subr.bf16.mxu1 %v6269_v45 }
 0x128   : > { %361 = vadd.xlane.f32.xlu1 %v360_v51 }
 0x1a5   : > { %v341_v52 = vpop.xlane.xlu0 %340 }
 0x1a6   : > { %v364_v53 = vmul.f32 0.03125, %v341_v52 }
 0x1a8   : > { %v6219_v54 = vsub.f32 %v6186_v21, %v364_v53 }
 0x1a9   : > { %v347_v55 = vpop.xlane.xlu1 %346  ;;  %v344_v56 = vpop.xlane.xlu0 %343 }
 0x1aa   : > { %v366_v57 = vmul.f32 0.03125, %v347_v55  ;;  %v365_v58 = vmul.f32 0.03125, %v344_v56  ;;  %v380_v59 = vmul.f32 %v6219_v54, %v6219_v54 }
 0x1ac   : > { %v6224_v60 = vsub.f32 %v6192_v30, %v366_v57  ;;  %v6227_v61 = vsub.f32 %v6188_v23, %v365_v58  ;;  %v388_v62 = vsel %vm338_vm2, %v380_v59, 0.0 }
 0x1ad   : > { %v350_v63 = vpop.xlane.xlu1 %349  ;;  %389 = vadd.xlane.f32.xlu0 %v388_v62  ;;  %v353_v0 = vpop.xlane.xlu0 %352 }
 0x1ae   : > { %v367_v1 = vmul.f32 0.03125, %v350_v63  ;;  %v368_v2 = vmul.f32 0.03125, %v353_v0  ;;  %v382_v3 = vmul.f32 %v6224_v60, %v6224_v60  ;;  %v381_v4 = vmul.f32 %v6227_v61, %v6227_v61 }
 0x1b0   : > { %v6235_v5 = vsub.f32 %v6194_v33, %v367_v1  ;;  %v6238_v6 = vsub.f32 %v6202_v41, %v368_v2  ;;  %v394_v7 = vsel %vm338_vm2, %v382_v3, 0.0  ;;  %v391_v8 = vsel %vm338_vm2, %v381_v4, 0.0 }
 0x1b1   : > { %v356_v9 = vpop.xlane.xlu1 %355  ;;  %395 = vadd.xlane.f32.xlu0 %v394_v7  ;;  %392 = vadd.xlane.f32.xlu1 %v391_v8  ;;  %v359_v10 = vpop.xlane.xlu0 %358 }
 0x1b2   : > { %v369_v11 = vmul.f32 0.03125, %v356_v9  ;;  %v370_v12 = vmul.f32 0.03125, %v359_v10  ;;  %v383_v13 = vmul.f32 %v6235_v5, %v6235_v5  ;;  %v384_v14 = vmul.f32 %v6238_v6, %v6238_v6 }
 0x1b4   : > { %v6247_v15 = vsub.f32 %v6200_v40, %v369_v11  ;;  %v6250_v16 = vsub.f32 %v6210_v48, %v370_v12  ;;  %v397_v17 = vsel %vm338_vm2, %v383_v13, 0.0  ;;  %v400_v18 = vsel %vm338_vm2, %v384_v14, 0.0  ;;  %v4889_v13 = vld [vmem:[#allocation2 + $0x20] ss:$0 sm:$0xff] }
 0x1b5   : > { %v362_v19 = vpop.xlane.xlu1 %361  ;;  %398 = vadd.xlane.f32.xlu1 %v397_v17  ;;  %401 = vadd.xlane.f32.xlu0 %v400_v18 }
 0x1b6   : > { %v371_v20 = vmul.f32 0.03125, %v362_v19  ;;  %v385_v22 = vmul.f32 %v6247_v15, %v6247_v15  ;;  %v386_v24 = vmul.f32 %v6250_v16, %v6250_v16 }
 0x1b8   : > { %v6259_v25 = vsub.f32 %v6208_v47, %v371_v20  ;;  %v403_v26 = vsel %vm338_vm2, %v385_v22, 0.0  ;;  %v406_v27 = vsel %vm338_vm2, %v386_v24, 0.0  ;;  %v4890_v24 = vld [vmem:[#allocation2 + $0x28] ss:$0 sm:$0xff] }
 0x1b9   : > { %404 = vadd.xlane.f32.xlu1 %v403_v26  ;;  %407 = vadd.xlane.f32.xlu0 %v406_v27 }
 0x1ba   : > { %v387_v28 = vmul.f32 %v6259_v25, %v6259_v25 }
 0x1bc   : > { %v409_v29 = vsel %vm338_vm2, %v387_v28, 0.0 }
 0x1bd   : > { %410 = vadd.xlane.f32.xlu1 %v409_v29 }
 0x23a   : > { %v390_v46 = vpop.xlane.xlu0 %389 }
 0x23b   : > { %v412_v49 = vmul.f32 0.03125, %v390_v46 }
 0x23d   : > { %v420_v50 = vadd.f32 1e-05, %v412_v49 }
 0x23e   : > { %v393_v51 = vpop.xlane.xlu1 %392  ;;  %v396_v52 = vpop.xlane.xlu0 %395 }
 0x23f   : > { %5766 = vrsqrt.f32 %v420_v50  ;;  %v413_v53 = vmul.f32 0.03125, %v393_v51  ;;  %v414_v55 = vmul.f32 0.03125, %v396_v52 }
 0x241   : > { %v421_v56 = vadd.f32 1e-05, %v413_v53  ;;  %v422_v57 = vadd.f32 1e-05, %v414_v55 }
 0x242   : > { %v399_v58 = vpop.xlane.xlu1 %398  ;;  %v402_v59 = vpop.xlane.xlu0 %401 }
 0x243   : > { %5768 = vrsqrt.f32 %v421_v56  ;;  %v415_v62 = vmul.f32 0.03125, %v399_v58  ;;  %v416_v63 = vmul.f32 0.03125, %v402_v59  ;;  %v638_v58 = vld [vmem:[#allocation2 + $0x80] sm:$0xff]  ;;  %v639_v59 = vld [vmem:[#allocation2 + $0x88] sm:$0xff] }
 0x244   : > { %5770 = vrsqrt.f32 %v422_v57 }
 0x245   : > { %v423_v0 = vadd.f32 1e-05, %v415_v62  ;;  %v424_v1 = vadd.f32 1e-05, %v416_v63 }
 0x246   : > { %v405_v2 = vpop.xlane.xlu1 %404  ;;  %v408_v3 = vpop.xlane.xlu0 %407 }
 0x247   : > { %5772 = vrsqrt.f32 %v423_v0  ;;  %v417_v4 = vmul.f32 0.03125, %v405_v2  ;;  %v418_v7 = vmul.f32 0.03125, %v408_v3  ;;  %v641_v0 = vpack.c.bf16 %v639_v59, %v638_v58 }
 0x248   : > { %5774 = vrsqrt.f32 %v424_v1  ;;  %v4891_v1 = vld [vmem:[#allocation2 + $0x90] ss:$0 sm:$0xff] }
 0x249   : > { %v5767_v8 = vpop.eup %5766  ;;  %v425_v9 = vadd.f32 1e-05, %v417_v4  ;;  %v426_v10 = vadd.f32 1e-05, %v418_v7 }
 0x24a   : > { %v436_v11 = vmul.f32 %v5767_v8, %v6219_v54  ;;  %v411_v12 = vpop.xlane.xlu1 %410 }
 0x24b   : > { %5776 = vrsqrt.f32 %v425_v9  ;;  %v419_v14 = vmul.f32 0.03125, %v411_v12 }
 0x24c   : > { %5778 = vrsqrt.f32 %v426_v10  ;;  %v448_v20 = vmul.f32 %v4889_v13, %v436_v11 }
 0x24d   : > { %v5769_v17 = vpop.eup %5768  ;;  %v427_v18 = vadd.f32 1e-05, %v419_v14 }
 0x24e   : > { %v5771_v19 = vpop.eup %5770  ;;  %v437_v22 = vmul.f32 %v5769_v17, %v6227_v61  ;;  %v460_v31 = vadd.f32 %v4890_v24, %v448_v20  ;;  %v563_v61 = vld [vmem:[#allocation2 + $0x68] sm:$0xff]  ;;  %v4896_v17 = vld [vmem:[#allocation2 + $0x98] ss:$0 sm:$0xff] }
 0x24f   : > { %v438_v26 = vmul.f32 %v5771_v19, %v6224_v60  ;;  %5780 = vrsqrt.f32 %v427_v18 }
 0x250   : > { %v449_v27 = vmul.f32 %v4889_v13, %v437_v22 }
 0x251   : > { %v5773_v28 = vpop.eup %5772  ;;  %v450_v32 = vmul.f32 %v4889_v13, %v438_v26 }
 0x252   : > { %v5775_v29 = vpop.eup %5774  ;;  %v461_v54 = vadd.f32 %v4890_v24, %v449_v27  ;;  %v439_v34 = vmul.f32 %v5773_v28, %v6235_v5 }
 0x253   : > { %v440_v35 = vmul.f32 %v5775_v29, %v6238_v6  ;;  %v462_v44 = vadd.f32 %v4890_v24, %v450_v32  ;;  %v565_v6 = vpack.c.bf16 %v563_v61, %v562_v39 }
 0x254   : > { %v451_v36 = vmul.f32 %v4889_v13, %v439_v34  ;;  %v6277_v37 = vpack.c.bf16 %v461_v54, %v460_v31 }
 0x255   : > { %v5777_v38 = vpop.eup %5776  ;;  %v452_v46 = vmul.f32 %v4889_v13, %v440_v35 }
 0x256   : > { %v5779_v43 = vpop.eup %5778  ;;  %v463_v60 = vadd.f32 %v4890_v24, %v451_v36  ;;  %v441_v49 = vmul.f32 %v5777_v38, %v6247_v15  ;;  %5246 = vmatprep.mubr.msk.bf16.mxu0 %vm338_vm2, %v6277_v37 }
 0x257   : > { %v442_v50 = vmul.f32 %v5779_v43, %v6250_v16  ;;  %v464_v53 = vadd.f32 %v4890_v24, %v452_v46  ;;  %v4901_v46 = vld [vmem:[#allocation2 + $0xa0] ss:$0 sm:$0xff] }
 0x258   : > { %v453_v5 = vmul.f32 %v4889_v13, %v441_v49  ;;  %v6283_v51 = vpack.c.bf16 %v463_v60, %v462_v44 }
 0x259   : > { %v5781_v52 = vpop.eup %5780  ;;  %v454_v56 = vmul.f32 %v4889_v13, %v442_v50 }
 0x25a   : > { %v465_v55 = vadd.f32 %v4890_v24, %v453_v5  ;;  %v443_v57 = vmul.f32 %v5781_v52, %v6259_v25  ;;  %5247 = vmatmul.mubr.msk.bf16.vlgmr.msra.gmra.mrb[8].mxu0 %vm338_vm2, %v6283_v51 }
 0x25b   : > { %5255 = vmatpush3.bf16.msra.mxu0 %v6266_v42  ;;  %5258 = vmatprep.mubr.msk.bf16.mxu0 %vm338_vm2, %v6277_v37  ;;  %v466_v62 = vadd.f32 %v4890_v24, %v454_v56  ;;  %v6073_v42 = vmov 0.0  }
 0x25c   : > { %v455_v15 = vmul.f32 %v4889_v13, %v443_v57  ;;  %v6291_v16 = vpack.c.bf16 %v465_v55, %v464_v53  ;;  %5256 = vmatprep.subr.bf16.mxu0 %v565_v6 }
 0x25e   : > { %v467_v63 = vadd.f32 %v4890_v24, %v455_v15  ;;  %5250 = vmatprep.mubr.msk.bf16.mxu1 %vm338_vm2, %v6291_v16 }
 0x25f   : > { %5257 = vmatpush3.bf16.msra.mxu0 %v565_v6 }
 0x260   : > { %v6295_v25 = vpack.c.bf16 %v467_v63, %v466_v62  ;;  %5278 = vmatprep.subr.bf16.mxu0 %v6073_v42 }
 0x262   : > { %5251 = vmatmul.mubr.msk.bf16.vlgmr.msra.gmra.mrb[0].mxu1 %vm338_vm2, %v6295_v25  ;;  %5259 = vmatmul.mubr.msk.bf16.vlgmr.msra.gmra.mrb[12].mxu0 %vm338_vm2, %v6283_v51 }
 0x263   : > { %5262 = vmatprep.mubr.msk.bf16.mxu0 %vm338_vm2, %v6291_v16  ;;  %5267 = vmatpush3.bf16.msra.mxu1 %v6269_v45 }
 0x264   : > { %5270 = vmatprep.mubr.msk.bf16.mxu1 %vm338_vm2, %v6277_v37  ;;  %5268 = vmatprep.subr.bf16.mxu1 %v641_v0 }
 0x267   : > { %5269 = vmatpush3.bf16.msra.mxu1 %v641_v0 }
 0x268   : > { %5284 = vmatprep.subr.bf16.mxu1 %v6073_v42 }
 0x26a   : > { %5263 = vmatmul.mubr.msk.bf16.gmra.mrb[16].mxu0 %vm338_vm2, %v6295_v25  ;;  %5271 = vmatmul.mubr.msk.bf16.vlgmr.msra.gmra.mrb[4].mxu1 %vm338_vm2, %v6283_v51 }
 0x26b   : > { %5274 = vmatprep.mubr.msk.bf16.mxu1 %vm338_vm2, %v6291_v16  ;;  %5280 = vmatprep.mubr.msk.bf16.mxu0 %vm6074_vm3, %v6073_v42 }
 0x272   : > { %5275 = vmatmul.mubr.msk.bf16.gmra.mrb[8].mxu1 %vm338_vm2, %v6295_v25 }
 0x273   : > { %5286 = vmatprep.mubr.msk.bf16.mxu1 %vm6074_vm3, %v6073_v42 }
 0x32d   : > { %v5248_v45 = vpop.f32.mrb[8].mxu0 }
 0x32e   : > { %v529_v2 = vpop.f32.mrb[9].mxu0  ;;  %v538_v4 = vadd.f32 %v5248_v45, %v4891_v1 }
 0x32f   : > { %v5249_v3 = vpop.f32.mrb[10].mxu0  ;;  %v530_v9 = vadd.f32 %v4891_v1, %v529_v2 }
 0x330   : > { %v541_v7 = vadd.f32 %v5249_v3, %v4891_v1  ;;  %v532_v8 = vpop.f32.mrb[11].mxu0 }
 0x331   : > { %v533_v10 = vadd.f32 %v4891_v1, %v532_v8 }
 0x332   : > { %v713_v11 = vpack.c.bf16 %v541_v7, %v538_v4 }
 0x333   : > { %v712_v12 = vpack.c.bf16 %v533_v10, %v530_v9 }
 0x335   : > { %v5252_v13 = vpop.f32.mrb[0].mxu1  ;;  %v5260_v14 = vpop.f32.mrb[12].mxu0 }
 0x336   : > { %v545_v18 = vpop.f32.mrb[1].mxu1  ;;  %v605_v19 = vpop.f32.mrb[13].mxu0  ;;  %v554_v24 = vadd.f32 %v5252_v13, %v4891_v1  ;;  %v614_v26 = vadd.f32 %v5260_v14, %v4896_v17 }
 0x337   : > { %v5253_v20 = vpop.f32.mrb[2].mxu1  ;;  %v5261_v22 = vpop.f32.mrb[14].mxu0  ;;  %v546_v54 = vadd.f32 %v4891_v1, %v545_v18  ;;  %v606_v32 = vadd.f32 %v4896_v17, %v605_v19 }
 0x338   : > { %v557_v27 = vadd.f32 %v5253_v20, %v4891_v1  ;;  %v617_v28 = vadd.f32 %v5261_v22, %v4896_v17  ;;  %v548_v29 = vpop.f32.mrb[3].mxu1  ;;  %v608_v31 = vpop.f32.mrb[15].mxu0  ;;  %v329_v20 = vlaneseq }
 0x339   : > { %v549_v34 = vadd.f32 %v4891_v1, %v548_v29  ;;  %v609_v35 = vadd.f32 %v4896_v17, %v608_v31 }
 0x33a   : > { %v715_v36 = vpack.c.bf16 %v557_v27, %v554_v24  ;;  %v717_v38 = vpack.c.bf16 %v617_v28, %v614_v26  ;;  %v6354_v22 = vshrl.u32 %v329_v20, 7  ;;  %v6356_v24 = vand.u32 127, %v329_v20 }
 0x33b   : > { %v714_v39 = vpack.c.bf16 %v549_v34, %v546_v54  ;;  %v716_v61 = vpack.c.bf16 %v609_v35, %v606_v32 }
 0x33c   : > { %v776_v43 = vsel %vm724_vm4, %v717_v38, 0  ;;  %v331_v26 = vadd.s32 8, %v6354_v22  ;;  %vm6361_vm5 = vcmp.ge.s32.totalorder %v6354_v22, %v6356_v24 }
 0x33d   : > { %v5264_v44 = vpop.f32.mrb[16].mxu0  ;;  %v5272_v60 = vpop.f32.mrb[4].mxu1  ;;  %5285 = vmatpush3.bf16.xpose.msra.mxu1 %v776_v43  ;;  %v729_v49 = vsel %vm724_vm4, %v716_v61, 0 }
 0x33e   : > { %v621_v50 = vpop.f32.mrb[17].mxu0  ;;  %v681_v5 = vpop.f32.mrb[5].mxu1  ;;  %5279 = vmatpush3.bf16.xpose.msra.mxu0 %v729_v49  ;;  %5296 = vmatprep.subr.bf16.mxu1 %v6073_v42  ;;  %v630_v53 = vadd.f32 %v5264_v44, %v4896_v17  ;;  %v690_v55 = vadd.f32 %v5272_v60, %v4901_v46  ;;  %vm6366_vm6 = vcmp.ge.s32.totalorder %v331_v26, %v6356_v24 }
 0x33f   : > { %v5265_v6 = vpop.f32.mrb[18].mxu0  ;;  %v5273_v52 = vpop.f32.mrb[6].mxu1  ;;  %5290 = vmatprep.subr.bf16.mxu0 %v6073_v42  ;;  %v622_v59 = vadd.f32 %v4896_v17, %v621_v50  ;;  %v682_v62 = vadd.f32 %v4901_v46, %v681_v5 }
 0x340   : > { %v633_v56 = vadd.f32 %v5265_v6, %v4896_v17  ;;  %v693_v57 = vadd.f32 %v5273_v52, %v4901_v46  ;;  %v624_v15 = vpop.f32.mrb[19].mxu0  ;;  %v684_v58 = vpop.f32.mrb[7].mxu1 }
 0x341   : > { %v625_v63 = vadd.f32 %v4896_v17, %v624_v15  ;;  %v685_v0 = vadd.f32 %v4901_v46, %v684_v58 }
 0x342   : > { %v719_v45 = vpack.c.bf16 %v633_v56, %v630_v53  ;;  %v721_v1 = vpack.c.bf16 %v693_v57, %v690_v55 }
 0x343   : > { %v718_v2 = vpack.c.bf16 %v625_v63, %v622_v59  ;;  %v720_v3 = vpack.c.bf16 %v685_v0, %v682_v62 }
 0x344   : > { %5287 = vmatmul.mubr.msk.bf16.vlgmr.msra.gmra.mrb[12].mxu1 %vm724_vm4, %v713_v11  ;;  %v870_v4 = vsel %vm724_vm4, %v719_v45, 0 }
 0x345   : > { %v5276_v7 = vpop.f32.mrb[8].mxu1  ;;  %5281 = vmatmul.mubr.msk.bf16.vlgmr.msra.gmra.mrb[20].mxu0 %vm724_vm4, %v712_v12  ;;  %5297 = vmatpush3.bf16.xpose.msra.mxu1 %v870_v4  ;;  %v823_v8 = vsel %vm724_vm4, %v718_v2, 0 }
 0x346   : > { %v6328_v9 = vadd.f32 %v5276_v7, %v4901_v46  ;;  %v697_v10 = vpop.f32.mrb[9].mxu1  ;;  %5291 = vmatpush3.bf16.xpose.msra.mxu0 %v823_v8  ;;  %5298 = vmatprep.mubr.msk.bf16.mxu1 %vm6074_vm3, %v6073_v42 }
 0x347   : > { %v6332_v13 = vadd.f32 %v4901_v46, %v697_v10  ;;  %v5277_v14 = vpop.f32.mrb[10].mxu1  ;;  %5292 = vmatprep.mubr.msk.bf16.mxu0 %vm6074_vm3, %v6073_v42  ;;  %5308 = vmatprep.subr.bf16.mxu1 %v6073_v42 }
 0x348   : > { %v6337_v11 = vadd.f32 %v5277_v14, %v4901_v46  ;;  %v700_v12 = vpop.f32.mrb[11].mxu1  ;;  %5302 = vmatprep.subr.bf16.mxu0 %v6073_v42 }
 0x349   : > { %v6340_v17 = vadd.f32 %v4901_v46, %v700_v12 }
 0x34a   : > { %v723_v18 = vpack.c.bf16 %v6337_v11, %v6328_v9 }
 0x34b   : > { %v722_v19 = vpack.c.bf16 %v6340_v17, %v6332_v13  ;;  %v1360_v17 = vld [vmem:[#allocation2 + $0xf8] sm:$0xff] }
 0x34c   : > { %5299 = vmatmul.mubr.msk.bf16.vlgmr.msra.gmra.mrb[16].mxu1 %vm724_vm4, %v715_v36 }
 0x34d   : > { %5293 = vmatmul.mubr.msk.bf16.vlgmr.msra.gmra.mrb[24].mxu0 %vm724_vm4, %v714_v39  ;;  %5309 = vmatpush3.bf16.msra.mxu1 %v721_v1 }
 0x34e   : > { %5303 = vmatpush3.bf16.msra.mxu0 %v720_v3  ;;  %5310 = vmatprep.mubr.msk.bf16.mxu1 %vm6074_vm3, %v6073_v42 }
 0x34f   : > { %5320 = vmatprep.subr.bf16.mxu1 %v6073_v42  ;;  %5304 = vmatprep.mubr.msk.bf16.mxu0 %vm6074_vm3, %v6073_v42 }
 0x350   : > { %5314 = vmatprep.subr.bf16.mxu0 %v6073_v42 }
 0x417   : > { %v812_v27 = vpop.f32.mrb[12].mxu1 }
 0x418   : > { %v915_v29 = vmul.f32 0.25, %v812_v27  ;;  %v765_v31 = vpop.f32.mrb[20].mxu0  ;;  %v5288_v54 = vpop.f32.mrb[13].mxu1 }
 0x419   : > { %v913_v32 = vmul.f32 0.25, %v765_v31  ;;  %v5282_v34 = vpop.f32.mrb[21].mxu0  ;;  %v815_v35 = vpop.f32.mrb[14].mxu1 }
 0x41a   : > { %v916_v38 = vmul.f32 0.25, %v815_v35  ;;  %v768_v39 = vpop.f32.mrb[22].mxu0  ;;  %v5289_v61 = vpop.f32.mrb[15].mxu1  ;;  %v927_v43 = vsel %vm6361_vm5, %v915_v29, -1e+30 }
 0x41b   : > { %v914_v44 = vmul.f32 0.25, %v768_v39  ;;  %v5283_v60 = vpop.f32.mrb[23].mxu0  ;;  %v939_v46 = vsel %vm724_vm4, %v927_v43, -inf  ;;  %v925_v50 = vsel %vm6361_vm5, %v913_v32, -1e+30 }
 0x41c   : > { %940 = vmax.xlane.f32.xlu0 %v939_v46  ;;  %v928_v49 = vsel %vm6366_vm6, %v916_v38, -1e+30  ;;  %v933_v53 = vsel %vm724_vm4, %v925_v50, -inf }
 0x41d   : > { %v942_v5 = vsel %vm724_vm4, %v928_v49, -inf  ;;  %v926_v6 = vsel %vm6366_vm6, %v914_v44, -1e+30 }
 0x41e   : > { %943 = vmax.xlane.f32.xlu1 %v942_v5  ;;  %v936_v62 = vsel %vm724_vm4, %v926_v6, -inf }
 0x41f   : > { %v906_v52 = vpop.f32.mrb[16].mxu1 }
 0x420   : > { %v919_v55 = vmul.f32 0.25, %v906_v52  ;;  %934 = vmax.xlane.f32.xlu0 %v933_v53  ;;  %v859_v56 = vpop.f32.mrb[24].mxu0  ;;  %v5300_v57 = vpop.f32.mrb[17].mxu1 }
 0x421   : > { %v917_v15 = vmul.f32 0.25, %v859_v56  ;;  %v5294_v58 = vpop.f32.mrb[25].mxu0  ;;  %v909_v59 = vpop.f32.mrb[18].mxu1 }
 0x422   : > { %v920_v63 = vmul.f32 0.25, %v909_v59  ;;  %937 = vmax.xlane.f32.xlu1 %v936_v62  ;;  %v862_v0 = vpop.f32.mrb[26].mxu0  ;;  %v5301_v45 = vpop.f32.mrb[19].mxu1  ;;  %v931_v1 = vsel %vm6361_vm5, %v919_v55, -1e+30 }
 0x423   : > { %v918_v2 = vmul.f32 0.25, %v862_v0  ;;  %v5295_v3 = vpop.f32.mrb[27].mxu0  ;;  %v951_v4 = vsel %vm724_vm4, %v931_v1, -inf  ;;  %v929_v8 = vsel %vm6361_vm5, %v917_v15, -1e+30 }
 0x424   : > { %952 = vmax.xlane.f32.xlu0 %v951_v4  ;;  %v932_v7 = vsel %vm6366_vm6, %v920_v63, -1e+30  ;;  %v945_v12 = vsel %vm724_vm4, %v929_v8, -inf }
 0x425   : > { %v954_v10 = vsel %vm724_vm4, %v932_v7, -inf  ;;  %v930_v14 = vsel %vm6366_vm6, %v918_v2, -1e+30 }
 0x426   : > { %955 = vmax.xlane.f32.xlu1 %v954_v10  ;;  %v948_v20 = vsel %vm724_vm4, %v930_v14, -inf }
 0x428   : > { %946 = vmax.xlane.f32.xlu0 %v945_v12 }
 0x42a   : > { %949 = vmax.xlane.f32.xlu1 %v948_v20 }
 0x4a9   : > { %v941_v26 = vpop.xlane.xlu0 %940 }
 0x4aa   : > { %v959_v27 = vsub.f32 %v927_v43, %v941_v26 }
 0x4ab   : > { %v944_v29 = vpop.xlane.xlu1 %943 }
 0x4ac   : > { %v969_v31 = vmul.f32 1.442695, %v959_v27  ;;  %v960_v54 = vsub.f32 %v928_v49, %v944_v29 }
 0x4ad   : > { %v935_v32 = vpop.xlane.xlu0 %934 }
 0x4ae   : > { %5782 = vpow2.f32 %v969_v31  ;;  %v971_v34 = vmul.f32 1.442695, %v960_v54  ;;  %v957_v35 = vsub.f32 %v925_v50, %v935_v32 }
 0x4af   : > { %v938_v38 = vpop.xlane.xlu1 %937 }
 0x4b0   : > { %5784 = vpow2.f32 %v971_v34  ;;  %v965_v39 = vmul.f32 1.442695, %v957_v35  ;;  %v958_v61 = vsub.f32 %v926_v6, %v938_v38  ;;  %v1284_v38 = vld [vmem:[#allocation2 + $0xd8] sm:$0xff] }
 0x4b1   : > { %v953_v44 = vpop.xlane.xlu0 %952 }
 0x4b2   : > { %5786 = vpow2.f32 %v965_v39  ;;  %v967_v60 = vmul.f32 1.442695, %v958_v61  ;;  %v963_v46 = vsub.f32 %v931_v1, %v953_v44  ;;  %v1285_v39 = vld [vmem:[#allocation2 + $0xe0] sm:$0xff] }
 0x4b3   : > { %v956_v5 = vpop.xlane.xlu1 %955 }
 0x4b4   : > { %5788 = vpow2.f32 %v967_v60  ;;  %v977_v52 = vmul.f32 1.442695, %v963_v46  ;;  %v964_v53 = vsub.f32 %v932_v7, %v956_v5 }
 0x4b5   : > { %v947_v43 = vpop.xlane.xlu0 %946 }
 0x4b6   : > { %5790 = vpow2.f32 %v977_v52  ;;  %v979_v55 = vmul.f32 1.442695, %v964_v53  ;;  %v961_v49 = vsub.f32 %v929_v8, %v947_v43  ;;  %v1288_v52 = vpack.c.bf16 %v1285_v39, %v1284_v38  ;;  %v1208_v43 = vld [vmem:[#allocation2 + $0xb8] sm:$0xff] }
 0x4b7   : > { %v950_v56 = vpop.xlane.xlu1 %949 }
 0x4b8   : > { %v5783_v57 = vpop.eup %5782  ;;  %5792 = vpow2.f32 %v979_v55  ;;  %v973_v50 = vmul.f32 1.442695, %v961_v49  ;;  %v962_v15 = vsub.f32 %v930_v14, %v950_v56  ;;  %v1209_v55 = vld [vmem:[#allocation2 + $0xc0] sm:$0xff] }
 0x4b9   : > { %v987_v58 = vsel %vm724_vm4, %v5783_v57, 0.0 }
 0x4ba   : > { %v5785_v6 = vpop.eup %5784  ;;  %5794 = vpow2.f32 %v973_v50  ;;  %v975_v59 = vmul.f32 1.442695, %v962_v15  ;;  %988 = vadd.xlane.f32.xlu0 %v987_v58  ;;  %v1212_v15 = vpack.c.bf16 %v1209_v55, %v1208_v43 }
 0x4bb   : > { %v990_v62 = vsel %vm724_vm4, %v5785_v6, 0.0 }
 0x4bc   : > { %v5787_v63 = vpop.eup %5786  ;;  %5796 = vpow2.f32 %v975_v59  ;;  %991 = vadd.xlane.f32.xlu1 %v990_v62  ;;  %v1287_v59 = vld [vmem:[#allocation2 + $0xf0] sm:$0xff] }
 0x4bd   : > { %v981_v0 = vsel %vm724_vm4, %v5787_v63, 0.0 }
 0x4be   : > { %v5789_v45 = vpop.eup %5788  ;;  %982 = vadd.xlane.f32.xlu0 %v981_v0 }
 0x4bf   : > { %v984_v1 = vsel %vm724_vm4, %v5789_v45, 0.0 }
 0x4c0   : > { %v5791_v2 = vpop.eup %5790  ;;  %985 = vadd.xlane.f32.xlu1 %v984_v1  ;;  %v1211_v1 = vld [vmem:[#allocation2 + $0xd0] sm:$0xff] }
 0x4c1   : > { %v999_v3 = vsel %vm724_vm4, %v5791_v2, 0.0 }
 0x4c2   : > { %v5793_v4 = vpop.eup %5792  ;;  %1000 = vadd.xlane.f32.xlu0 %v999_v3 }
 0x4c3   : > { %v1002_v7 = vsel %vm724_vm4, %v5793_v4, 0.0 }
 0x4c4   : > { %v5795_v8 = vpop.eup %5794  ;;  %1003 = vadd.xlane.f32.xlu1 %v1002_v7 }
 0x4c5   : > { %v993_v10 = vsel %vm724_vm4, %v5795_v8, 0.0 }
 0x4c6   : > { %v5797_v14 = vpop.eup %5796  ;;  %994 = vadd.xlane.f32.xlu0 %v993_v10  ;;  %v1363_v10 = vld [vmem:[#allocation2 + $0x110] sm:$0xff] }
 0x4c7   : > { %v996_v12 = vsel %vm724_vm4, %v5797_v14, 0.0 }
 0x4c8   : > { %997 = vadd.xlane.f32.xlu1 %v996_v12 }
 0x547   : > { %v989_v20 = vpop.xlane.xlu0 %988 }
 0x548   : > { %5798 = vrcp.f32 %v989_v20 }
 0x549   : > { %v992_v26 = vpop.xlane.xlu1 %991 }
 0x54a   : > { %5800 = vrcp.f32 %v992_v26 }
 0x54b   : > { %v983_v27 = vpop.xlane.xlu0 %982 }
 0x54c   : > { %5802 = vrcp.f32 %v983_v27 }
 0x54d   : > { %v986_v29 = vpop.xlane.xlu1 %985 }
 0x54e   : > { %5804 = vrcp.f32 %v986_v29 }
 0x54f   : > { %v1001_v31 = vpop.xlane.xlu0 %1000 }
 0x550   : > { %5806 = vrcp.f32 %v1001_v31 }
 0x551   : > { %v1004_v54 = vpop.xlane.xlu1 %1003 }
 0x552   : > { %v5799_v32 = vpop.eup %5798  ;;  %5808 = vrcp.f32 %v1004_v54 }
 0x553   : > { %v995_v34 = vpop.xlane.xlu0 %994  ;;  %v1015_v61 = vmul.f32 %v5799_v32, %v5783_v57 }
 0x554   : > { %v5801_v35 = vpop.eup %5800  ;;  %5810 = vrcp.f32 %v995_v34 }
 0x555   : > { %v1016_v44 = vmul.f32 %v5801_v35, %v5785_v6  ;;  %v998_v60 = vpop.xlane.xlu1 %997  ;;  %v1286_v6 = vld [vmem:[#allocation2 + $0xe8] sm:$0xff] }
 0x556   : > { %v5803_v46 = vpop.eup %5802  ;;  %5812 = vrcp.f32 %v998_v60  ;;  %v1289_v11 = vpack.c.bf16 %v1287_v59, %v1286_v6 }
 0x557   : > { %v1022_v5 = vpack.c.bf16 %v1016_v44, %v1015_v61  ;;  %v1013_v49 = vmul.f32 %v5803_v46, %v5787_v63 }
 0x558   : > { %v5805_v53 = vpop.eup %5804 }
 0x559   : > { %v1014_v56 = vmul.f32 %v5805_v53, %v5789_v45  ;;  %5311 = vmatmul.mubr.msk.bf16.vlgmr.msra.gmra.mrb[20].mxu1 %vm724_vm4, %v1022_v5  ;;  %v1210_v45 = vld [vmem:[#allocation2 + $0xc8] sm:$0xff] }
 0x55a   : > { %v5807_v50 = vpop.eup %5806  ;;  %5321 = vmatpush3.bf16.msra.mxu1 %v723_v18  ;;  %5322 = vmatprep.mubr.msk.bf16.mxu1 %vm6074_vm3, %v6073_v42  ;;  %v1213_v13 = vpack.c.bf16 %v1211_v1, %v1210_v45 }
 0x55b   : > { %v1021_v57 = vpack.c.bf16 %v1014_v56, %v1013_v49  ;;  %5338 = vmatprep.subr.bf16.mxu1 %v1288_v52  ;;  %v1019_v62 = vmul.f32 %v5807_v50, %v5791_v2 }
 0x55c   : > { %v5809_v58 = vpop.eup %5808 }
 0x55d   : > { %v1020_v0 = vmul.f32 %v5809_v58, %v5793_v4  ;;  %5305 = vmatmul.mubr.msk.bf16.vlgmr.msra.gmra.mrb[28].mxu0 %vm724_vm4, %v1021_v57  ;;  %v4914_v57 = vld [vmem:[#allocation2 + $0x118] ss:$0 sm:$0xff] }
 0x55e   : > { %v5811_v63 = vpop.eup %5810  ;;  %5315 = vmatpush3.bf16.msra.mxu0 %v722_v19  ;;  %5316 = vmatprep.mubr.msk.bf16.mxu0 %vm6074_vm3, %v6073_v42  ;;  %v1361_v19 = vld [vmem:[#allocation2 + $0x100] sm:$0xff] }
 0x55f   : > { %v1024_v9 = vpack.c.bf16 %v1020_v0, %v1019_v62  ;;  %5326 = vmatprep.subr.bf16.mxu0 %v1212_v15  ;;  %v1017_v3 = vmul.f32 %v5811_v63, %v5795_v8  ;;  %v1364_v4 = vpack.c.bf16 %v1361_v19, %v1360_v17  ;;  %v1362_v8 = vld [vmem:[#allocation2 + $0x108] sm:$0xff] }
 0x560   : > { %v5813_v18 = vpop.eup %5812 }
 0x561   : > { %v1018_v7 = vmul.f32 %v5813_v18, %v5797_v14  ;;  %5323 = vmatmul.mubr.msk.bf16.vlgmr.msra.gmra.mrb[24].mxu1 %vm724_vm4, %v1024_v9  ;;  %v1365_v14 = vpack.c.bf16 %v1363_v10, %v1362_v8 }
 0x562   : > { %5339 = vmatpush3.bf16.msra.mxu1 %v1288_v52  ;;  %5342 = vmatprep.mubr.msk.bf16.mxu1 %vm338_vm2, %v6277_v37  ;;  %v4919_v52 = vld [vmem:[#allocation2 + $0x120] ss:$0 sm:$0xff] }
 0x563   : > { %v1023_v2 = vpack.c.bf16 %v1018_v7, %v1017_v3  ;;  %5340 = vmatprep.subr.bf16.mxu1 %v1289_v11 }
 0x565   : > { %5317 = vmatmul.mubr.msk.bf16.vlgmr.msra.gmra.mrb[32].mxu0 %vm724_vm4, %v1023_v2 }
 0x566   : > { %5327 = vmatpush3.bf16.msra.mxu0 %v1212_v15  ;;  %5330 = vmatprep.mubr.msk.bf16.mxu0 %vm338_vm2, %v6277_v37 }
 0x567   : > { %5341 = vmatpush3.bf16.msra.mxu1 %v1289_v11  ;;  %5328 = vmatprep.subr.bf16.mxu0 %v1213_v13 }
 0x568   : > { %5362 = vmatprep.subr.bf16.mxu1 %v6073_v42 }
 0x56a   : > { %5343 = vmatmul.mubr.msk.bf16.vlgmr.msra.gmra.mrb[28].mxu1 %vm338_vm2, %v6283_v51  ;;  %5329 = vmatpush3.bf16.msra.mxu0 %v1213_v13 }
 0x56b   : > { %5346 = vmatprep.mubr.msk.bf16.mxu1 %vm338_vm2, %v6291_v16  ;;  %5350 = vmatprep.subr.bf16.mxu0 %v1364_v4 }
 0x56d   : > { %5331 = vmatmul.mubr.msk.bf16.vlgmr.msra.gmra.mrb[36].mxu0 %vm338_vm2, %v6283_v51 }
 0x56e   : > { %5334 = vmatprep.mubr.msk.bf16.mxu0 %vm338_vm2, %v6291_v16  ;;  %5351 = vmatpush3.bf16.msra.mxu0 %v1364_v4 }
 0x56f   : > { %5352 = vmatprep.subr.bf16.mxu0 %v1365_v14 }
 0x572   : > { %5347 = vmatmul.mubr.msk.bf16.gmra.mrb[32].mxu1 %vm338_vm2, %v6295_v25  ;;  %5353 = vmatpush3.bf16.msra.mxu0 %v1365_v14 }
 0x573   : > { %5364 = vmatprep.mubr.msk.bf16.mxu1 %vm6074_vm3, %v6073_v42  ;;  %5374 = vmatprep.subr.bf16.mxu0 %v6073_v42 }
 0x575   : > { %5335 = vmatmul.mubr.msk.bf16.gmra.mrb[40].mxu0 %vm338_vm2, %v6295_v25 }
 0x576   : > { %5354 = vmatprep.mubr.msk.bf16.mxu0 %vm338_vm2, %v6277_v37 }
 0x57d   : > { %5355 = vmatmul.mubr.msk.bf16.vlgmr.msra.gmra.mrb[44].mxu0 %vm338_vm2, %v6283_v51 }
 0x57e   : > { %5358 = vmatprep.mubr.msk.bf16.mxu0 %vm338_vm2, %v6291_v16 }
 0x585   : > { %5359 = vmatmul.mubr.msk.bf16.gmra.mrb[48].mxu0 %vm338_vm2, %v6295_v25 }
 0x586   : > { %5376 = vmatprep.mubr.msk.bf16.mxu0 %vm6074_vm3, %v6073_v42 }
 0x62c   : > { %v6446_v12 = vpop.f32.mrb[20].mxu1 }
 0x62d   : > { %v5312_v20 = vpop.f32.mrb[21].mxu1 }
 0x62e   : > { %v6448_v26 = vpop.f32.mrb[22].mxu1 }
 0x62f   : > { %v1202_v37 = vpack.c.bf16 %v6448_v26, %v6446_v12  ;;  %v5313_v27 = vpop.f32.mrb[23].mxu1 }
 0x630   : > { %v6452_v29 = vpop.f32.mrb[28].mxu0 }
 0x631   : > { %v5306_v51 = vpop.f32.mrb[29].mxu0 }
 0x632   : > { %v6454_v31 = vpop.f32.mrb[30].mxu0 }
 0x633   : > { %v1201_v16 = vpack.c.bf16 %v6454_v31, %v6452_v29  ;;  %v5307_v25 = vpop.f32.mrb[31].mxu0 }
 0x634   : > { %v6458_v54 = vpop.f32.mrb[24].mxu1 }
 0x635   : > { %v5324_v32 = vpop.f32.mrb[25].mxu1 }
 0x636   : > { %v6460_v34 = vpop.f32.mrb[26].mxu1 }
 0x637   : > { %v1204_v35 = vpack.c.bf16 %v6460_v34, %v6458_v54  ;;  %v5325_v38 = vpop.f32.mrb[27].mxu1 }
 0x638   : > { %v6464_v39 = vpop.f32.mrb[32].mxu0 }
 0x639   : > { %v5318_v61 = vpop.f32.mrb[33].mxu0 }
 0x63a   : > { %v6466_v44 = vpop.f32.mrb[34].mxu0 }
 0x63b   : > { %v1203_v60 = vpack.c.bf16 %v6466_v44, %v6464_v39  ;;  %v5319_v46 = vpop.f32.mrb[35].mxu0 }
 0x63d   : > { %v5344_v5 = vpop.f32.mrb[28].mxu1 }
 0x63e   : > { %v1329_v53 = vpop.f32.mrb[29].mxu1  ;;  %v1338_v55 = vadd.f32 %v5344_v5, %v4919_v52 }
 0x63f   : > { %v5345_v43 = vpop.f32.mrb[30].mxu1  ;;  %v1330_v15 = vadd.f32 %v4919_v52, %v1329_v53 }
 0x640   : > { %v1341_v49 = vadd.f32 %v5345_v43, %v4919_v52  ;;  %v1332_v56 = vpop.f32.mrb[31].mxu1  ;;  %v5332_v50 = vpop.f32.mrb[36].mxu0 }
 0x641   : > { %v1333_v58 = vadd.f32 %v4919_v52, %v1332_v56  ;;  %v1253_v6 = vpop.f32.mrb[37].mxu0  ;;  %v1262_v63 = vadd.f32 %v5332_v50, %v4914_v57  ;;  %v4924_v50 = vld [vmem:[#allocation2 + $0x128] ss:$0 sm:$0xff] }
 0x642   : > { %v1441_v59 = vpack.c.bf16 %v1341_v49, %v1338_v55  ;;  %v5333_v62 = vpop.f32.mrb[38].mxu0  ;;  %v1254_v18 = vadd.f32 %v4914_v57, %v1253_v6 }
 0x643   : > { %v1440_v0 = vpack.c.bf16 %v1333_v58, %v1330_v15  ;;  %v1265_v9 = vadd.f32 %v5333_v62, %v4914_v57  ;;  %v1256_v11 = vpop.f32.mrb[39].mxu0 }
 0x644   : > { %v1257_v45 = vadd.f32 %v4914_v57, %v1256_v11  ;;  %v1499_v55 = vsel %vm724_vm4, %v1441_v59, 0 }
 0x645   : > { %v1437_v1 = vpack.c.bf16 %v1265_v9, %v1262_v63  ;;  %v5348_v3 = vpop.f32.mrb[32].mxu1  ;;  %v1452_v7 = vsel %vm724_vm4, %v1440_v0, 0 }
 0x646   : > { %v1436_v2 = vpack.c.bf16 %v1257_v45, %v1254_v18  ;;  %v1345_v13 = vpop.f32.mrb[33].mxu1  ;;  %5363 = vmatpush3.bf16.xpose.msra.mxu1 %v1452_v7  ;;  %v1354_v19 = vadd.f32 %v5348_v3, %v4919_v52 }
 0x647   : > { %v5349_v17 = vpop.f32.mrb[34].mxu1  ;;  %5368 = vmatprep.subr.bf16.mxu1 %v6073_v42  ;;  %v1346_v14 = vadd.f32 %v4919_v52, %v1345_v13 }
 0x648   : > { %v1357_v4 = vadd.f32 %v5349_v17, %v4919_v52  ;;  %v1348_v8 = vpop.f32.mrb[35].mxu1  ;;  %v5336_v10 = vpop.f32.mrb[40].mxu0 }
 0x649   : > { %v1349_v20 = vadd.f32 %v4919_v52, %v1348_v8  ;;  %v1269_v27 = vpop.f32.mrb[41].mxu0  ;;  %v1278_v38 = vadd.f32 %v5336_v10, %v4914_v57 }
 0x64a   : > { %v1443_v51 = vpack.c.bf16 %v1357_v4, %v1354_v19  ;;  %v5337_v25 = vpop.f32.mrb[42].mxu0  ;;  %v1270_v5 = vadd.f32 %v4914_v57, %v1269_v27 }
 0x64b   : > { %v1442_v32 = vpack.c.bf16 %v1349_v20, %v1346_v14  ;;  %v1281_v61 = vadd.f32 %v5337_v25, %v4914_v57  ;;  %v1272_v46 = vpop.f32.mrb[43].mxu0 }
 0x64c   : > { %v1273_v53 = vadd.f32 %v4914_v57, %v1272_v46  ;;  %v1593_v9 = vsel %vm724_vm4, %v1443_v51, 0 }
 0x64d   : > { %v1439_v43 = vpack.c.bf16 %v1281_v61, %v1278_v38  ;;  %5365 = vmatmul.mubr.msk.bf16.vlgmr.msra.gmra.mrb[36].mxu1 %vm724_vm4, %v1436_v2  ;;  %v1546_v49 = vsel %vm724_vm4, %v1442_v32, 0 }
 0x64e   : > { %v1438_v56 = vpack.c.bf16 %v1273_v53, %v1270_v5  ;;  %5369 = vmatpush3.bf16.xpose.msra.mxu1 %v1499_v55  ;;  %5375 = vmatpush3.bf16.xpose.msra.mxu0 %v1546_v49 }
 0x64f   : > { %5370 = vmatprep.mubr.msk.bf16.mxu1 %vm6074_vm3, %v6073_v42  ;;  %5380 = vmatprep.subr.bf16.mxu1 %v6073_v42 }
 0x650   : > { %v5356_v52 = vpop.f32.mrb[44].mxu0  ;;  %5386 = vmatprep.subr.bf16.mxu0 %v6073_v42 }
 0x651   : > { %v1405_v57 = vpop.f32.mrb[45].mxu0  ;;  %v1414_v58 = vadd.f32 %v5356_v52, %v4924_v50 }
 0x652   : > { %v5357_v15 = vpop.f32.mrb[46].mxu0  ;;  %v1406_v59 = vadd.f32 %v4924_v50, %v1405_v57 }
 0x653   : > { %v1417_v6 = vadd.f32 %v5357_v15, %v4924_v50  ;;  %v1408_v62 = vpop.f32.mrb[47].mxu0 }
 0x654   : > { %v1409_v0 = vadd.f32 %v4924_v50, %v1408_v62 }
 0x655   : > { %v1445_v63 = vpack.c.bf16 %v1417_v6, %v1414_v58  ;;  %5371 = vmatmul.mubr.msk.bf16.vlgmr.msra.gmra.mrb[40].mxu1 %vm724_vm4, %v1437_v1  ;;  %5377 = vmatmul.mubr.msk.bf16.vlgmr.msra.gmra.mrb[52].mxu0 %vm724_vm4, %v1438_v56 }
 0x656   : > { %v1444_v11 = vpack.c.bf16 %v1409_v0, %v1406_v59  ;;  %5381 = vmatpush3.bf16.xpose.msra.mxu1 %v1593_v9  ;;  %5382 = vmatprep.mubr.msk.bf16.mxu1 %vm6074_vm3, %v6073_v42 }
 0x657   : > { %5392 = vmatprep.subr.bf16.mxu1 %v6073_v42  ;;  %5388 = vmatprep.mubr.msk.bf16.mxu0 %vm6074_vm3, %v6073_v42 }
 0x658   : > { %v5360_v18 = vpop.f32.mrb[48].mxu0  ;;  %5387 = vmatpush3.bf16.msra.mxu0 %v1444_v11 }
 0x659   : > { %v6487_v45 = vadd.f32 %v5360_v18, %v4924_v50  ;;  %v1421_v3 = vpop.f32.mrb[49].mxu0  ;;  %5398 = vmatprep.subr.bf16.mxu0 %v6073_v42 }
 0x65a   : > { %v6490_v1 = vadd.f32 %v4924_v50, %v1421_v3  ;;  %v5361_v7 = vpop.f32.mrb[50].mxu0 }
 0x65b   : > { %v6492_v2 = vadd.f32 %v5361_v7, %v4924_v50  ;;  %v1424_v13 = vpop.f32.mrb[51].mxu0 }
 0x65c   : > { %v6494_v17 = vadd.f32 %v4924_v50, %v1424_v13 }
 0x65d   : > { %v1447_v19 = vpack.c.bf16 %v6492_v2, %v6487_v45  ;;  %5383 = vmatmul.mubr.msk.bf16.vlgmr.msra.gmra.mrb[44].mxu1 %vm724_vm4, %v1439_v43  ;;  %v1206_v45 = vld [vmem:[#allocation2 + $0xb0] sm:$0xff] }
 0x65e   : > { %v1446_v4 = vpack.c.bf16 %v6494_v17, %v6490_v1  ;;  %5393 = vmatpush3.bf16.msra.mxu1 %v1445_v63  ;;  %5394 = vmatprep.mubr.msk.bf16.mxu1 %vm6074_vm3, %v6073_v42 }
 0x65f   : > { %5404 = vmatprep.subr.bf16.mxu1 %v6073_v42 }
 0x720   : > { %v1488_v8 = vpop.f32.mrb[36].mxu1 }
 0x721   : > { %v1636_v10 = vmul.f32 0.25, %v1488_v8  ;;  %v5366_v14 = vpop.f32.mrb[37].mxu1 }
 0x722   : > { %v1491_v20 = vpop.f32.mrb[38].mxu1 }
 0x723   : > { %v1637_v27 = vmul.f32 0.25, %v1491_v20  ;;  %v5367_v51 = vpop.f32.mrb[39].mxu1  ;;  %v1644_v25 = vsel %vm6361_vm5, %v1636_v10, -1e+30 }
 0x724   : > { %v1652_v32 = vsel %vm724_vm4, %v1644_v25, -inf }
 0x725   : > { %1653 = vmax.xlane.f32.xlu0 %v1652_v32  ;;  %v1645_v38 = vsel %vm6366_vm6, %v1637_v27, -1e+30 }
 0x726   : > { %v1655_v61 = vsel %vm724_vm4, %v1645_v38, -inf }
 0x727   : > { %1656 = vmax.xlane.f32.xlu1 %v1655_v61 }
 0x728   : > { %v1535_v46 = vpop.f32.mrb[40].mxu1  ;;  %v1582_v5 = vpop.f32.mrb[52].mxu0 }
 0x729   : > { %v1638_v53 = vmul.f32 0.25, %v1535_v46  ;;  %v1640_v43 = vmul.f32 0.25, %v1582_v5  ;;  %v5372_v55 = vpop.f32.mrb[41].mxu1  ;;  %v5378_v49 = vpop.f32.mrb[53].mxu0 }
 0x72a   : > { %v1538_v56 = vpop.f32.mrb[42].mxu1  ;;  %v1585_v52 = vpop.f32.mrb[54].mxu0 }
 0x72b   : > { %v1639_v50 = vmul.f32 0.25, %v1538_v56  ;;  %v1641_v57 = vmul.f32 0.25, %v1585_v52  ;;  %v5373_v15 = vpop.f32.mrb[43].mxu1  ;;  %v5379_v58 = vpop.f32.mrb[55].mxu0  ;;  %v1646_v6 = vsel %vm6361_vm5, %v1638_v53, -1e+30 }
 0x72c   : > { %v1658_v62 = vsel %vm724_vm4, %v1646_v6, -inf  ;;  %v1648_v0 = vsel %vm6361_vm5, %v1640_v43, -1e+30 }
 0x72d   : > { %1659 = vmax.xlane.f32.xlu0 %v1658_v62  ;;  %v1647_v59 = vsel %vm6366_vm6, %v1639_v50, -1e+30  ;;  %v1649_v9 = vsel %vm6366_vm6, %v1641_v57, -1e+30  ;;  %v1664_v18 = vsel %vm724_vm4, %v1648_v0, -inf }
 0x72e   : > { %v1661_v63 = vsel %vm724_vm4, %v1647_v59, -inf  ;;  %v1667_v8 = vsel %vm724_vm4, %v1649_v9, -inf }
 0x72f   : > { %1662 = vmax.xlane.f32.xlu1 %v1661_v63 }
 0x730   : > { %v1629_v11 = vpop.f32.mrb[44].mxu1 }
 0x731   : > { %v1642_v3 = vmul.f32 0.25, %v1629_v11  ;;  %1665 = vmax.xlane.f32.xlu0 %v1664_v18  ;;  %v5384_v7 = vpop.f32.mrb[45].mxu1 }
 0x732   : > { %v1632_v13 = vpop.f32.mrb[46].mxu1 }
 0x733   : > { %v1643_v10 = vmul.f32 0.25, %v1632_v13  ;;  %1668 = vmax.xlane.f32.xlu1 %v1667_v8  ;;  %v5385_v14 = vpop.f32.mrb[47].mxu1  ;;  %v1650_v20 = vsel %vm6361_vm5, %v1642_v3, -1e+30 }
 0x734   : > { %v1670_v27 = vsel %vm724_vm4, %v1650_v20, -inf }
 0x735   : > { %1671 = vmax.xlane.f32.xlu0 %v1670_v27  ;;  %v1651_v51 = vsel %vm6366_vm6, %v1643_v10, -1e+30 }
 0x736   : > { %v1673_v32 = vsel %vm724_vm4, %v1651_v51, -inf }
 0x737   : > { %1674 = vmax.xlane.f32.xlu1 %v1673_v32 }
 0x7b2   : > { %v1654_v61 = vpop.xlane.xlu0 %1653 }
 0x7b3   : > { %v1676_v46 = vsub.f32 %v1644_v25, %v1654_v61 }
 0x7b4   : > { %v1657_v5 = vpop.xlane.xlu1 %1656 }
 0x7b5   : > { %v1684_v53 = vmul.f32 1.442695, %v1676_v46  ;;  %v1677_v43 = vsub.f32 %v1645_v38, %v1657_v5 }
 0x7b7   : > { %5814 = vpow2.f32 %v1684_v53  ;;  %v1686_v55 = vmul.f32 1.442695, %v1677_v43 }
 0x7b9   : > { %5816 = vpow2.f32 %v1686_v55 }
 0x7ba   : > { %v1660_v49 = vpop.xlane.xlu0 %1659 }
 0x7bb   : > { %v1678_v56 = vsub.f32 %v1646_v6, %v1660_v49 }
 0x7bc   : > { %v1663_v52 = vpop.xlane.xlu1 %1662 }
 0x7bd   : > { %v1688_v50 = vmul.f32 1.442695, %v1678_v56  ;;  %v1679_v57 = vsub.f32 %v1647_v59, %v1663_v52 }
 0x7be   : > { %v1666_v15 = vpop.xlane.xlu0 %1665 }
 0x7bf   : > { %5818 = vpow2.f32 %v1688_v50  ;;  %v1690_v58 = vmul.f32 1.442695, %v1679_v57  ;;  %v1680_v62 = vsub.f32 %v1648_v0, %v1666_v15 }
 0x7c0   : > { %v1669_v63 = vpop.xlane.xlu1 %1668 }
 0x7c1   : > { %v5815_v11 = vpop.eup %5814  ;;  %5820 = vpow2.f32 %v1690_v58  ;;  %v1692_v18 = vmul.f32 1.442695, %v1680_v62  ;;  %v1681_v25 = vsub.f32 %v1649_v9, %v1669_v63 }
 0x7c2   : > { %v1672_v3 = vpop.xlane.xlu0 %1671  ;;  %v1700_v38 = vsel %vm724_vm4, %v5815_v11, 0.0 }
 0x7c3   : > { %v5817_v7 = vpop.eup %5816  ;;  %5822 = vpow2.f32 %v1692_v18  ;;  %v1694_v13 = vmul.f32 1.442695, %v1681_v25  ;;  %v1682_v8 = vsub.f32 %v1650_v20, %v1672_v3  ;;  %1701 = vadd.xlane.f32.xlu0 %v1700_v38 }
 0x7c4   : > { %v1675_v6 = vpop.xlane.xlu1 %1674  ;;  %v1703_v59 = vsel %vm724_vm4, %v5817_v7, 0.0 }
 0x7c5   : > { %5824 = vpow2.f32 %v1694_v13  ;;  %v1696_v10 = vmul.f32 1.442695, %v1682_v8  ;;  %v1683_v14 = vsub.f32 %v1651_v51, %v1675_v6  ;;  %1704 = vadd.xlane.f32.xlu1 %v1703_v59 }
 0x7c7   : > { %5826 = vpow2.f32 %v1696_v10  ;;  %v1698_v0 = vmul.f32 1.442695, %v1683_v14 }
 0x7c9   : > { %v5819_v27 = vpop.eup %5818  ;;  %5828 = vpow2.f32 %v1698_v0 }
 0x7ca   : > { %v1706_v9 = vsel %vm724_vm4, %v5819_v27, 0.0 }
 0x7cb   : > { %v5821_v32 = vpop.eup %5820  ;;  %1707 = vadd.xlane.f32.xlu0 %v1706_v9 }
 0x7cc   : > { %v1709_v61 = vsel %vm724_vm4, %v5821_v32, 0.0 }
 0x7cd   : > { %v5823_v46 = vpop.eup %5822  ;;  %1710 = vadd.xlane.f32.xlu1 %v1709_v61 }
 0x7ce   : > { %v1712_v20 = vsel %vm724_vm4, %v5823_v46, 0.0 }
 0x7cf   : > { %v5825_v5 = vpop.eup %5824  ;;  %1713 = vadd.xlane.f32.xlu0 %v1712_v20  ;;  %v1925_v20 = vld [vmem:[#allocation2 + $0x138] sm:$0xff] }
 0x7d0   : > { %v1715_v53 = vsel %vm724_vm4, %v5825_v5, 0.0 }
 0x7d1   : > { %v5827_v51 = vpop.eup %5826  ;;  %1716 = vadd.xlane.f32.xlu1 %v1715_v53  ;;  %v1205_v53 = vld [vmem:[#allocation2 + $0xa8] sm:$0xff] }
 0x7d2   : > { %v1718_v43 = vsel %vm724_vm4, %v5827_v51, 0.0  ;;  %v1207_v2 = vpack.c.bf16 %v1206_v45, %v1205_v53 }
 0x7d3   : > { %v5829_v55 = vpop.eup %5828  ;;  %1719 = vadd.xlane.f32.xlu0 %v1718_v43 }
 0x7d4   : > { %v1721_v49 = vsel %vm724_vm4, %v5829_v55, 0.0 }
 0x7d5   : > { %1722 = vadd.xlane.f32.xlu1 %v1721_v49 }
 0x850   : > { %v1702_v56 = vpop.xlane.xlu0 %1701 }
 0x851   : > { %5830 = vrcp.f32 %v1702_v56 }
 0x852   : > { %v1705_v52 = vpop.xlane.xlu1 %1704 }
 0x853   : > { %5832 = vrcp.f32 %v1705_v52 }
 0x858   : > { %v1708_v50 = vpop.xlane.xlu0 %1707 }
 0x859   : > { %5834 = vrcp.f32 %v1708_v50 }
 0x85a   : > { %v1711_v57 = vpop.xlane.xlu1 %1710 }
 0x85b   : > { %v5831_v15 = vpop.eup %5830  ;;  %5836 = vrcp.f32 %v1711_v57 }
 0x85c   : > { %v1714_v58 = vpop.xlane.xlu0 %1713  ;;  %v1732_v63 = vmul.f32 %v5831_v15, %v5815_v11 }
 0x85d   : > { %v5833_v62 = vpop.eup %5832  ;;  %5838 = vrcp.f32 %v1714_v58 }
 0x85e   : > { %v1733_v18 = vmul.f32 %v5833_v62, %v5817_v7  ;;  %v1717_v25 = vpop.xlane.xlu1 %1716 }
 0x85f   : > { %5840 = vrcp.f32 %v1717_v25 }
 0x860   : > { %v1720_v3 = vpop.xlane.xlu0 %1719  ;;  %v1740_v38 = vpack.c.bf16 %v1733_v18, %v1732_v63 }
 0x861   : > { %5842 = vrcp.f32 %v1720_v3 }
 0x862   : > { %5389 = vmatmul.mubr.msk.bf16.vlgmr.msra.gmra.mrb[56].mxu0 %vm724_vm4, %v1740_v38  ;;  %v1723_v13 = vpop.xlane.xlu1 %1722 }
 0x863   : > { %v5835_v8 = vpop.eup %5834  ;;  %5399 = vmatpush3.bf16.msra.mxu0 %v1446_v4  ;;  %5844 = vrcp.f32 %v1723_v13  ;;  %5400 = vmatprep.mubr.msk.bf16.mxu0 %vm6074_vm3, %v6073_v42 }
 0x864   : > { %v1734_v11 = vmul.f32 %v5835_v8, %v5819_v27 }
 0x865   : > { %v5837_v6 = vpop.eup %5836 }
 0x866   : > { %v1735_v7 = vmul.f32 %v5837_v6, %v5821_v32 }
 0x867   : > { %v5839_v59 = vpop.eup %5838 }
 0x868   : > { %v1741_v10 = vpack.c.bf16 %v1735_v7, %v1734_v11  ;;  %v1736_v0 = vmul.f32 %v5839_v59, %v5823_v46  ;;  %v1924_v46 = vld [vmem:[#allocation2 + $0x130] sm:$0xff]  ;;  %v4945_v7 = vld [vmem:[#allocation2 + $0x140] ss:$0 sm:$0xff] }
 0x869   : > { %v5841_v14 = vpop.eup %5840 }
 0x86a   : > { %v1737_v9 = vmul.f32 %v5841_v14, %v5825_v5  ;;  %5395 = vmatmul.mubr.msk.bf16.vlgmr.msra.gmra.mrb[48].mxu1 %vm724_vm4, %v1741_v10  ;;  %v1926_v5 = vpack.c.bf16 %v1925_v20, %v1924_v46 }
 0x86b   : > { %v5843_v61 = vpop.eup %5842  ;;  %5405 = vmatpush3.bf16.msra.mxu1 %v1447_v19  ;;  %5406 = vmatprep.mubr.msk.bf16.mxu1 %vm6074_vm3, %v6073_v42 }
 0x86c   : > { %v1742_v1 = vpack.c.bf16 %v1737_v9, %v1736_v0  ;;  %v1738_v4 = vmul.f32 %v5843_v61, %v5827_v51  ;;  %5410 = vmatprep.subr.bf16.mxu0 %v1926_v5 }
 0x86d   : > { %v5845_v17 = vpop.eup %5844 }
 0x86e   : > { %v1739_v27 = vmul.f32 %v5845_v17, %v5829_v55  ;;  %5401 = vmatmul.mubr.msk.bf16.vlgmr.msra.gmra.mrb[60].mxu0 %vm724_vm4, %v1742_v1 }
 0x86f   : > { %5411 = vmatpush3.bf16.msra.mxu0 %v1926_v5 }
 0x870   : > { %v1743_v32 = vpack.c.bf16 %v1739_v27, %v1738_v4  ;;  %5420 = vmatprep.subr.bf16.mxu0 %v1207_v2 }
 0x872   : > { %5407 = vmatmul.mubr.msk.bf16.vlgmr.msra.gmra.mrb[52].mxu1 %vm724_vm4, %v1743_v32 }
 0x935   : > { %v1781_v19 = vpop.f32.mrb[56].mxu0 }
 0x936   : > { %v5390_v43 = vpop.f32.mrb[57].mxu0 }
 0x937   : > { %v1784_v49 = vpop.f32.mrb[58].mxu0 }
 0x938   : > { %v1920_v56 = vpack.c.bf16 %v1784_v49, %v1781_v19  ;;  %v5391_v51 = vpop.f32.mrb[59].mxu0 }
 0x93a   : > { %5412 = vmatprep.mubr.msk.bf16.mxu0 %vm724_vm4, %v1920_v56 }
 0x93d   : > { %v1825_v55 = vpop.f32.mrb[48].mxu1 }
 0x93e   : > { %v5396_v52 = vpop.f32.mrb[49].mxu1 }
 0x93f   : > { %v1828_v50 = vpop.f32.mrb[50].mxu1 }
 0x940   : > { %v1921_v57 = vpack.c.bf16 %v1828_v50, %v1825_v55  ;;  %v5397_v15 = vpop.f32.mrb[51].mxu1 }
 0x941   : > { %v1869_v58 = vpop.f32.mrb[60].mxu0 }
 0x942   : > { %v5402_v62 = vpop.f32.mrb[61].mxu0  ;;  %5413 = vmatmul.mubr.msk.bf16.vlgmr.msra.gmra.mrb[64].mxu0 %vm724_vm4, %v1921_v57 }
 0x943   : > { %v1872_v63 = vpop.f32.mrb[62].mxu0  ;;  %5421 = vmatpush3.bf16.msra.mxu0 %v1207_v2 }
 0x944   : > { %v1922_v18 = vpack.c.bf16 %v1872_v63, %v1869_v58  ;;  %v5403_v25 = vpop.f32.mrb[63].mxu0 }
 0x945   : > { %v1913_v3 = vpop.f32.mrb[52].mxu1 }
 0x946   : > { %v5408_v38 = vpop.f32.mrb[53].mxu1  ;;  %5416 = vmatprep.mubr.msk.bf16.mxu0 %vm724_vm4, %v1922_v18 }
 0x947   : > { %v1916_v13 = vpop.f32.mrb[54].mxu1 }
 0x948   : > { %v1923_v8 = vpack.c.bf16 %v1916_v13, %v1913_v3  ;;  %v5409_v6 = vpop.f32.mrb[55].mxu1 }
 0x94a   : > { %5417 = vmatmul.mubr.msk.bf16.gmra.mrb[68].mxu0 %vm724_vm4, %v1923_v8 }
 0x94b   : > { %5422 = vmatprep.mubr.msk.bf16.mxu0 %vm724_vm4, %v1201_v16 }
 0x952   : > { %5423 = vmatmul.mubr.msk.bf16.vlgmr.msra.gmra.mrb[64].mxu0 %vm724_vm4, %v1202_v37 }
 0x953   : > { %5426 = vmatprep.mubr.msk.bf16.mxu0 %vm724_vm4, %v1203_v60 }
 0x95a   : > { %5427 = vmatmul.mubr.msk.bf16.gmra.mrb[68].mxu0 %vm724_vm4, %v1204_v35 }
 0xa25   : > { %v5424_v11 = vpop.f32.mrb[64].mxu0 }
 0xa26   : > { %v2050_v29 = vpop.f32.mrb[65].mxu0  ;;  %v2083_v31 = vadd.f32 %v5424_v11, %v6192_v30 }
 0xa27   : > { %v2081_v16 = vadd.f32 %v2050_v29, %v6186_v21  ;;  %v5425_v12 = vpop.f32.mrb[66].mxu0 }
 0xa28   : > { %v2053_v26 = vpop.f32.mrb[67].mxu0  ;;  %v2084_v39 = vadd.f32 %v5425_v12, %v6194_v33  ;;  %v6576_v60 = vadd.f32 %v4945_v7, %v2083_v31 }
 0xa29   : > { %v6572_v37 = vadd.f32 %v4945_v7, %v2081_v16  ;;  %v2082_v44 = vadd.f32 %v2053_v26, %v6188_v23 }
 0xa2a   : > { %v6582_v35 = vadd.f32 %v4945_v7, %v2084_v39  ;;  %v2110_v14 = vsel %vm338_vm2, %v6576_v60, 0.0 }
 0xa2b   : > { %v6578_v54 = vadd.f32 %v4945_v7, %v2082_v44  ;;  %v2104_v34 = vsel %vm338_vm2, %v6572_v37, 0.0 }
 0xa2c   : > { %2105 = vadd.xlane.f32.xlu0 %v2104_v34  ;;  %v2113_v17 = vsel %vm338_vm2, %v6582_v35, 0.0 }
 0xa2d   : > { %v5428_v30 = vpop.f32.mrb[68].mxu0  ;;  %v2107_v21 = vsel %vm338_vm2, %v6578_v54, 0.0 }
 0xa2e   : > { %2108 = vadd.xlane.f32.xlu1 %v2107_v21  ;;  %v2066_v59 = vpop.f32.mrb[69].mxu0  ;;  %v2087_v33 = vadd.f32 %v5428_v30, %v6210_v48 }
 0xa2f   : > { %v2085_v23 = vadd.f32 %v2066_v59, %v6202_v41  ;;  %v5429_v10 = vpop.f32.mrb[70].mxu0 }
 0xa30   : > { %2111 = vadd.xlane.f32.xlu0 %v2110_v14  ;;  %v2069_v0 = vpop.f32.mrb[71].mxu0  ;;  %v2088_v61 = vadd.f32 %v5429_v10, %v6208_v47  ;;  %v6596_v4 = vadd.f32 %v4945_v7, %v2087_v33  ;;  %v2237_v10 = vld [vmem:[#allocation2 + $0x160] sm:$0xff] }
 0xa31   : > { %v6590_v9 = vadd.f32 %v4945_v7, %v2085_v23  ;;  %v2086_v1 = vadd.f32 %v2069_v0, %v6200_v40  ;;  %v2236_v23 = vld [vmem:[#allocation2 + $0x158] sm:$0xff]  ;;  %v2238_v0 = vld [vmem:[#allocation2 + $0x168] sm:$0xff] }
 0xa32   : > { %2114 = vadd.xlane.f32.xlu1 %v2113_v17  ;;  %v6602_v27 = vadd.f32 %v4945_v7, %v2088_v61  ;;  %v2122_v40 = vsel %vm338_vm2, %v6596_v4, 0.0  ;;  %v2240_v14 = vpack.c.bf16 %v2237_v10, %v2236_v23  ;;  %v2239_v61 = vld [vmem:[#allocation2 + $0x170] sm:$0xff]  ;;  %v2336_v17 = vld [vmem:[#allocation2 + $0x180] sm:$0xff] }
 0xa33   : > { %v6598_v48 = vadd.f32 %v4945_v7, %v2086_v1  ;;  %v2116_v41 = vsel %vm338_vm2, %v6590_v9, 0.0  ;;  %v2241_v1 = vpack.c.bf16 %v2239_v61, %v2238_v0 }
 0xa34   : > { %2117 = vadd.xlane.f32.xlu0 %v2116_v41  ;;  %v2125_v47 = vsel %vm338_vm2, %v6602_v27, 0.0  ;;  %5430 = vmatprep.subr.bf16.mxu1 %v2240_v14  ;;  %v2337_v41 = vld [vmem:[#allocation2 + $0x188] sm:$0xff] }
 0xa35   : > { %v2119_v32 = vsel %vm338_vm2, %v6598_v48, 0.0  ;;  %5431 = vmatpush3.bf16.msra.mxu1 %v2240_v14 }
 0xa36   : > { %2120 = vadd.xlane.f32.xlu1 %v2119_v32  ;;  %5432 = vmatprep.subr.bf16.mxu1 %v2241_v1  ;;  %v6658_v32 = vpack.c.bf16 %v2337_v41, %v2336_v17 }
 0xa38   : > { %2123 = vadd.xlane.f32.xlu0 %v2122_v40 }
 0xa39   : > { %5433 = vmatpush3.bf16.msra.mxu1 %v2241_v1 }
 0xa3a   : > { %2126 = vadd.xlane.f32.xlu1 %v2125_v47  ;;  %5442 = vmatprep.subr.bf16.mxu1 %v6658_v32 }
 0xab9   : > { %v2106_v46 = vpop.xlane.xlu0 %2105 }
 0xaba   : > { %v2128_v20 = vmul.f32 0.03125, %v2106_v46 }
 0xabb   : > { %v2109_v5 = vpop.xlane.xlu1 %2108 }
 0xabc   : > { %v6611_v53 = vsub.f32 %v6572_v37, %v2128_v20  ;;  %v2129_v45 = vmul.f32 0.03125, %v2109_v5 }
 0xabd   : > { %v2112_v2 = vpop.xlane.xlu0 %2111 }
 0xabe   : > { %v6614_v19 = vsub.f32 %v6578_v54, %v2129_v45  ;;  %v2130_v43 = vmul.f32 0.03125, %v2112_v2  ;;  %v2144_v49 = vmul.f32 %v6611_v53, %v6611_v53 }
 0xabf   : > { %v2115_v56 = vpop.xlane.xlu1 %2114 }
 0xac0   : > { %v6619_v51 = vsub.f32 %v6576_v60, %v2130_v43  ;;  %v2131_v55 = vmul.f32 0.03125, %v2115_v56  ;;  %v2152_v52 = vsel %vm338_vm2, %v2144_v49, 0.0  ;;  %v2145_v50 = vmul.f32 %v6614_v19, %v6614_v19 }
 0xac1   : > { %2153 = vadd.xlane.f32.xlu0 %v2152_v52  ;;  %v2118_v57 = vpop.xlane.xlu0 %2117 }
 0xac2   : > { %v6625_v15 = vsub.f32 %v6582_v35, %v2131_v55  ;;  %v2132_v58 = vmul.f32 0.03125, %v2118_v57  ;;  %v2155_v62 = vsel %vm338_vm2, %v2145_v50, 0.0  ;;  %v2146_v63 = vmul.f32 %v6619_v51, %v6619_v51 }
 0xac3   : > { %2156 = vadd.xlane.f32.xlu1 %v2155_v62  ;;  %v2121_v18 = vpop.xlane.xlu1 %2120 }
 0xac4   : > { %v6631_v25 = vsub.f32 %v6590_v9, %v2132_v58  ;;  %v2133_v3 = vmul.f32 0.03125, %v2121_v18  ;;  %v2158_v38 = vsel %vm338_vm2, %v2146_v63, 0.0  ;;  %v2147_v13 = vmul.f32 %v6625_v15, %v6625_v15 }
 0xac5   : > { %2159 = vadd.xlane.f32.xlu0 %v2158_v38  ;;  %v2124_v8 = vpop.xlane.xlu0 %2123 }
 0xac6   : > { %v6637_v6 = vsub.f32 %v6598_v48, %v2133_v3  ;;  %v2134_v11 = vmul.f32 0.03125, %v2124_v8  ;;  %v2161_v7 = vsel %vm338_vm2, %v2147_v13, 0.0  ;;  %v2148_v29 = vmul.f32 %v6631_v25, %v6631_v25 }
 0xac7   : > { %2162 = vadd.xlane.f32.xlu1 %v2161_v7  ;;  %v2127_v31 = vpop.xlane.xlu1 %2126 }
 0xac8   : > { %v6643_v16 = vsub.f32 %v6596_v4, %v2134_v11  ;;  %v2135_v12 = vmul.f32 0.03125, %v2127_v31  ;;  %v2164_v26 = vsel %vm338_vm2, %v2148_v29, 0.0  ;;  %v2149_v39 = vmul.f32 %v6637_v6, %v6637_v6  ;;  %v4946_v11 = vld [vmem:[#allocation2 + $0x148] ss:$0 sm:$0xff] }
 0xac9   : > { %2165 = vadd.xlane.f32.xlu0 %v2164_v26 }
 0xaca   : > { %v6649_v44 = vsub.f32 %v6602_v27, %v2135_v12  ;;  %v2167_v34 = vsel %vm338_vm2, %v2149_v39, 0.0  ;;  %v2150_v30 = vmul.f32 %v6643_v16, %v6643_v16 }
 0xacb   : > { %2168 = vadd.xlane.f32.xlu1 %v2167_v34 }
 0xacc   : > { %v2170_v21 = vsel %vm338_vm2, %v2150_v30, 0.0  ;;  %v2151_v59 = vmul.f32 %v6649_v44, %v6649_v44 }
 0xacd   : > { %2171 = vadd.xlane.f32.xlu0 %v2170_v21  ;;  %v4947_v21 = vld [vmem:[#allocation2 + $0x150] ss:$0 sm:$0xff] }
 0xace   : > { %v2173_v33 = vsel %vm338_vm2, %v2151_v59, 0.0 }
 0xacf   : > { %2174 = vadd.xlane.f32.xlu1 %v2173_v33 }
 0xb4e   : > { %v2154_v40 = vpop.xlane.xlu0 %2153 }
 0xb4f   : > { %v2176_v47 = vmul.f32 0.03125, %v2154_v40 }
 0xb50   : > { %v2157_v46 = vpop.xlane.xlu1 %2156 }
 0xb51   : > { %v2184_v20 = vadd.f32 1e-05, %v2176_v47  ;;  %v2177_v5 = vmul.f32 0.03125, %v2157_v46  ;;  %v2339_v47 = vld [vmem:[#allocation2 + $0x198] sm:$0xff] }
 0xb52   : > { %v2160_v45 = vpop.xlane.xlu0 %2159 }
 0xb53   : > { %5846 = vrsqrt.f32 %v2184_v20  ;;  %v2185_v2 = vadd.f32 1e-05, %v2177_v5  ;;  %v2178_v43 = vmul.f32 0.03125, %v2160_v45 }
 0xb54   : > { %v2163_v49 = vpop.xlane.xlu1 %2162 }
 0xb55   : > { %5848 = vrsqrt.f32 %v2185_v2  ;;  %v2186_v56 = vadd.f32 1e-05, %v2178_v43  ;;  %v2179_v55 = vmul.f32 0.03125, %v2163_v49 }
 0xb56   : > { %v2166_v52 = vpop.xlane.xlu0 %2165 }
 0xb57   : > { %5850 = vrsqrt.f32 %v2186_v56  ;;  %v2187_v50 = vadd.f32 1e-05, %v2179_v55  ;;  %v2180_v57 = vmul.f32 0.03125, %v2166_v52  ;;  %v2340_v55 = vld [vmem:[#allocation2 + $0x1a0] sm:$0xff] }
 0xb58   : > { %v2169_v58 = vpop.xlane.xlu1 %2168 }
 0xb59   : > { %5852 = vrsqrt.f32 %v2187_v50  ;;  %v2188_v62 = vadd.f32 1e-05, %v2180_v57  ;;  %v2181_v63 = vmul.f32 0.03125, %v2169_v58 }
 0xb5a   : > { %v2172_v18 = vpop.xlane.xlu0 %2171 }
 0xb5b   : > { %5854 = vrsqrt.f32 %v2188_v62  ;;  %v2189_v3 = vadd.f32 1e-05, %v2181_v63  ;;  %v2182_v38 = vmul.f32 0.03125, %v2172_v18  ;;  %v2343_v18 = vld [vmem:[#allocation2 + $0x1b8] sm:$0xff] }
 0xb5c   : > { %v2175_v13 = vpop.xlane.xlu1 %2174 }
 0xb5d   : > { %v5847_v8 = vpop.eup %5846  ;;  %5856 = vrsqrt.f32 %v2189_v3  ;;  %v2190_v7 = vadd.f32 1e-05, %v2182_v38  ;;  %v2183_v29 = vmul.f32 0.03125, %v2175_v13 }
 0xb5e   : > { %v2200_v31 = vmul.f32 %v5847_v8, %v6611_v53  ;;  %v2344_v8 = vld [vmem:[#allocation2 + $0x1c0] sm:$0xff] }
 0xb5f   : > { %v5849_v12 = vpop.eup %5848  ;;  %5858 = vrsqrt.f32 %v2190_v7  ;;  %v2191_v26 = vadd.f32 1e-05, %v2183_v29  ;;  %v2345_v7 = vld [vmem:[#allocation2 + $0x1c8] sm:$0xff]  ;;  %v2347_v29 = vld [vmem:[#allocation2 + $0x1d8] sm:$0xff] }
 0xb60   : > { %v2201_v39 = vmul.f32 %v5849_v12, %v6614_v19  ;;  %v2212_v34 = vmul.f32 %v4946_v11, %v2200_v31  ;;  %v2338_v19 = vld [vmem:[#allocation2 + $0x190] sm:$0xff]  ;;  %v2348_v12 = vld [vmem:[#allocation2 + $0x1e0] sm:$0xff] }
 0xb61   : > { %v5851_v30 = vpop.eup %5850  ;;  %5860 = vrsqrt.f32 %v2191_v26  ;;  %v2353_v49 = vpack.c.bf16 %v2339_v47, %v2338_v19  ;;  %v2349_v26 = vld [vmem:[#allocation2 + $0x1e8] sm:$0xff] }
 0xb62   : > { %v2202_v59 = vmul.f32 %v5851_v30, %v6619_v51  ;;  %v2213_v33 = vmul.f32 %v4946_v11, %v2201_v39  ;;  %v2224_v0 = vadd.f32 %v4947_v21, %v2212_v34  ;;  %v2358_v39 = vpack.c.bf16 %v2349_v26, %v2348_v12  ;;  %v2350_v34 = vld [vmem:[#allocation2 + $0x1f0] sm:$0xff]  ;;  %v2351_v30 = vld [vmem:[#allocation2 + $0x1f8] sm:$0xff] }
 0xb63   : > { %v5853_v23 = vpop.eup %5852 }
 0xb64   : > { %v2214_v10 = vmul.f32 %v4946_v11, %v2202_v59  ;;  %v2203_v14 = vmul.f32 %v5853_v23, %v6625_v15  ;;  %v2225_v61 = vadd.f32 %v4947_v21, %v2213_v33  ;;  %v4948_v59 = vld [vmem:[#allocation2 + $0x178] ss:$0 sm:$0xff] }
 0xb65   : > { %v5855_v1 = vpop.eup %5854 }
 0xb66   : > { %v2215_v53 = vmul.f32 %v4946_v11, %v2203_v14  ;;  %v2204_v17 = vmul.f32 %v5855_v1, %v6631_v25  ;;  %v2232_v41 = vpack.c.bf16 %v2225_v61, %v2224_v0  ;;  %v2226_v51 = vadd.f32 %v4947_v21, %v2214_v10  ;;  %v2341_v25 = vld [vmem:[#allocation2 + $0x1a8] sm:$0xff] }
 0xb67   : > { %v5857_v40 = vpop.eup %5856  ;;  %v2354_v63 = vpack.c.bf16 %v2341_v25, %v2340_v55 }
 0xb68   : > { %v2205_v46 = vmul.f32 %v5857_v40, %v6637_v6  ;;  %5434 = vmatprep.mubr.msk.bf16.mxu1 %vm338_vm2, %v2232_v41  ;;  %v2227_v20 = vadd.f32 %v4947_v21, %v2215_v53  ;;  %v2216_v5 = vmul.f32 %v4946_v11, %v2204_v17 }
 0xb69   : > { %v5859_v45 = vpop.eup %5858 }
 0xb6a   : > { %v2206_v15 = vmul.f32 %v5859_v45, %v6643_v16  ;;  %v2233_v2 = vpack.c.bf16 %v2227_v20, %v2226_v51  ;;  %v2217_v43 = vmul.f32 %v4946_v11, %v2205_v46  ;;  %v2228_v50 = vadd.f32 %v4947_v21, %v2216_v5  ;;  %v2342_v16 = vld [vmem:[#allocation2 + $0x1b0] sm:$0xff] }
 0xb6b   : > { %v5861_v56 = vpop.eup %5860 }
 0xb6c   : > { %v2207_v52 = vmul.f32 %v5861_v56, %v6649_v44  ;;  %5435 = vmatmul.mubr.msk.bf16.vlgmr.msra.gmra.mrb[56].mxu1 %vm338_vm2, %v2233_v2  ;;  %v2229_v6 = vadd.f32 %v4947_v21, %v2217_v43  ;;  %v2218_v57 = vmul.f32 %v4946_v11, %v2206_v15  ;;  %v2355_v44 = vpack.c.bf16 %v2343_v18, %v2342_v16 }
 0xb6d   : > { %5443 = vmatpush3.bf16.msra.mxu1 %v6658_v32  ;;  %v2356_v32 = vpack.c.bf16 %v2345_v7, %v2344_v8 }
 0xb6e   : > { %v2234_v58 = vpack.c.bf16 %v2229_v6, %v2228_v50  ;;  %v2219_v62 = vmul.f32 %v4946_v11, %v2207_v52  ;;  %5444 = vmatprep.subr.bf16.mxu1 %v2353_v49  ;;  %v2230_v3 = vadd.f32 %v4947_v21, %v2218_v57  ;;  %v2346_v11 = vld [vmem:[#allocation2 + $0x1d0] sm:$0xff] }
 0xb6f   : > { %v2357_v31 = vpack.c.bf16 %v2347_v29, %v2346_v11 }
 0xb70   : > { %5438 = vmatprep.mubr.msk.bf16.mxu1 %vm338_vm2, %v2234_v58  ;;  %v2231_v38 = vadd.f32 %v4947_v21, %v2219_v62  ;;  %v2359_v21 = vpack.c.bf16 %v2351_v30, %v2350_v34  ;;  %v4953_v58 = vld [vmem:[#allocation2 + $0x200] ss:$0 sm:$0xff] }
 0xb71   : > { %5445 = vmatpush3.bf16.msra.mxu1 %v2353_v49 }
 0xb72   : > { %v2235_v13 = vpack.c.bf16 %v2231_v38, %v2230_v3  ;;  %5446 = vmatprep.subr.bf16.mxu1 %v2354_v63 }
 0xb74   : > { %5439 = vmatmul.mubr.msk.bf16.gmra.mrb[60].mxu1 %vm338_vm2, %v2235_v13 }
 0xb75   : > { %5447 = vmatpush3.bf16.msra.mxu1 %v2354_v63 }
 0xb76   : > { %5448 = vmatprep.subr.bf16.mxu1 %v2355_v44 }
 0xb79   : > { %5449 = vmatpush3.bf16.msra.mxu1 %v2355_v44 }
 0xb7a   : > { %5450 = vmatprep.subr.bf16.mxu1 %v2356_v32 }
 0xb7d   : > { %5451 = vmatpush3.bf16.msra.mxu1 %v2356_v32 }
 0xb7e   : > { %5452 = vmatprep.subr.bf16.mxu1 %v2357_v31 }
 0xb81   : > { %5453 = vmatpush3.bf16.msra.mxu1 %v2357_v31 }
 0xb82   : > { %5454 = vmatprep.subr.bf16.mxu1 %v2358_v39 }
 0xb85   : > { %5455 = vmatpush3.bf16.msra.mxu1 %v2358_v39 }
 0xb86   : > { %5456 = vmatprep.subr.bf16.mxu1 %v2359_v21 }
 0xb89   : > { %5457 = vmatpush3.bf16.msra.mxu1 %v2359_v21 }
 0xc3f   : > { %v5436_v33 = vpop.f32.mrb[56].mxu1 }
 0xc40   : > { %v2302_v23 = vadd.f32 %v5436_v33, %v4948_v59  ;;  %v2293_v10 = vpop.f32.mrb[57].mxu1 }
 0xc41   : > { %v2294_v14 = vadd.f32 %v4948_v59, %v2293_v10  ;;  %v5437_v0 = vpop.f32.mrb[58].mxu1 }
 0xc42   : > { %v2305_v61 = vadd.f32 %v5437_v0, %v4948_v59  ;;  %v2296_v1 = vpop.f32.mrb[59].mxu1  ;;  %v2326_v17 = vmax.f32 %v2302_v23, 0.0 }
 0xc43   : > { %v2297_v53 = vadd.f32 %v4948_v59, %v2296_v1  ;;  %v2324_v40 = vmax.f32 %v2294_v14, 0.0 }
 0xc44   : > { %v2327_v41 = vmax.f32 %v2305_v61, 0.0 }
 0xc45   : > { %v2325_v19 = vmax.f32 %v2297_v53, 0.0 }
 0xc46   : > { %v2333_v47 = vpack.c.bf16 %v2327_v41, %v2326_v17 }
 0xc47   : > { %v2332_v46 = vpack.c.bf16 %v2325_v19, %v2324_v40  ;;  %v5440_v51 = vpop.f32.mrb[60].mxu1 }
 0xc48   : > { %v2318_v20 = vadd.f32 %v5440_v51, %v4948_v59  ;;  %v2309_v5 = vpop.f32.mrb[61].mxu1 }
 0xc49   : > { %v2310_v45 = vadd.f32 %v4948_v59, %v2309_v5  ;;  %v5441_v15 = vpop.f32.mrb[62].mxu1  ;;  %5458 = vmatprep.mubr.bf16.mxu1 %v2332_v46 }
 0xc4a   : > { %v2321_v2 = vadd.f32 %v5441_v15, %v4948_v59  ;;  %v2312_v43 = vpop.f32.mrb[63].mxu1  ;;  %5459 = vmatmul.mubr.bf16.vlgmr.msra.gmra.mrb[64].mxu1 %v2333_v47  ;;  %v2330_v56 = vmax.f32 %v2318_v20, 0.0 }
 0xc4b   : > { %v2313_v49 = vadd.f32 %v4948_v59, %v2312_v43  ;;  %v2328_v25 = vmax.f32 %v2310_v45, 0.0 }
 0xc4c   : > { %v2331_v55 = vmax.f32 %v2321_v2, 0.0 }
 0xc4d   : > { %v2329_v52 = vmax.f32 %v2313_v49, 0.0 }
 0xc4e   : > { %v2335_v50 = vpack.c.bf16 %v2331_v55, %v2330_v56 }
 0xc4f   : > { %v2334_v6 = vpack.c.bf16 %v2329_v52, %v2328_v25 }
 0xc51   : > { %5462 = vmatprep.mubr.bf16.mxu1 %v2334_v6 }
 0xc52   : > { %5463 = vmatmul.mubr.bf16.gmra.mrb[68].mxu1 %v2335_v50 }
 0xd1d   : > { %v5460_v57 = vpop.f32.mrb[64].mxu1 }
 0xd1e   : > { %v2394_v62 = vpop.f32.mrb[65].mxu1  ;;  %v2427_v63 = vadd.f32 %v5460_v57, %v6576_v60 }
 0xd1f   : > { %v2425_v16 = vadd.f32 %v2394_v62, %v6572_v37  ;;  %v5461_v18 = vpop.f32.mrb[66].mxu1 }
 0xd20   : > { %v2397_v3 = vpop.f32.mrb[67].mxu1  ;;  %v2428_v13 = vadd.f32 %v5461_v18, %v6582_v35  ;;  %v6680_v8 = vadd.f32 %v4953_v58, %v2427_v63 }
 0xd21   : > { %v6676_v38 = vadd.f32 %v4953_v58, %v2425_v16  ;;  %v2426_v44 = vadd.f32 %v2397_v3, %v6578_v54 }
 0xd22   : > { %v6686_v11 = vadd.f32 %v4953_v58, %v2428_v13  ;;  %v2454_v12 = vsel %vm338_vm2, %v6680_v8, 0.0 }
 0xd23   : > { %v6682_v7 = vadd.f32 %v4953_v58, %v2426_v44  ;;  %v2448_v32 = vsel %vm338_vm2, %v6676_v38, 0.0 }
 0xd24   : > { %2449 = vadd.xlane.f32.xlu0 %v2448_v32  ;;  %v2457_v21 = vsel %vm338_vm2, %v6686_v11, 0.0 }
 0xd25   : > { %v5464_v60 = vpop.f32.mrb[68].mxu1  ;;  %v2451_v37 = vsel %vm338_vm2, %v6682_v7, 0.0 }
 0xd26   : > { %2452 = vadd.xlane.f32.xlu1 %v2451_v37  ;;  %v2410_v29 = vpop.f32.mrb[69].mxu1  ;;  %v2431_v35 = vadd.f32 %v5464_v60, %v6596_v4 }
 0xd27   : > { %v2429_v54 = vadd.f32 %v2410_v29, %v6590_v9  ;;  %v5465_v31 = vpop.f32.mrb[70].mxu1 }
 0xd28   : > { %2455 = vadd.xlane.f32.xlu0 %v2454_v12  ;;  %v2413_v26 = vpop.f32.mrb[71].mxu1  ;;  %v2432_v34 = vadd.f32 %v5465_v31, %v6602_v27  ;;  %v6700_v59 = vadd.f32 %v4953_v58, %v2431_v35  ;;  %v2581_v31 = vld [vmem:[#allocation2 + $0x220] sm:$0xff]  ;;  %v2744_v12 = vld [vmem:[#allocation2 + $0x258] sm:$0xff] }
 0xd29   : > { %v6694_v39 = vadd.f32 %v4953_v58, %v2429_v54  ;;  %v2430_v30 = vadd.f32 %v2413_v26, %v6598_v48  ;;  %v2580_v54 = vld [vmem:[#allocation2 + $0x218] sm:$0xff] }
 0xd2a   : > { %2458 = vadd.xlane.f32.xlu1 %v2457_v21  ;;  %v6706_v33 = vadd.f32 %v4953_v58, %v2432_v34  ;;  %v2466_v48 = vsel %vm338_vm2, %v6700_v59, 0.0  ;;  %v2584_v26 = vpack.c.bf16 %v2581_v31, %v2580_v54  ;;  %v2745_v34 = vld [vmem:[#allocation2 + $0x260] sm:$0xff]  ;;  %v2582_v21 = vld [vmem:[#allocation2 + $0x228] sm:$0xff] }
 0xd2b   : > { %v6702_v4 = vadd.f32 %v4953_v58, %v2430_v30  ;;  %v2460_v9 = vsel %vm338_vm2, %v6694_v39, 0.0  ;;  %v2748_v30 = vpack.c.bf16 %v2745_v34, %v2744_v12 }
 0xd2c   : > { %2461 = vadd.xlane.f32.xlu0 %v2460_v9  ;;  %v2469_v27 = vsel %vm338_vm2, %v6706_v33, 0.0  ;;  %5466 = vmatprep.subr.bf16.mxu0 %v2584_v26  ;;  %v2583_v9 = vld [vmem:[#allocation2 + $0x230] sm:$0xff] }
 0xd2d   : > { %v2463_v23 = vsel %vm338_vm2, %v6702_v4, 0.0  ;;  %5490 = vmatprep.subr.bf16.mxu1 %v2748_v30  ;;  %5467 = vmatpush3.bf16.msra.mxu0 %v2584_v26  ;;  %v4955_v26 = vld [vmem:[#allocation2 + $0x210] ss:$0 sm:$0xff] }
 0xd2e   : > { %2464 = vadd.xlane.f32.xlu1 %v2463_v23  ;;  %v2746_v23 = vld [vmem:[#allocation2 + $0x268] sm:$0xff]  ;;  %5491 = vmatpush3.bf16.msra.mxu1 %v2748_v30 }
 0xd30   : > { %2467 = vadd.xlane.f32.xlu0 %v2466_v48  ;;  %v2585_v48 = vpack.c.bf16 %v2583_v9, %v2582_v21 }
 0xd32   : > { %2470 = vadd.xlane.f32.xlu1 %v2469_v27  ;;  %v2747_v27 = vld [vmem:[#allocation2 + $0x270] sm:$0xff]  ;;  %5468 = vmatprep.subr.bf16.mxu0 %v2585_v48 }
 0xd33   : > { %5469 = vmatpush3.bf16.msra.mxu0 %v2585_v48 }
 0xdb1   : > { %v2450_v10 = vpop.xlane.xlu0 %2449 }
 0xdb2   : > { %v2472_v14 = vmul.f32 0.03125, %v2450_v10  ;;  %v2749_v10 = vpack.c.bf16 %v2747_v27, %v2746_v23 }
 0xdb3   : > { %v2453_v0 = vpop.xlane.xlu1 %2452 }
 0xdb4   : > { %v6715_v61 = vsub.f32 %v6676_v38, %v2472_v14  ;;  %v2473_v1 = vmul.f32 0.03125, %v2453_v0  ;;  %5492 = vmatprep.subr.bf16.mxu1 %v2749_v10  ;;  %v2668_v14 = vld [vmem:[#allocation2 + $0x238] sm:$0xff]  ;;  %v2669_v0 = vld [vmem:[#allocation2 + $0x240] sm:$0xff] }
 0xdb5   : > { %v2456_v53 = vpop.xlane.xlu0 %2455  ;;  %5493 = vmatpush3.bf16.msra.mxu1 %v2749_v10 }
 0xdb6   : > { %v6718_v17 = vsub.f32 %v6682_v7, %v2473_v1  ;;  %v2474_v41 = vmul.f32 0.03125, %v2456_v53  ;;  %v2488_v40 = vmul.f32 %v6715_v61, %v6715_v61  ;;  %5508 = vmatprep.subr.bf16.mxu1 %v6073_v42  ;;  %v6763_v1 = vpack.c.bf16 %v2669_v0, %v2668_v14 }
 0xdb7   : > { %v2459_v19 = vpop.xlane.xlu1 %2458 }
 0xdb8   : > { %v6723_v47 = vsub.f32 %v6680_v8, %v2474_v41  ;;  %v2475_v46 = vmul.f32 0.03125, %v2459_v19  ;;  %v2496_v51 = vsel %vm338_vm2, %v2488_v40, 0.0  ;;  %v2489_v20 = vmul.f32 %v6718_v17, %v6718_v17  ;;  %5478 = vmatprep.subr.bf16.mxu0 %v6763_v1 }
 0xdb9   : > { %2497 = vadd.xlane.f32.xlu0 %v2496_v51  ;;  %v2462_v5 = vpop.xlane.xlu0 %2461 }
 0xdba   : > { %v6729_v45 = vsub.f32 %v6686_v11, %v2475_v46  ;;  %v2476_v15 = vmul.f32 0.03125, %v2462_v5  ;;  %v2499_v2 = vsel %vm338_vm2, %v2489_v20, 0.0  ;;  %v2490_v43 = vmul.f32 %v6723_v47, %v6723_v47 }
 0xdbb   : > { %2500 = vadd.xlane.f32.xlu1 %v2499_v2  ;;  %v2465_v49 = vpop.xlane.xlu1 %2464 }
 0xdbc   : > { %v6735_v56 = vsub.f32 %v6694_v39, %v2476_v15  ;;  %v2477_v55 = vmul.f32 0.03125, %v2465_v49  ;;  %v2502_v25 = vsel %vm338_vm2, %v2490_v43, 0.0  ;;  %v2491_v52 = vmul.f32 %v6729_v45, %v6729_v45 }
 0xdbd   : > { %2503 = vadd.xlane.f32.xlu0 %v2502_v25  ;;  %v2468_v50 = vpop.xlane.xlu0 %2467 }
 0xdbe   : > { %v6741_v6 = vsub.f32 %v6702_v4, %v2477_v55  ;;  %v2478_v57 = vmul.f32 0.03125, %v2468_v50  ;;  %v2505_v58 = vsel %vm338_vm2, %v2491_v52, 0.0  ;;  %v2492_v62 = vmul.f32 %v6735_v56, %v6735_v56 }
 0xdbf   : > { %2506 = vadd.xlane.f32.xlu1 %v2505_v58  ;;  %v2471_v63 = vpop.xlane.xlu1 %2470 }
 0xdc0   : > { %v6747_v16 = vsub.f32 %v6700_v59, %v2478_v57  ;;  %v2479_v18 = vmul.f32 0.03125, %v2471_v63  ;;  %v2508_v3 = vsel %vm338_vm2, %v2492_v62, 0.0  ;;  %v2493_v13 = vmul.f32 %v6741_v6, %v6741_v6 }
 0xdc1   : > { %2509 = vadd.xlane.f32.xlu0 %v2508_v3 }
 0xdc2   : > { %v6753_v44 = vsub.f32 %v6706_v33, %v2479_v18  ;;  %v2511_v32 = vsel %vm338_vm2, %v2493_v13, 0.0  ;;  %v2494_v60 = vmul.f32 %v6747_v16, %v6747_v16  ;;  %v4954_v13 = vld [vmem:[#allocation2 + $0x208] ss:$0 sm:$0xff] }
 0xdc3   : > { %2512 = vadd.xlane.f32.xlu1 %v2511_v32 }
 0xdc4   : > { %v2514_v37 = vsel %vm338_vm2, %v2494_v60, 0.0  ;;  %v2495_v29 = vmul.f32 %v6753_v44, %v6753_v44 }
 0xdc5   : > { %2515 = vadd.xlane.f32.xlu0 %v2514_v37 }
 0xdc6   : > { %v2517_v35 = vsel %vm338_vm2, %v2495_v29, 0.0 }
 0xdc7   : > { %2518 = vadd.xlane.f32.xlu1 %v2517_v35 }
 0xe46   : > { %v2498_v53 = vpop.xlane.xlu0 %2497 }
 0xe47   : > { %v2520_v41 = vmul.f32 0.03125, %v2498_v53 }
 0xe48   : > { %v2501_v40 = vpop.xlane.xlu1 %2500 }
 0xe49   : > { %v2528_v19 = vadd.f32 1e-05, %v2520_v41  ;;  %v2521_v46 = vmul.f32 0.03125, %v2501_v40  ;;  %v2670_v41 = vld [vmem:[#allocation2 + $0x248] sm:$0xff]  ;;  %v2671_v40 = vld [vmem:[#allocation2 + $0x250] sm:$0xff] }
 0xe4a   : > { %v2504_v51 = vpop.xlane.xlu0 %2503 }
 0xe4b   : > { %5862 = vrsqrt.f32 %v2528_v19  ;;  %v2529_v20 = vadd.f32 1e-05, %v2521_v46  ;;  %v2522_v5 = vmul.f32 0.03125, %v2504_v51 }
 0xe4c   : > { %v2507_v15 = vpop.xlane.xlu1 %2506 }
 0xe4d   : > { %5864 = vrsqrt.f32 %v2529_v20  ;;  %v2530_v2 = vadd.f32 1e-05, %v2522_v5  ;;  %v2523_v43 = vmul.f32 0.03125, %v2507_v15  ;;  %v2673_v5 = vpack.c.bf16 %v2671_v40, %v2670_v41 }
 0xe4e   : > { %v2510_v49 = vpop.xlane.xlu0 %2509 }
 0xe4f   : > { %5866 = vrsqrt.f32 %v2530_v2  ;;  %v2531_v55 = vadd.f32 1e-05, %v2523_v43  ;;  %v2524_v25 = vmul.f32 0.03125, %v2510_v49 }
 0xe50   : > { %v2513_v52 = vpop.xlane.xlu1 %2512 }
 0xe51   : > { %5868 = vrsqrt.f32 %v2531_v55  ;;  %v2532_v50 = vadd.f32 1e-05, %v2524_v25  ;;  %v2525_v57 = vmul.f32 0.03125, %v2513_v52 }
 0xe52   : > { %v2516_v58 = vpop.xlane.xlu0 %2515 }
 0xe53   : > { %5870 = vrsqrt.f32 %v2532_v50  ;;  %v2533_v62 = vadd.f32 1e-05, %v2525_v57  ;;  %v2526_v63 = vmul.f32 0.03125, %v2516_v58  ;;  %v4956_v50 = vld [vmem:[#allocation2 + $0x278] ss:$0 sm:$0xff] }
 0xe54   : > { %v2519_v18 = vpop.xlane.xlu1 %2518  ;;  %v4966_v58 = vld [vmem:[#allocation2 + $0x288] ss:$0 sm:$0xff] }
 0xe55   : > { %v5863_v3 = vpop.eup %5862  ;;  %5872 = vrsqrt.f32 %v2533_v62  ;;  %v2534_v32 = vadd.f32 1e-05, %v2526_v63  ;;  %v2527_v60 = vmul.f32 0.03125, %v2519_v18 }
 0xe56   : > { %v2544_v37 = vmul.f32 %v5863_v3, %v6715_v61 }
 0xe57   : > { %v5865_v29 = vpop.eup %5864  ;;  %5874 = vrsqrt.f32 %v2534_v32  ;;  %v2535_v35 = vadd.f32 1e-05, %v2527_v60 }
 0xe58   : > { %v2556_v54 = vmul.f32 %v4954_v13, %v2544_v37  ;;  %v2545_v31 = vmul.f32 %v5865_v29, %v6718_v17 }
 0xe59   : > { %v5867_v12 = vpop.eup %5866  ;;  %5876 = vrsqrt.f32 %v2535_v35 }
 0xe5a   : > { %v2557_v34 = vmul.f32 %v4954_v13, %v2545_v31  ;;  %v2546_v30 = vmul.f32 %v5867_v12, %v6723_v47  ;;  %v2568_v9 = vadd.f32 %v4955_v26, %v2556_v54 }
 0xe5b   : > { %v5869_v21 = vpop.eup %5868 }
 0xe5c   : > { %v2569_v23 = vadd.f32 %v4955_v26, %v2557_v34  ;;  %v2558_v48 = vmul.f32 %v4954_v13, %v2546_v30  ;;  %v2547_v27 = vmul.f32 %v5869_v21, %v6729_v45 }
 0xe5d   : > { %v5871_v10 = vpop.eup %5870 }
 0xe5e   : > { %v2559_v61 = vmul.f32 %v4954_v13, %v2547_v27  ;;  %v2548_v14 = vmul.f32 %v5871_v10, %v6735_v56  ;;  %v6771_v0 = vpack.c.bf16 %v2569_v23, %v2568_v9  ;;  %v2570_v17 = vadd.f32 %v4955_v26, %v2558_v48 }
 0xe5f   : > { %v5873_v53 = vpop.eup %5872 }
 0xe60   : > { %v2571_v19 = vadd.f32 %v4955_v26, %v2559_v61  ;;  %v2560_v46 = vmul.f32 %v4954_v13, %v2548_v14  ;;  %v2549_v47 = vmul.f32 %v5873_v53, %v6741_v6  ;;  %5470 = vmatprep.mubr.msk.bf16.mxu0 %vm338_vm2, %v6771_v0  ;;  %5494 = vmatprep.mubr.msk.bf16.mxu1 %vm338_vm2, %v6771_v0 }
 0xe61   : > { %v5875_v45 = vpop.eup %5874 }
 0xe62   : > { %v2561_v51 = vmul.f32 %v4954_v13, %v2549_v47  ;;  %v2550_v56 = vmul.f32 %v5875_v45, %v6747_v16  ;;  %v6779_v20 = vpack.c.bf16 %v2571_v19, %v2570_v17  ;;  %v2572_v2 = vadd.f32 %v4955_v26, %v2560_v46 }
 0xe63   : > { %v5877_v15 = vpop.eup %5876 }
 0xe64   : > { %v2573_v43 = vadd.f32 %v4955_v26, %v2561_v51  ;;  %v2562_v49 = vmul.f32 %v4954_v13, %v2550_v56  ;;  %v2551_v55 = vmul.f32 %v5877_v15, %v6753_v44  ;;  %5471 = vmatmul.mubr.msk.bf16.vlgmr.msra.gmra.mrb[72].mxu0 %vm338_vm2, %v6779_v20  ;;  %5495 = vmatmul.mubr.msk.bf16.vlgmr.msra.gmra.mrb[72].mxu1 %vm338_vm2, %v6779_v20 }
 0xe65   : > { %5479 = vmatpush3.bf16.msra.mxu0 %v6763_v1 }
 0xe66   : > { %v2563_v6 = vmul.f32 %v4954_v13, %v2551_v55  ;;  %v6787_v25 = vpack.c.bf16 %v2573_v43, %v2572_v2  ;;  %5480 = vmatprep.subr.bf16.mxu0 %v2673_v5  ;;  %v2574_v16 = vadd.f32 %v4955_v26, %v2562_v49  ;;  %v4961_v55 = vld [vmem:[#allocation2 + $0x280] ss:$0 sm:$0xff] }
 0xe68   : > { %v2575_v52 = vadd.f32 %v4955_v26, %v2563_v6  ;;  %5474 = vmatprep.mubr.msk.bf16.mxu0 %vm338_vm2, %v6787_v25  ;;  %5498 = vmatprep.mubr.msk.bf16.mxu1 %vm338_vm2, %v6787_v25 }
 0xe69   : > { %5481 = vmatpush3.bf16.msra.mxu0 %v2673_v5 }
 0xe6a   : > { %v6793_v44 = vpack.c.bf16 %v2575_v52, %v2574_v16  ;;  %5502 = vmatprep.subr.bf16.mxu0 %v6073_v42 }
 0xe6c   : > { %5475 = vmatmul.mubr.msk.bf16.gmra.mrb[76].mxu0 %vm338_vm2, %v6793_v44  ;;  %5499 = vmatmul.mubr.msk.bf16.gmra.mrb[76].mxu1 %vm338_vm2, %v6793_v44 }
 0xe6d   : > { %5482 = vmatprep.mubr.msk.bf16.mxu0 %vm338_vm2, %v6771_v0  ;;  %5510 = vmatprep.mubr.msk.bf16.mxu1 %vm6074_vm3, %v6073_v42 }
 0xe74   : > { %5483 = vmatmul.mubr.msk.bf16.vlgmr.msra.gmra.mrb[80].mxu0 %vm338_vm2, %v6779_v20 }
 0xe75   : > { %5486 = vmatprep.mubr.msk.bf16.mxu0 %vm338_vm2, %v6787_v25 }
 0xe7c   : > { %5487 = vmatmul.mubr.msk.bf16.gmra.mrb[84].mxu0 %vm338_vm2, %v6793_v44 }
 0xe7d   : > { %5504 = vmatprep.mubr.msk.bf16.mxu0 %vm6074_vm3, %v6073_v42 }
 0xf37   : > { %v5472_v1 = vpop.f32.mrb[72].mxu0  ;;  %v5496_v57 = vpop.f32.mrb[72].mxu1 }
 0xf38   : > { %v2637_v62 = vpop.f32.mrb[73].mxu0  ;;  %v2789_v63 = vpop.f32.mrb[73].mxu1  ;;  %v2646_v13 = vadd.f32 %v5472_v1, %v4956_v50  ;;  %v6812_v32 = vadd.f32 %v5496_v57, %v4966_v58 }
 0xf39   : > { %v5473_v18 = vpop.f32.mrb[74].mxu0  ;;  %v5497_v3 = vpop.f32.mrb[74].mxu1  ;;  %v2638_v54 = vadd.f32 %v4956_v50, %v2637_v62  ;;  %v6816_v31 = vadd.f32 %v4966_v58, %v2789_v63 }
 0xf3a   : > { %v2649_v60 = vadd.f32 %v5473_v18, %v4956_v50  ;;  %v6814_v37 = vadd.f32 %v5497_v3, %v4966_v58  ;;  %v2640_v29 = vpop.f32.mrb[75].mxu0  ;;  %v2792_v35 = vpop.f32.mrb[75].mxu1 }
 0xf3b   : > { %v2641_v12 = vadd.f32 %v4956_v50, %v2640_v29  ;;  %v6818_v26 = vadd.f32 %v4966_v58, %v2792_v35 }
 0xf3c   : > { %v2821_v34 = vpack.c.bf16 %v2649_v60, %v2646_v13  ;;  %v2829_v30 = vpack.c.bf16 %v6814_v37, %v6812_v32 }
 0xf3d   : > { %v2820_v21 = vpack.c.bf16 %v2641_v12, %v2638_v54  ;;  %v2828_v9 = vpack.c.bf16 %v6818_v26, %v6816_v31 }
 0xf3f   : > { %v5476_v23 = vpop.f32.mrb[76].mxu0  ;;  %v5500_v48 = vpop.f32.mrb[76].mxu1 }
 0xf40   : > { %v6824_v27 = vadd.f32 %v5500_v48, %v4966_v58  ;;  %v2653_v10 = vpop.f32.mrb[77].mxu0  ;;  %v2805_v61 = vpop.f32.mrb[77].mxu1  ;;  %v2662_v41 = vadd.f32 %v5476_v23, %v4956_v50 }
 0xf41   : > { %v6826_v14 = vadd.f32 %v4966_v58, %v2805_v61  ;;  %v5477_v53 = vpop.f32.mrb[78].mxu0  ;;  %v5501_v17 = vpop.f32.mrb[78].mxu1  ;;  %v2654_v45 = vadd.f32 %v4956_v50, %v2653_v10 }
 0xf42   : > { %v2665_v40 = vadd.f32 %v5477_v53, %v4956_v50  ;;  %v6828_v19 = vadd.f32 %v5501_v17, %v4966_v58  ;;  %v2656_v46 = vpop.f32.mrb[79].mxu0  ;;  %v2808_v47 = vpop.f32.mrb[79].mxu1 }
 0xf43   : > { %v2657_v51 = vadd.f32 %v4956_v50, %v2656_v46  ;;  %v6830_v56 = vadd.f32 %v4966_v58, %v2808_v47 }
 0xf44   : > { %v2823_v5 = vpack.c.bf16 %v2665_v40, %v2662_v41  ;;  %v2831_v15 = vpack.c.bf16 %v6828_v19, %v6824_v27 }
 0xf45   : > { %v2822_v2 = vpack.c.bf16 %v2657_v51, %v2654_v45  ;;  %v2830_v43 = vpack.c.bf16 %v6830_v56, %v6826_v14  ;;  %v3463_v56 = vld [vmem:[#allocation2 + $0x2e0] sm:$0xff] }
 0xf47   : > { %v5484_v49 = vpop.f32.mrb[80].mxu0 }
 0xf48   : > { %v2713_v6 = vpop.f32.mrb[81].mxu0  ;;  %v2722_v52 = vadd.f32 %v5484_v49, %v4961_v55 }
 0xf49   : > { %v5485_v16 = vpop.f32.mrb[82].mxu0  ;;  %v2714_v62 = vadd.f32 %v4961_v55, %v2713_v6 }
 0xf4a   : > { %v2725_v1 = vadd.f32 %v5485_v16, %v4961_v55  ;;  %v2716_v57 = vpop.f32.mrb[83].mxu0 }
 0xf4b   : > { %v2717_v63 = vadd.f32 %v4961_v55, %v2716_v57 }
 0xf4c   : > { %v2825_v50 = vpack.c.bf16 %v2725_v1, %v2722_v52 }
 0xf4d   : > { %v2824_v58 = vpack.c.bf16 %v2717_v63, %v2714_v62 }
 0xf4e   : > { %v2883_v18 = vsel %vm724_vm4, %v2825_v50, 0 }
 0xf4f   : > { %v5488_v3 = vpop.f32.mrb[84].mxu0  ;;  %5509 = vmatpush3.bf16.xpose.msra.mxu1 %v2883_v18  ;;  %v2836_v13 = vsel %vm724_vm4, %v2824_v58, 0 }
 0xf50   : > { %v2729_v32 = vpop.f32.mrb[85].mxu0  ;;  %5503 = vmatpush3.bf16.xpose.msra.mxu0 %v2836_v13  ;;  %5520 = vmatprep.subr.bf16.mxu1 %v6073_v42  ;;  %v2738_v37 = vadd.f32 %v5488_v3, %v4961_v55 }
 0xf51   : > { %v5489_v60 = vpop.f32.mrb[86].mxu0  ;;  %5514 = vmatprep.subr.bf16.mxu0 %v6073_v42  ;;  %v2730_v54 = vadd.f32 %v4961_v55, %v2729_v32 }
 0xf52   : > { %v2741_v29 = vadd.f32 %v5489_v60, %v4961_v55  ;;  %v2732_v35 = vpop.f32.mrb[87].mxu0 }
 0xf53   : > { %v2733_v31 = vadd.f32 %v4961_v55, %v2732_v35 }
 0xf54   : > { %v2827_v12 = vpack.c.bf16 %v2741_v29, %v2738_v37 }
 0xf55   : > { %v2826_v26 = vpack.c.bf16 %v2733_v31, %v2730_v54 }
 0xf56   : > { %5511 = vmatmul.mubr.msk.bf16.vlgmr.msra.gmra.mrb[80].mxu1 %vm724_vm4, %v2821_v34  ;;  %v2977_v23 = vsel %vm724_vm4, %v2827_v12, 0 }
 0xf57   : > { %5505 = vmatmul.mubr.msk.bf16.vlgmr.msra.gmra.mrb[88].mxu0 %vm724_vm4, %v2820_v21  ;;  %5521 = vmatpush3.bf16.xpose.msra.mxu1 %v2977_v23  ;;  %v2930_v48 = vsel %vm724_vm4, %v2826_v26, 0 }
 0xf58   : > { %5515 = vmatpush3.bf16.xpose.msra.mxu0 %v2930_v48  ;;  %5522 = vmatprep.mubr.msk.bf16.mxu1 %vm6074_vm3, %v6073_v42 }
 0xf59   : > { %5516 = vmatprep.mubr.msk.bf16.mxu0 %vm6074_vm3, %v6073_v42  ;;  %5532 = vmatprep.subr.bf16.mxu1 %v6073_v42 }
 0xf5a   : > { %5526 = vmatprep.subr.bf16.mxu0 %v6073_v42 }
 0xf5e   : > { %5523 = vmatmul.mubr.msk.bf16.vlgmr.msra.gmra.mrb[84].mxu1 %vm724_vm4, %v2823_v5 }
 0xf5f   : > { %5517 = vmatmul.mubr.msk.bf16.vlgmr.msra.gmra.mrb[92].mxu0 %vm724_vm4, %v2822_v2  ;;  %5533 = vmatpush3.bf16.msra.mxu1 %v2829_v30 }
 0xf60   : > { %5527 = vmatpush3.bf16.msra.mxu0 %v2828_v9  ;;  %5534 = vmatprep.mubr.msk.bf16.mxu1 %vm6074_vm3, %v6073_v42 }
 0xf61   : > { %5544 = vmatprep.subr.bf16.mxu1 %v6073_v42  ;;  %5528 = vmatprep.mubr.msk.bf16.mxu0 %vm6074_vm3, %v6073_v42 }
 0xf62   : > { %5538 = vmatprep.subr.bf16.mxu0 %v6073_v42 }
0x1029   : > { %v2919_v34 = vpop.f32.mrb[80].mxu1 }
0x102a   : > { %v3022_v21 = vmul.f32 0.25, %v2919_v34  ;;  %v2872_v10 = vpop.f32.mrb[88].mxu0  ;;  %v5512_v61 = vpop.f32.mrb[81].mxu1 }
0x102b   : > { %v3020_v53 = vmul.f32 0.25, %v2872_v10  ;;  %v5506_v17 = vpop.f32.mrb[89].mxu0  ;;  %v2922_v41 = vpop.f32.mrb[82].mxu1 }
0x102c   : > { %v3023_v40 = vmul.f32 0.25, %v2922_v41  ;;  %v2875_v30 = vpop.f32.mrb[90].mxu0  ;;  %v5513_v9 = vpop.f32.mrb[83].mxu1  ;;  %v3030_v46 = vsel %vm6361_vm5, %v3022_v21, -1e+30 }
0x102d   : > { %v3021_v47 = vmul.f32 0.25, %v2875_v30  ;;  %v5507_v45 = vpop.f32.mrb[91].mxu0  ;;  %v3042_v51 = vsel %vm724_vm4, %v3030_v46, -inf  ;;  %v3028_v2 = vsel %vm6361_vm5, %v3020_v53, -1e+30 }
0x102e   : > { %3043 = vmax.xlane.f32.xlu0 %v3042_v51  ;;  %v3031_v5 = vsel %vm6366_vm6, %v3023_v40, -1e+30  ;;  %v3036_v16 = vsel %vm724_vm4, %v3028_v2, -inf }
0x102f   : > { %v3045_v49 = vsel %vm724_vm4, %v3031_v5, -inf  ;;  %v3029_v55 = vsel %vm6366_vm6, %v3021_v47, -1e+30 }
0x1030   : > { %3046 = vmax.xlane.f32.xlu1 %v3045_v49  ;;  %v3039_v58 = vsel %vm724_vm4, %v3029_v55, -inf }
0x1031   : > { %v3013_v6 = vpop.f32.mrb[84].mxu1 }
0x1032   : > { %v3026_v52 = vmul.f32 0.25, %v3013_v6  ;;  %v5524_v1 = vpop.f32.mrb[85].mxu1  ;;  %3037 = vmax.xlane.f32.xlu0 %v3036_v16  ;;  %v2966_v57 = vpop.f32.mrb[92].mxu0 }
0x1033   : > { %v3024_v62 = vmul.f32 0.25, %v2966_v57  ;;  %v5518_v63 = vpop.f32.mrb[93].mxu0  ;;  %v3016_v50 = vpop.f32.mrb[86].mxu1 }
0x1034   : > { %v3027_v18 = vmul.f32 0.25, %v3016_v50  ;;  %v5525_v3 = vpop.f32.mrb[87].mxu1  ;;  %3040 = vmax.xlane.f32.xlu1 %v3039_v58  ;;  %v2969_v13 = vpop.f32.mrb[94].mxu0  ;;  %v3034_v32 = vsel %vm6361_vm5, %v3026_v52, -1e+30 }
0x1035   : > { %v3025_v60 = vmul.f32 0.25, %v2969_v13  ;;  %v5519_v37 = vpop.f32.mrb[95].mxu0  ;;  %v3054_v29 = vsel %vm724_vm4, %v3034_v32, -inf  ;;  %v3032_v54 = vsel %vm6361_vm5, %v3024_v62, -1e+30 }
0x1036   : > { %3055 = vmax.xlane.f32.xlu0 %v3054_v29  ;;  %v3035_v35 = vsel %vm6366_vm6, %v3027_v18, -1e+30  ;;  %v3048_v26 = vsel %vm724_vm4, %v3032_v54, -inf }
0x1037   : > { %v3057_v31 = vsel %vm724_vm4, %v3035_v35, -inf  ;;  %v3033_v12 = vsel %vm6366_vm6, %v3025_v60, -1e+30 }
0x1038   : > { %3058 = vmax.xlane.f32.xlu1 %v3057_v31  ;;  %v3051_v23 = vsel %vm724_vm4, %v3033_v12, -inf }
0x103a   : > { %3049 = vmax.xlane.f32.xlu0 %v3048_v26 }
0x103c   : > { %3052 = vmax.xlane.f32.xlu1 %v3051_v23 }
0x10bb   : > { %v3044_v48 = vpop.xlane.xlu0 %3043 }
0x10bc   : > { %v3062_v34 = vsub.f32 %v3030_v46, %v3044_v48 }
0x10bd   : > { %v3047_v21 = vpop.xlane.xlu1 %3046 }
0x10be   : > { %v3072_v10 = vmul.f32 1.442695, %v3062_v34  ;;  %v3063_v61 = vsub.f32 %v3031_v5, %v3047_v21 }
0x10bf   : > { %v3038_v53 = vpop.xlane.xlu0 %3037 }
0x10c0   : > { %5878 = vpow2.f32 %v3072_v10  ;;  %v3074_v17 = vmul.f32 1.442695, %v3063_v61  ;;  %v3060_v41 = vsub.f32 %v3028_v2, %v3038_v53 }
0x10c1   : > { %v3041_v40 = vpop.xlane.xlu1 %3040 }
0x10c2   : > { %5880 = vpow2.f32 %v3074_v17  ;;  %v3068_v30 = vmul.f32 1.442695, %v3060_v41  ;;  %v3061_v9 = vsub.f32 %v3029_v55, %v3041_v40  ;;  %v3387_v40 = vld [vmem:[#allocation2 + $0x2c0] sm:$0xff] }
0x10c3   : > { %v3056_v47 = vpop.xlane.xlu0 %3055 }
0x10c4   : > { %5882 = vpow2.f32 %v3068_v30  ;;  %v3070_v45 = vmul.f32 1.442695, %v3061_v9  ;;  %v3066_v51 = vsub.f32 %v3034_v32, %v3056_v47  ;;  %v3388_v30 = vld [vmem:[#allocation2 + $0x2c8] sm:$0xff] }
0x10c5   : > { %v3059_v49 = vpop.xlane.xlu1 %3058 }
0x10c6   : > { %5884 = vpow2.f32 %v3070_v45  ;;  %v3080_v6 = vmul.f32 1.442695, %v3066_v51  ;;  %v3067_v16 = vsub.f32 %v3035_v35, %v3059_v49 }
0x10c7   : > { %v3050_v46 = vpop.xlane.xlu0 %3049 }
0x10c8   : > { %5886 = vpow2.f32 %v3080_v6  ;;  %v3082_v52 = vmul.f32 1.442695, %v3067_v16  ;;  %v3064_v5 = vsub.f32 %v3032_v54, %v3050_v46  ;;  %v3391_v6 = vpack.c.bf16 %v3388_v30, %v3387_v40  ;;  %v3311_v46 = vld [vmem:[#allocation2 + $0x2a0] sm:$0xff] }
0x10c9   : > { %v3053_v1 = vpop.xlane.xlu1 %3052 }
0x10ca   : > { %v5879_v57 = vpop.eup %5878  ;;  %5888 = vpow2.f32 %v3082_v52  ;;  %v3076_v2 = vmul.f32 1.442695, %v3064_v5  ;;  %v3065_v62 = vsub.f32 %v3033_v12, %v3053_v1  ;;  %v3312_v52 = vld [vmem:[#allocation2 + $0x2a8] sm:$0xff] }
0x10cb   : > { %v3090_v63 = vsel %vm724_vm4, %v5879_v57, 0.0 }
0x10cc   : > { %v5881_v55 = vpop.eup %5880  ;;  %5890 = vpow2.f32 %v3076_v2  ;;  %v3078_v50 = vmul.f32 1.442695, %v3065_v62  ;;  %3091 = vadd.xlane.f32.xlu0 %v3090_v63  ;;  %v3315_v62 = vpack.c.bf16 %v3312_v52, %v3311_v46 }
0x10cd   : > { %v3093_v58 = vsel %vm724_vm4, %v5881_v55, 0.0 }
0x10ce   : > { %v5883_v18 = vpop.eup %5882  ;;  %5892 = vpow2.f32 %v3078_v50  ;;  %3094 = vadd.xlane.f32.xlu1 %v3093_v58  ;;  %v3390_v50 = vld [vmem:[#allocation2 + $0x2d8] sm:$0xff] }
0x10cf   : > { %v3084_v3 = vsel %vm724_vm4, %v5883_v18, 0.0 }
0x10d0   : > { %v5885_v13 = vpop.eup %5884  ;;  %3085 = vadd.xlane.f32.xlu0 %v3084_v3 }
0x10d1   : > { %v3087_v32 = vsel %vm724_vm4, %v5885_v13, 0.0 }
0x10d2   : > { %v5887_v60 = vpop.eup %5886  ;;  %3088 = vadd.xlane.f32.xlu1 %v3087_v32  ;;  %v3314_v32 = vld [vmem:[#allocation2 + $0x2b8] sm:$0xff] }
0x10d3   : > { %v3102_v37 = vsel %vm724_vm4, %v5887_v60, 0.0 }
0x10d4   : > { %v5889_v29 = vpop.eup %5888  ;;  %3103 = vadd.xlane.f32.xlu0 %v3102_v37 }
0x10d5   : > { %v3105_v35 = vsel %vm724_vm4, %v5889_v29, 0.0 }
0x10d6   : > { %v5891_v54 = vpop.eup %5890  ;;  %3106 = vadd.xlane.f32.xlu1 %v3105_v35 }
0x10d7   : > { %v3096_v31 = vsel %vm724_vm4, %v5891_v54, 0.0 }
0x10d8   : > { %v5893_v12 = vpop.eup %5892  ;;  %3097 = vadd.xlane.f32.xlu0 %v3096_v31  ;;  %v3466_v31 = vld [vmem:[#allocation2 + $0x2f8] sm:$0xff] }
0x10d9   : > { %v3099_v26 = vsel %vm724_vm4, %v5893_v12, 0.0 }
0x10da   : > { %3100 = vadd.xlane.f32.xlu1 %v3099_v26 }
0x1159   : > { %v3092_v23 = vpop.xlane.xlu0 %3091 }
0x115a   : > { %5894 = vrcp.f32 %v3092_v23 }
0x115b   : > { %v3095_v48 = vpop.xlane.xlu1 %3094 }
0x115c   : > { %5896 = vrcp.f32 %v3095_v48 }
0x115d   : > { %v3086_v34 = vpop.xlane.xlu0 %3085 }
0x115e   : > { %5898 = vrcp.f32 %v3086_v34 }
0x115f   : > { %v3089_v21 = vpop.xlane.xlu1 %3088 }
0x1160   : > { %5900 = vrcp.f32 %v3089_v21 }
0x1161   : > { %v3104_v10 = vpop.xlane.xlu0 %3103 }
0x1162   : > { %5902 = vrcp.f32 %v3104_v10 }
0x1163   : > { %v3107_v61 = vpop.xlane.xlu1 %3106 }
0x1164   : > { %v5895_v53 = vpop.eup %5894  ;;  %5904 = vrcp.f32 %v3107_v61 }
0x1165   : > { %v3098_v17 = vpop.xlane.xlu0 %3097  ;;  %v3118_v9 = vmul.f32 %v5895_v53, %v5879_v57 }
0x1166   : > { %v5897_v41 = vpop.eup %5896  ;;  %5906 = vrcp.f32 %v3098_v17 }
0x1167   : > { %v3119_v47 = vmul.f32 %v5897_v41, %v5881_v55  ;;  %v3101_v45 = vpop.xlane.xlu1 %3100  ;;  %v3389_v55 = vld [vmem:[#allocation2 + $0x2d0] sm:$0xff] }
0x1168   : > { %v5899_v51 = vpop.eup %5898  ;;  %5908 = vrcp.f32 %v3101_v45  ;;  %v3392_v19 = vpack.c.bf16 %v3390_v50, %v3389_v55 }
0x1169   : > { %v3125_v49 = vpack.c.bf16 %v3119_v47, %v3118_v9  ;;  %v3116_v5 = vmul.f32 %v5899_v51, %v5883_v18 }
0x116a   : > { %v5901_v16 = vpop.eup %5900 }
0x116b   : > { %v3117_v1 = vmul.f32 %v5901_v16, %v5885_v13  ;;  %5535 = vmatmul.mubr.msk.bf16.vlgmr.msra.gmra.mrb[88].mxu1 %vm724_vm4, %v3125_v49  ;;  %v3313_v13 = vld [vmem:[#allocation2 + $0x2b0] sm:$0xff] }
0x116c   : > { %v5903_v2 = vpop.eup %5902  ;;  %5545 = vmatpush3.bf16.msra.mxu1 %v2831_v15  ;;  %5546 = vmatprep.mubr.msk.bf16.mxu1 %vm6074_vm3, %v6073_v42  ;;  %v3316_v14 = vpack.c.bf16 %v3314_v32, %v3313_v13 }
0x116d   : > { %v3124_v57 = vpack.c.bf16 %v3117_v1, %v3116_v5  ;;  %5562 = vmatprep.subr.bf16.mxu1 %v3391_v6  ;;  %v3122_v58 = vmul.f32 %v5903_v2, %v5887_v60 }
0x116e   : > { %v5905_v63 = vpop.eup %5904 }
0x116f   : > { %v3123_v3 = vmul.f32 %v5905_v63, %v5889_v29  ;;  %5529 = vmatmul.mubr.msk.bf16.vlgmr.msra.gmra.mrb[96].mxu0 %vm724_vm4, %v3124_v57  ;;  %v4979_v57 = vld [vmem:[#allocation2 + $0x300] ss:$0 sm:$0xff] }
0x1170   : > { %v5907_v18 = vpop.eup %5906  ;;  %5539 = vmatpush3.bf16.msra.mxu0 %v2830_v43  ;;  %5540 = vmatprep.mubr.msk.bf16.mxu0 %vm6074_vm3, %v6073_v42  ;;  %v3464_v43 = vld [vmem:[#allocation2 + $0x2e8] sm:$0xff] }
0x1171   : > { %v3127_v27 = vpack.c.bf16 %v3123_v3, %v3122_v58  ;;  %5550 = vmatprep.subr.bf16.mxu0 %v3315_v62  ;;  %v3120_v37 = vmul.f32 %v5907_v18, %v5891_v54  ;;  %v3467_v29 = vpack.c.bf16 %v3464_v43, %v3463_v56  ;;  %v3465_v54 = vld [vmem:[#allocation2 + $0x2f0] sm:$0xff] }
0x1172   : > { %v5909_v15 = vpop.eup %5908 }
0x1173   : > { %v3121_v35 = vmul.f32 %v5909_v15, %v5893_v12  ;;  %5547 = vmatmul.mubr.msk.bf16.vlgmr.msra.gmra.mrb[92].mxu1 %vm724_vm4, %v3127_v27  ;;  %v3468_v12 = vpack.c.bf16 %v3466_v31, %v3465_v54 }
0x1174   : > { %5563 = vmatpush3.bf16.msra.mxu1 %v3391_v6  ;;  %5566 = vmatprep.mubr.msk.bf16.mxu1 %vm338_vm2, %v6771_v0  ;;  %v4984_v6 = vld [vmem:[#allocation2 + $0x308] ss:$0 sm:$0xff] }
0x1175   : > { %v3126_v60 = vpack.c.bf16 %v3121_v35, %v3120_v37  ;;  %5564 = vmatprep.subr.bf16.mxu1 %v3392_v19 }
0x1177   : > { %5541 = vmatmul.mubr.msk.bf16.vlgmr.msra.gmra.mrb[100].mxu0 %vm724_vm4, %v3126_v60 }
0x1178   : > { %5551 = vmatpush3.bf16.msra.mxu0 %v3315_v62  ;;  %5554 = vmatprep.mubr.msk.bf16.mxu0 %vm338_vm2, %v6771_v0 }
0x1179   : > { %5565 = vmatpush3.bf16.msra.mxu1 %v3392_v19  ;;  %5552 = vmatprep.subr.bf16.mxu0 %v3316_v14 }
0x117a   : > { %5586 = vmatprep.subr.bf16.mxu1 %v6073_v42 }
0x117c   : > { %5567 = vmatmul.mubr.msk.bf16.vlgmr.msra.gmra.mrb[96].mxu1 %vm338_vm2, %v6779_v20  ;;  %5553 = vmatpush3.bf16.msra.mxu0 %v3316_v14 }
0x117d   : > { %5570 = vmatprep.mubr.msk.bf16.mxu1 %vm338_vm2, %v6787_v25  ;;  %5574 = vmatprep.subr.bf16.mxu0 %v3467_v29 }
0x117f   : > { %5555 = vmatmul.mubr.msk.bf16.vlgmr.msra.gmra.mrb[104].mxu0 %vm338_vm2, %v6779_v20 }
0x1180   : > { %5558 = vmatprep.mubr.msk.bf16.mxu0 %vm338_vm2, %v6787_v25  ;;  %5575 = vmatpush3.bf16.msra.mxu0 %v3467_v29 }
0x1181   : > { %5576 = vmatprep.subr.bf16.mxu0 %v3468_v12 }
0x1184   : > { %5571 = vmatmul.mubr.msk.bf16.gmra.mrb[100].mxu1 %vm338_vm2, %v6793_v44  ;;  %5577 = vmatpush3.bf16.msra.mxu0 %v3468_v12 }
0x1185   : > { %5588 = vmatprep.mubr.msk.bf16.mxu1 %vm6074_vm3, %v6073_v42  ;;  %5598 = vmatprep.subr.bf16.mxu0 %v6073_v42 }
0x1187   : > { %5559 = vmatmul.mubr.msk.bf16.gmra.mrb[108].mxu0 %vm338_vm2, %v6793_v44 }
0x1188   : > { %5578 = vmatprep.mubr.msk.bf16.mxu0 %vm338_vm2, %v6771_v0 }
0x118f   : > { %5579 = vmatmul.mubr.msk.bf16.vlgmr.msra.gmra.mrb[112].mxu0 %vm338_vm2, %v6779_v20 }
0x1190   : > { %5582 = vmatprep.mubr.msk.bf16.mxu0 %vm338_vm2, %v6787_v25 }
0x1197   : > { %5583 = vmatmul.mubr.msk.bf16.gmra.mrb[116].mxu0 %vm338_vm2, %v6793_v44 }
0x1198   : > { %5600 = vmatprep.mubr.msk.bf16.mxu0 %vm6074_vm3, %v6073_v42 }
0x123e   : > { %v6934_v26 = vpop.f32.mrb[88].mxu1 }
0x123f   : > { %v5536_v23 = vpop.f32.mrb[89].mxu1 }
0x1240   : > { %v6936_v48 = vpop.f32.mrb[90].mxu1 }
0x1241   : > { %v3305_v0 = vpack.c.bf16 %v6936_v48, %v6934_v26  ;;  %v5537_v34 = vpop.f32.mrb[91].mxu1 }
0x1242   : > { %v6940_v21 = vpop.f32.mrb[96].mxu0 }
0x1243   : > { %v5530_v20 = vpop.f32.mrb[97].mxu0 }
0x1244   : > { %v6942_v10 = vpop.f32.mrb[98].mxu0 }
0x1245   : > { %v3304_v25 = vpack.c.bf16 %v6942_v10, %v6940_v21  ;;  %v5531_v44 = vpop.f32.mrb[99].mxu0 }
0x1246   : > { %v6946_v61 = vpop.f32.mrb[92].mxu1 }
0x1247   : > { %v5548_v53 = vpop.f32.mrb[93].mxu1 }
0x1248   : > { %v6948_v17 = vpop.f32.mrb[94].mxu1 }
0x1249   : > { %v3307_v41 = vpack.c.bf16 %v6948_v17, %v6946_v61  ;;  %v5549_v40 = vpop.f32.mrb[95].mxu1 }
0x124a   : > { %v6952_v30 = vpop.f32.mrb[100].mxu0 }
0x124b   : > { %v5542_v9 = vpop.f32.mrb[101].mxu0 }
0x124c   : > { %v6954_v47 = vpop.f32.mrb[102].mxu0 }
0x124d   : > { %v3306_v45 = vpack.c.bf16 %v6954_v47, %v6952_v30  ;;  %v5543_v51 = vpop.f32.mrb[103].mxu0 }
0x124f   : > { %v5568_v49 = vpop.f32.mrb[96].mxu1 }
0x1250   : > { %v3432_v16 = vpop.f32.mrb[97].mxu1  ;;  %v3441_v52 = vadd.f32 %v5568_v49, %v4984_v6 }
0x1251   : > { %v5569_v46 = vpop.f32.mrb[98].mxu1  ;;  %v3433_v62 = vadd.f32 %v4984_v6, %v3432_v16 }
0x1252   : > { %v3444_v5 = vadd.f32 %v5569_v46, %v4984_v6  ;;  %v3435_v1 = vpop.f32.mrb[99].mxu1  ;;  %v5556_v2 = vpop.f32.mrb[104].mxu0 }
0x1253   : > { %v3436_v63 = vadd.f32 %v4984_v6, %v3435_v1  ;;  %v3356_v55 = vpop.f32.mrb[105].mxu0  ;;  %v3365_v18 = vadd.f32 %v5556_v2, %v4979_v57  ;;  %v4989_v2 = vld [vmem:[#allocation2 + $0x310] ss:$0 sm:$0xff] }
0x1254   : > { %v3544_v50 = vpack.c.bf16 %v3444_v5, %v3441_v52  ;;  %v5557_v58 = vpop.f32.mrb[106].mxu0  ;;  %v3357_v15 = vadd.f32 %v4979_v57, %v3356_v55 }
0x1255   : > { %v3543_v3 = vpack.c.bf16 %v3436_v63, %v3433_v62  ;;  %v3368_v27 = vadd.f32 %v5557_v58, %v4979_v57  ;;  %v3359_v19 = vpop.f32.mrb[107].mxu0 }
0x1256   : > { %v3360_v13 = vadd.f32 %v4979_v57, %v3359_v19  ;;  %v3602_v52 = vsel %vm724_vm4, %v3544_v50, 0 }
0x1257   : > { %v3540_v32 = vpack.c.bf16 %v3368_v27, %v3365_v18  ;;  %v5572_v37 = vpop.f32.mrb[100].mxu1  ;;  %v3555_v35 = vsel %vm724_vm4, %v3543_v3, 0 }
0x1258   : > { %v3539_v60 = vpack.c.bf16 %v3360_v13, %v3357_v15  ;;  %v3448_v14 = vpop.f32.mrb[101].mxu1  ;;  %5587 = vmatpush3.bf16.xpose.msra.mxu1 %v3555_v35  ;;  %v3457_v43 = vadd.f32 %v5572_v37, %v4984_v6 }
0x1259   : > { %v5573_v56 = vpop.f32.mrb[102].mxu1  ;;  %5592 = vmatprep.subr.bf16.mxu1 %v6073_v42  ;;  %v3449_v12 = vadd.f32 %v4984_v6, %v3448_v14 }
0x125a   : > { %v3460_v29 = vadd.f32 %v5573_v56, %v4984_v6  ;;  %v3451_v54 = vpop.f32.mrb[103].mxu1  ;;  %v5560_v31 = vpop.f32.mrb[108].mxu0 }
0x125b   : > { %v3452_v23 = vadd.f32 %v4984_v6, %v3451_v54  ;;  %v3372_v34 = vpop.f32.mrb[109].mxu0  ;;  %v3381_v40 = vadd.f32 %v5560_v31, %v4979_v57 }
0x125c   : > { %v3546_v20 = vpack.c.bf16 %v3460_v29, %v3457_v43  ;;  %v5561_v44 = vpop.f32.mrb[110].mxu0  ;;  %v3373_v49 = vadd.f32 %v4979_v57, %v3372_v34 }
0x125d   : > { %v3545_v53 = vpack.c.bf16 %v3452_v23, %v3449_v12  ;;  %v3384_v9 = vadd.f32 %v5561_v44, %v4979_v57  ;;  %v3375_v51 = vpop.f32.mrb[111].mxu0 }
0x125e   : > { %v3376_v16 = vadd.f32 %v4979_v57, %v3375_v51  ;;  %v3696_v27 = vsel %vm724_vm4, %v3546_v20, 0 }
0x125f   : > { %v3542_v46 = vpack.c.bf16 %v3384_v9, %v3381_v40  ;;  %5589 = vmatmul.mubr.msk.bf16.vlgmr.msra.gmra.mrb[104].mxu1 %vm724_vm4, %v3539_v60  ;;  %v3649_v5 = vsel %vm724_vm4, %v3545_v53, 0 }
0x1260   : > { %v3541_v1 = vpack.c.bf16 %v3376_v16, %v3373_v49  ;;  %5593 = vmatpush3.bf16.xpose.msra.mxu1 %v3602_v52  ;;  %5599 = vmatpush3.bf16.xpose.msra.mxu0 %v3649_v5 }
0x1261   : > { %5594 = vmatprep.mubr.msk.bf16.mxu1 %vm6074_vm3, %v6073_v42  ;;  %5604 = vmatprep.subr.bf16.mxu1 %v6073_v42 }
0x1262   : > { %v5580_v6 = vpop.f32.mrb[112].mxu0  ;;  %5610 = vmatprep.subr.bf16.mxu0 %v6073_v42 }
0x1263   : > { %v3508_v57 = vpop.f32.mrb[113].mxu0  ;;  %v3517_v63 = vadd.f32 %v5580_v6, %v4989_v2 }
0x1264   : > { %v5581_v62 = vpop.f32.mrb[114].mxu0  ;;  %v3509_v50 = vadd.f32 %v4989_v2, %v3508_v57 }
0x1265   : > { %v3520_v55 = vadd.f32 %v5581_v62, %v4989_v2  ;;  %v3511_v58 = vpop.f32.mrb[115].mxu0 }
0x1266   : > { %v3512_v3 = vadd.f32 %v4989_v2, %v3511_v58 }
0x1267   : > { %v3548_v18 = vpack.c.bf16 %v3520_v55, %v3517_v63  ;;  %5595 = vmatmul.mubr.msk.bf16.vlgmr.msra.gmra.mrb[108].mxu1 %vm724_vm4, %v3540_v32  ;;  %5601 = vmatmul.mubr.msk.bf16.vlgmr.msra.gmra.mrb[120].mxu0 %vm724_vm4, %v3541_v1 }
0x1268   : > { %v3547_v19 = vpack.c.bf16 %v3512_v3, %v3509_v50  ;;  %5605 = vmatpush3.bf16.xpose.msra.mxu1 %v3696_v27  ;;  %5606 = vmatprep.mubr.msk.bf16.mxu1 %vm6074_vm3, %v6073_v42 }
0x1269   : > { %5616 = vmatprep.subr.bf16.mxu1 %v6073_v42  ;;  %5612 = vmatprep.mubr.msk.bf16.mxu0 %vm6074_vm3, %v6073_v42 }
0x126a   : > { %v5584_v15 = vpop.f32.mrb[116].mxu0  ;;  %5611 = vmatpush3.bf16.msra.mxu0 %v3547_v19 }
0x126b   : > { %v6975_v13 = vadd.f32 %v5584_v15, %v4989_v2  ;;  %v3524_v37 = vpop.f32.mrb[117].mxu0  ;;  %5622 = vmatprep.subr.bf16.mxu0 %v6073_v42 }
0x126c   : > { %v6978_v32 = vadd.f32 %v4989_v2, %v3524_v37  ;;  %v5585_v35 = vpop.f32.mrb[118].mxu0 }
0x126d   : > { %v6980_v60 = vadd.f32 %v5585_v35, %v4989_v2  ;;  %v3527_v14 = vpop.f32.mrb[119].mxu0 }
0x126e   : > { %v6982_v56 = vadd.f32 %v4989_v2, %v3527_v14 }
0x126f   : > { %v3550_v43 = vpack.c.bf16 %v6980_v60, %v6975_v13  ;;  %5607 = vmatmul.mubr.msk.bf16.vlgmr.msra.gmra.mrb[112].mxu1 %vm724_vm4, %v3542_v46  ;;  %v3309_v13 = vld [vmem:[#allocation2 + $0x298] sm:$0xff] }
0x1270   : > { %v3549_v29 = vpack.c.bf16 %v6982_v56, %v6978_v32  ;;  %5617 = vmatpush3.bf16.msra.mxu1 %v3548_v18  ;;  %5618 = vmatprep.mubr.msk.bf16.mxu1 %vm6074_vm3, %v6073_v42 }
0x1271   : > { %5628 = vmatprep.subr.bf16.mxu1 %v6073_v42 }
0x1332   : > { %v3591_v54 = vpop.f32.mrb[104].mxu1 }
0x1333   : > { %v3739_v31 = vmul.f32 0.25, %v3591_v54  ;;  %v5590_v12 = vpop.f32.mrb[105].mxu1 }
0x1334   : > { %v3594_v23 = vpop.f32.mrb[106].mxu1 }
0x1335   : > { %v3740_v34 = vmul.f32 0.25, %v3594_v23  ;;  %v5591_v20 = vpop.f32.mrb[107].mxu1  ;;  %v3747_v44 = vsel %vm6361_vm5, %v3739_v31, -1e+30 }
0x1336   : > { %v3755_v53 = vsel %vm724_vm4, %v3747_v44, -inf }
0x1337   : > { %3756 = vmax.xlane.f32.xlu0 %v3755_v53  ;;  %v3748_v40 = vsel %vm6366_vm6, %v3740_v34, -1e+30 }
0x1338   : > { %v3758_v9 = vsel %vm724_vm4, %v3748_v40, -inf }
0x1339   : > { %3759 = vmax.xlane.f32.xlu1 %v3758_v9 }
0x133a   : > { %v3638_v51 = vpop.f32.mrb[108].mxu1  ;;  %v3685_v49 = vpop.f32.mrb[120].mxu0 }
0x133b   : > { %v3741_v16 = vmul.f32 0.25, %v3638_v51  ;;  %v3743_v46 = vmul.f32 0.25, %v3685_v49  ;;  %v5596_v52 = vpop.f32.mrb[109].mxu1  ;;  %v5602_v5 = vpop.f32.mrb[121].mxu0 }
0x133c   : > { %v3641_v1 = vpop.f32.mrb[110].mxu1  ;;  %v3688_v6 = vpop.f32.mrb[122].mxu0 }
0x133d   : > { %v3749_v2 = vsel %vm6361_vm5, %v3741_v16, -1e+30  ;;  %v3742_v57 = vmul.f32 0.25, %v3641_v1  ;;  %v3744_v62 = vmul.f32 0.25, %v3688_v6  ;;  %v5597_v63 = vpop.f32.mrb[111].mxu1  ;;  %v5603_v55 = vpop.f32.mrb[123].mxu0 }
0x133e   : > { %v3761_v58 = vsel %vm724_vm4, %v3749_v2, -inf  ;;  %v3751_v50 = vsel %vm6361_vm5, %v3743_v46, -1e+30 }
0x133f   : > { %v3750_v3 = vsel %vm6366_vm6, %v3742_v57, -1e+30  ;;  %3762 = vmax.xlane.f32.xlu0 %v3761_v58  ;;  %v3752_v27 = vsel %vm6366_vm6, %v3744_v62, -1e+30  ;;  %v3767_v15 = vsel %vm724_vm4, %v3751_v50, -inf }
0x1340   : > { %v3764_v18 = vsel %vm724_vm4, %v3750_v3, -inf  ;;  %v3770_v54 = vsel %vm724_vm4, %v3752_v27, -inf }
0x1341   : > { %3765 = vmax.xlane.f32.xlu1 %v3764_v18 }
0x1342   : > { %v3732_v19 = vpop.f32.mrb[112].mxu1 }
0x1343   : > { %v3745_v37 = vmul.f32 0.25, %v3732_v19  ;;  %3768 = vmax.xlane.f32.xlu0 %v3767_v15  ;;  %v5608_v35 = vpop.f32.mrb[113].mxu1 }
0x1344   : > { %v3735_v14 = vpop.f32.mrb[114].mxu1 }
0x1345   : > { %v3753_v31 = vsel %vm6361_vm5, %v3745_v37, -1e+30  ;;  %v3746_v12 = vmul.f32 0.25, %v3735_v14  ;;  %3771 = vmax.xlane.f32.xlu1 %v3770_v54  ;;  %v5609_v23 = vpop.f32.mrb[115].mxu1 }
0x1346   : > { %v3773_v34 = vsel %vm724_vm4, %v3753_v31, -inf }
0x1347   : > { %v3754_v20 = vsel %vm6366_vm6, %v3746_v12, -1e+30  ;;  %3774 = vmax.xlane.f32.xlu0 %v3773_v34 }
0x1348   : > { %v3776_v53 = vsel %vm724_vm4, %v3754_v20, -inf }
0x1349   : > { %3777 = vmax.xlane.f32.xlu1 %v3776_v53 }
0x13c4   : > { %v3757_v9 = vpop.xlane.xlu0 %3756 }
0x13c5   : > { %v3779_v51 = vsub.f32 %v3747_v44, %v3757_v9 }
0x13c6   : > { %v3760_v49 = vpop.xlane.xlu1 %3759 }
0x13c7   : > { %v3787_v16 = vmul.f32 1.442695, %v3779_v51  ;;  %v3780_v46 = vsub.f32 %v3748_v40, %v3760_v49 }
0x13c9   : > { %5910 = vpow2.f32 %v3787_v16  ;;  %v3789_v28 = vmul.f32 1.442695, %v3780_v46 }
0x13cb   : > { %5912 = vpow2.f32 %v3789_v28 }
0x13cc   : > { %v3763_v52 = vpop.xlane.xlu0 %3762 }
0x13cd   : > { %v3781_v5 = vsub.f32 %v3749_v2, %v3763_v52 }
0x13ce   : > { %v3766_v1 = vpop.xlane.xlu1 %3765 }
0x13cf   : > { %v3791_v6 = vmul.f32 1.442695, %v3781_v5  ;;  %v3782_v57 = vsub.f32 %v3750_v3, %v3766_v1 }
0x13d0   : > { %v3769_v62 = vpop.xlane.xlu0 %3768 }
0x13d1   : > { %5914 = vpow2.f32 %v3791_v6  ;;  %v3793_v36 = vmul.f32 1.442695, %v3782_v57  ;;  %v3783_v63 = vsub.f32 %v3751_v50, %v3769_v62 }
0x13d2   : > { %v3772_v55 = vpop.xlane.xlu1 %3771 }
0x13d3   : > { %v5911_v58 = vpop.eup %5910  ;;  %5916 = vpow2.f32 %v3793_v36  ;;  %v3795_v18 = vmul.f32 1.442695, %v3783_v63  ;;  %v3784_v44 = vsub.f32 %v3752_v27, %v3772_v55 }
0x13d4   : > { %v3775_v19 = vpop.xlane.xlu0 %3774  ;;  %v3803_v40 = vsel %vm724_vm4, %v5911_v58, 0.0 }
0x13d5   : > { %v5913_v15 = vpop.eup %5912  ;;  %5918 = vpow2.f32 %v3795_v18  ;;  %v3797_v37 = vmul.f32 1.442695, %v3784_v44  ;;  %v3785_v35 = vsub.f32 %v3753_v31, %v3775_v19  ;;  %3804 = vadd.xlane.f32.xlu0 %v3803_v40 }
0x13d6   : > { %v3778_v2 = vpop.xlane.xlu1 %3777  ;;  %v3806_v3 = vsel %vm724_vm4, %v5913_v15, 0.0 }
0x13d7   : > { %5920 = vpow2.f32 %v3797_v37  ;;  %v3799_v14 = vmul.f32 1.442695, %v3785_v35  ;;  %v3786_v54 = vsub.f32 %v3754_v20, %v3778_v2  ;;  %3807 = vadd.xlane.f32.xlu1 %v3806_v3 }
0x13d9   : > { %5922 = vpow2.f32 %v3799_v14  ;;  %v3801_v50 = vmul.f32 1.442695, %v3786_v54 }
0x13db   : > { %v5915_v12 = vpop.eup %5914  ;;  %5924 = vpow2.f32 %v3801_v50 }
0x13dc   : > { %v3809_v27 = vsel %vm724_vm4, %v5915_v12, 0.0 }
0x13dd   : > { %v5917_v23 = vpop.eup %5916  ;;  %3810 = vadd.xlane.f32.xlu0 %v3809_v27 }
0x13de   : > { %v3812_v34 = vsel %vm724_vm4, %v5917_v23, 0.0 }
0x13df   : > { %v5919_v53 = vpop.eup %5918  ;;  %3813 = vadd.xlane.f32.xlu1 %v3812_v34  ;;  %v4028_v34 = vld [vmem:[#allocation2 + $0x320] sm:$0xff] }
0x13e0   : > { %v3815_v31 = vsel %vm724_vm4, %v5919_v53, 0.0 }
0x13e1   : > { %v5921_v9 = vpop.eup %5920  ;;  %3816 = vadd.xlane.f32.xlu0 %v3815_v31  ;;  %v3308_v31 = vld [vmem:[#allocation2 + $0x290] sm:$0xff] }
0x13e2   : > { %v3818_v51 = vsel %vm724_vm4, %v5921_v9, 0.0  ;;  %v3310_v60 = vpack.c.bf16 %v3309_v13, %v3308_v31 }
0x13e3   : > { %v5923_v20 = vpop.eup %5922  ;;  %3819 = vadd.xlane.f32.xlu1 %v3818_v51 }
0x13e4   : > { %v3821_v49 = vsel %vm724_vm4, %v5923_v20, 0.0 }
0x13e5   : > { %v5925_v16 = vpop.eup %5924  ;;  %3822 = vadd.xlane.f32.xlu0 %v3821_v49 }
0x13e6   : > { %v3824_v46 = vsel %vm724_vm4, %v5925_v16, 0.0 }
0x13e7   : > { %3825 = vadd.xlane.f32.xlu1 %v3824_v46 }
0x1462   : > { %v3805_v28 = vpop.xlane.xlu0 %3804 }
0x1463   : > { %5926 = vrcp.f32 %v3805_v28 }
0x1464   : > { %v3808_v52 = vpop.xlane.xlu1 %3807 }
0x1465   : > { %5928 = vrcp.f32 %v3808_v52 }
0x146a   : > { %v3811_v5 = vpop.xlane.xlu0 %3810 }
0x146b   : > { %5930 = vrcp.f32 %v3811_v5 }
0x146c   : > { %v3814_v1 = vpop.xlane.xlu1 %3813 }
0x146d   : > { %v5927_v6 = vpop.eup %5926  ;;  %5932 = vrcp.f32 %v3814_v1 }
0x146e   : > { %v3817_v57 = vpop.xlane.xlu0 %3816  ;;  %v3835_v36 = vmul.f32 %v5927_v6, %v5911_v58 }
0x146f   : > { %v5929_v62 = vpop.eup %5928  ;;  %5934 = vrcp.f32 %v3817_v57 }
0x1470   : > { %v3836_v63 = vmul.f32 %v5929_v62, %v5913_v15  ;;  %v3820_v55 = vpop.xlane.xlu1 %3819 }
0x1471   : > { %5936 = vrcp.f32 %v3820_v55 }
0x1472   : > { %v3823_v18 = vpop.xlane.xlu0 %3822  ;;  %v3843_v44 = vpack.c.bf16 %v3836_v63, %v3835_v36 }
0x1473   : > { %5938 = vrcp.f32 %v3823_v18 }
0x1474   : > { %5613 = vmatmul.mubr.msk.bf16.vlgmr.msra.gmra.mrb[124].mxu0 %vm724_vm4, %v3843_v44  ;;  %v3826_v19 = vpop.xlane.xlu1 %3825 }
0x1475   : > { %v5931_v40 = vpop.eup %5930  ;;  %5623 = vmatpush3.bf16.msra.mxu0 %v3549_v29  ;;  %5940 = vrcp.f32 %v3826_v19  ;;  %5624 = vmatprep.mubr.msk.bf16.mxu0 %vm6074_vm3, %v6073_v42 }
0x1476   : > { %v3837_v58 = vmul.f32 %v5931_v40, %v5915_v12  ;;  %v5010_v40 = vld [vmem:[#allocation2 + $0x328] ss:$0 sm:$0xff] }
0x1477   : > { %v5933_v37 = vpop.eup %5932 }
0x1478   : > { %v3838_v15 = vmul.f32 %v5933_v37, %v5917_v23  ;;  %v4027_v23 = vld [vmem:[#allocation2 + $0x318] sm:$0xff] }
0x1479   : > { %v5935_v35 = vpop.eup %5934 }
0x147a   : > { %v3844_v2 = vpack.c.bf16 %v3838_v15, %v3837_v58  ;;  %v3839_v14 = vmul.f32 %v5935_v35, %v5919_v53  ;;  %v4029_v53 = vpack.c.bf16 %v4028_v34, %v4027_v23 }
0x147b   : > { %v5937_v3 = vpop.eup %5936 }
0x147c   : > { %v3840_v54 = vmul.f32 %v5937_v3, %v5921_v9  ;;  %5619 = vmatmul.mubr.msk.bf16.vlgmr.msra.gmra.mrb[116].mxu1 %vm724_vm4, %v3844_v2  ;;  %5634 = vmatprep.subr.bf16.mxu0 %v4029_v53 }
0x147d   : > { %v5939_v50 = vpop.eup %5938  ;;  %5629 = vmatpush3.bf16.msra.mxu1 %v3550_v43  ;;  %5630 = vmatprep.mubr.msk.bf16.mxu1 %vm6074_vm3, %v6073_v42 }
0x147e   : > { %v3845_v32 = vpack.c.bf16 %v3840_v54, %v3839_v14  ;;  %v3841_v29 = vmul.f32 %v5939_v50, %v5923_v20 }
0x147f   : > { %v5941_v56 = vpop.eup %5940 }
0x1480   : > { %v3842_v12 = vmul.f32 %v5941_v56, %v5925_v16  ;;  %5625 = vmatmul.mubr.msk.bf16.vlgmr.msra.gmra.mrb[128].mxu0 %vm724_vm4, %v3845_v32 }
0x1481   : > { %5635 = vmatpush3.bf16.msra.mxu0 %v4029_v53 }
0x1482   : > { %v3846_v27 = vpack.c.bf16 %v3842_v12, %v3841_v29  ;;  %5644 = vmatprep.subr.bf16.mxu0 %v3310_v60 }
0x1484   : > { %5631 = vmatmul.mubr.msk.bf16.vlgmr.msra.gmra.mrb[120].mxu1 %vm724_vm4, %v3846_v27 }
0x1547   : > { %v3884_v43 = vpop.f32.mrb[124].mxu0 }
0x1548   : > { %v5614_v42 = vpop.f32.mrb[125].mxu0 }
0x1549   : > { %v3887_v9 = vpop.f32.mrb[126].mxu0 }
0x154a   : > { %v4023_v51 = vpack.c.bf16 %v3887_v9, %v3884_v43  ;;  %v5615_v20 = vpop.f32.mrb[127].mxu0 }
0x154c   : > { %5636 = vmatprep.mubr.msk.bf16.mxu0 %vm724_vm4, %v4023_v51 }
0x154f   : > { %v3928_v49 = vpop.f32.mrb[116].mxu1 }
0x1550   : > { %v5620_v16 = vpop.f32.mrb[117].mxu1 }
0x1551   : > { %v3931_v46 = vpop.f32.mrb[118].mxu1 }
0x1552   : > { %v4024_v28 = vpack.c.bf16 %v3931_v46, %v3928_v49  ;;  %v5621_v52 = vpop.f32.mrb[119].mxu1 }
0x1553   : > { %v3972_v5 = vpop.f32.mrb[128].mxu0 }
0x1554   : > { %v5626_v1 = vpop.f32.mrb[129].mxu0  ;;  %5637 = vmatmul.mubr.msk.bf16.vlgmr.msra.gmra.mrb[132].mxu0 %vm724_vm4, %v4024_v28 }
0x1555   : > { %v3975_v6 = vpop.f32.mrb[130].mxu0  ;;  %5645 = vmatpush3.bf16.msra.mxu0 %v3310_v60 }
0x1556   : > { %v4025_v57 = vpack.c.bf16 %v3975_v6, %v3972_v5  ;;  %v5627_v62 = vpop.f32.mrb[131].mxu0 }
0x1557   : > { %v4016_v36 = vpop.f32.mrb[120].mxu1 }
0x1558   : > { %v5632_v63 = vpop.f32.mrb[121].mxu1  ;;  %5640 = vmatprep.mubr.msk.bf16.mxu0 %vm724_vm4, %v4025_v57 }
0x1559   : > { %v4019_v55 = vpop.f32.mrb[122].mxu1 }
0x155a   : > { %v4026_v18 = vpack.c.bf16 %v4019_v55, %v4016_v36  ;;  %v5633_v44 = vpop.f32.mrb[123].mxu1 }
0x155c   : > { %5641 = vmatmul.mubr.msk.bf16.gmra.mrb[136].mxu0 %vm724_vm4, %v4026_v18 }
0x155d   : > { %5646 = vmatprep.mubr.msk.bf16.mxu0 %vm724_vm4, %v3304_v25 }
0x1564   : > { %5647 = vmatmul.mubr.msk.bf16.vlgmr.msra.gmra.mrb[132].mxu0 %vm724_vm4, %v3305_v0 }
0x1565   : > { %5650 = vmatprep.mubr.msk.bf16.mxu0 %vm724_vm4, %v3306_v45 }
0x156c   : > { %5651 = vmatmul.mubr.msk.bf16.gmra.mrb[136].mxu0 %vm724_vm4, %v3307_v41 }
0x1637   : > { %v5648_v19 = vpop.f32.mrb[132].mxu0 }
0x1638   : > { %v4153_v21 = vpop.f32.mrb[133].mxu0  ;;  %v4186_v10 = vadd.f32 %v5648_v19, %v6680_v8 }
0x1639   : > { %v4184_v25 = vadd.f32 %v4153_v21, %v6676_v38  ;;  %v5649_v26 = vpop.f32.mrb[134].mxu0 }
0x163a   : > { %v4156_v48 = vpop.f32.mrb[135].mxu0  ;;  %v4187_v30 = vadd.f32 %v5649_v26, %v6686_v11  ;;  %v7064_v45 = vadd.f32 %v5010_v40, %v4186_v10 }
0x163b   : > { %v7060_v0 = vadd.f32 %v5010_v40, %v4184_v25  ;;  %v4185_v47 = vadd.f32 %v4156_v48, %v6682_v7 }
0x163c   : > { %v7070_v41 = vadd.f32 %v5010_v40, %v4187_v30  ;;  %v4213_v15 = vsel %vm338_vm2, %v7064_v45, 0.0 }
0x163d   : > { %v7066_v61 = vadd.f32 %v5010_v40, %v4185_v47  ;;  %v4207_v17 = vsel %vm338_vm2, %v7060_v0, 0.0 }
0x163e   : > { %4208 = vadd.xlane.f32.xlu0 %v4207_v17  ;;  %v4216_v54 = vsel %vm338_vm2, %v7070_v41, 0.0 }
0x163f   : > { %v5652_v8 = vpop.f32.mrb[136].mxu0  ;;  %v4210_v38 = vsel %vm338_vm2, %v7066_v61, 0.0 }
0x1640   : > { %4211 = vadd.xlane.f32.xlu1 %v4210_v38  ;;  %v4169_v37 = vpop.f32.mrb[137].mxu0  ;;  %v4190_v11 = vadd.f32 %v5652_v8, %v6700_v59  ;;  %v4339_v38 = vld [vmem:[#allocation2 + $0x340] sm:$0xff] }
0x1641   : > { %v4188_v7 = vadd.f32 %v4169_v37, %v6694_v39  ;;  %v5653_v58 = vpop.f32.mrb[138].mxu0  ;;  %v4340_v37 = vld [vmem:[#allocation2 + $0x348] sm:$0xff] }
0x1642   : > { %4214 = vadd.xlane.f32.xlu0 %v4213_v15  ;;  %v4172_v35 = vpop.f32.mrb[139].mxu0  ;;  %v4191_v3 = vadd.f32 %v5653_v58, %v6706_v33  ;;  %v7084_v50 = vadd.f32 %v5010_v40, %v4190_v11  ;;  %v4343_v11 = vpack.c.bf16 %v4340_v37, %v4339_v38  ;;  %v4342_v58 = vld [vmem:[#allocation2 + $0x358] sm:$0xff] }
0x1643   : > { %v7078_v2 = vadd.f32 %v5010_v40, %v4188_v7  ;;  %v4189_v14 = vadd.f32 %v4172_v35, %v6702_v4  ;;  %v4341_v7 = vld [vmem:[#allocation2 + $0x350] sm:$0xff]  ;;  %v4439_v35 = vld [vmem:[#allocation2 + $0x368] sm:$0xff] }
0x1644   : > { %4217 = vadd.xlane.f32.xlu1 %v4216_v54  ;;  %v7090_v32 = vadd.f32 %v5010_v40, %v4191_v3  ;;  %v4225_v4 = vsel %vm338_vm2, %v7084_v50, 0.0  ;;  %5654 = vmatprep.subr.bf16.mxu1 %v4343_v11  ;;  %v4344_v15 = vpack.c.bf16 %v4342_v58, %v4341_v7  ;;  %v4440_v3 = vld [vmem:[#allocation2 + $0x370] sm:$0xff] }
0x1645   : > { %v7086_v59 = vadd.f32 %v5010_v40, %v4189_v14  ;;  %v4219_v39 = vsel %vm338_vm2, %v7078_v2, 0.0  ;;  %5655 = vmatpush3.bf16.msra.mxu1 %v4343_v11  ;;  %v7146_v14 = vpack.c.bf16 %v4440_v3, %v4439_v35  ;;  %v4442_v35 = vld [vmem:[#allocation2 + $0x380] sm:$0xff] }
0x1646   : > { %4220 = vadd.xlane.f32.xlu0 %v4219_v39  ;;  %v4228_v33 = vsel %vm338_vm2, %v7090_v32, 0.0  ;;  %5656 = vmatprep.subr.bf16.mxu1 %v4344_v15 }
0x1647   : > { %v4222_v56 = vsel %vm338_vm2, %v7086_v59, 0.0 }
0x1648   : > { %4223 = vadd.xlane.f32.xlu1 %v4222_v56 }
0x1649   : > { %5657 = vmatpush3.bf16.msra.mxu1 %v4344_v15 }
0x164a   : > { %4226 = vadd.xlane.f32.xlu0 %v4225_v4  ;;  %5666 = vmatprep.subr.bf16.mxu1 %v7146_v14 }
0x164c   : > { %4229 = vadd.xlane.f32.xlu1 %v4228_v33 }
0x16cb   : > { %v4209_v29 = vpop.xlane.xlu0 %4208 }
0x16cc   : > { %v4231_v12 = vmul.f32 0.03125, %v4209_v29 }
0x16cd   : > { %v4212_v27 = vpop.xlane.xlu1 %4211 }
0x16ce   : > { %v7099_v23 = vsub.f32 %v7060_v0, %v4231_v12  ;;  %v4232_v34 = vmul.f32 0.03125, %v4212_v27 }
0x16cf   : > { %v4215_v53 = vpop.xlane.xlu0 %4214 }
0x16d0   : > { %v7102_v31 = vsub.f32 %v7066_v61, %v4232_v34  ;;  %v4233_v13 = vmul.f32 0.03125, %v4215_v53  ;;  %v4247_v60 = vmul.f32 %v7099_v23, %v7099_v23 }
0x16d1   : > { %v4218_v43 = vpop.xlane.xlu1 %4217 }
0x16d2   : > { %v7107_v42 = vsub.f32 %v7064_v45, %v4233_v13  ;;  %v4234_v9 = vmul.f32 0.03125, %v4218_v43  ;;  %v4255_v51 = vsel %vm338_vm2, %v4247_v60, 0.0  ;;  %v4248_v20 = vmul.f32 %v7102_v31, %v7102_v31 }
0x16d3   : > { %4256 = vadd.xlane.f32.xlu0 %v4255_v51  ;;  %v4221_v49 = vpop.xlane.xlu0 %4220 }
0x16d4   : > { %v7113_v16 = vsub.f32 %v7070_v41, %v4234_v9  ;;  %v4235_v46 = vmul.f32 0.03125, %v4221_v49  ;;  %v4258_v28 = vsel %vm338_vm2, %v4248_v20, 0.0  ;;  %v4249_v52 = vmul.f32 %v7107_v42, %v7107_v42 }
0x16d5   : > { %4259 = vadd.xlane.f32.xlu1 %v4258_v28  ;;  %v4224_v5 = vpop.xlane.xlu1 %4223 }
0x16d6   : > { %v7119_v1 = vsub.f32 %v7078_v2, %v4235_v46  ;;  %v4236_v6 = vmul.f32 0.03125, %v4224_v5  ;;  %v4261_v57 = vsel %vm338_vm2, %v4249_v52, 0.0  ;;  %v4250_v62 = vmul.f32 %v7113_v16, %v7113_v16 }
0x16d7   : > { %4262 = vadd.xlane.f32.xlu0 %v4261_v57  ;;  %v4227_v36 = vpop.xlane.xlu0 %4226  ;;  %v5011_v57 = vld [vmem:[#allocation2 + $0x330] ss:$0 sm:$0xff] }
0x16d8   : > { %v7125_v63 = vsub.f32 %v7086_v59, %v4236_v6  ;;  %v4237_v55 = vmul.f32 0.03125, %v4227_v36  ;;  %v4264_v18 = vsel %vm338_vm2, %v4250_v62, 0.0  ;;  %v4251_v44 = vmul.f32 %v7119_v1, %v7119_v1 }
0x16d9   : > { %4265 = vadd.xlane.f32.xlu1 %v4264_v18  ;;  %v4230_v19 = vpop.xlane.xlu1 %4229 }
0x16da   : > { %v7131_v40 = vsub.f32 %v7084_v50, %v4237_v55  ;;  %v4238_v21 = vmul.f32 0.03125, %v4230_v19  ;;  %v4267_v10 = vsel %vm338_vm2, %v4251_v44, 0.0  ;;  %v4252_v25 = vmul.f32 %v7125_v63, %v7125_v63 }
0x16db   : > { %4268 = vadd.xlane.f32.xlu0 %v4267_v10 }
0x16dc   : > { %v7137_v26 = vsub.f32 %v7090_v32, %v4238_v21  ;;  %v4270_v48 = vsel %vm338_vm2, %v4252_v25, 0.0  ;;  %v4253_v30 = vmul.f32 %v7131_v40, %v7131_v40  ;;  %v5012_v25 = vld [vmem:[#allocation2 + $0x338] ss:$0 sm:$0xff] }
0x16dd   : > { %4271 = vadd.xlane.f32.xlu1 %v4270_v48 }
0x16de   : > { %v4273_v47 = vsel %vm338_vm2, %v4253_v30, 0.0  ;;  %v4254_v17 = vmul.f32 %v7137_v26, %v7137_v26 }
0x16df   : > { %4274 = vadd.xlane.f32.xlu0 %v4273_v47 }
0x16e0   : > { %v4276_v8 = vsel %vm338_vm2, %v4254_v17, 0.0 }
0x16e1   : > { %4277 = vadd.xlane.f32.xlu1 %v4276_v8 }
0x1760   : > { %v4257_v54 = vpop.xlane.xlu0 %4256 }
0x1761   : > { %v4279_v39 = vmul.f32 0.03125, %v4257_v54 }
0x1762   : > { %v4260_v56 = vpop.xlane.xlu1 %4259 }
0x1763   : > { %v4287_v4 = vadd.f32 1e-05, %v4279_v39  ;;  %v4280_v33 = vmul.f32 0.03125, %v4260_v56 }
0x1764   : > { %v4263_v29 = vpop.xlane.xlu0 %4262 }
0x1765   : > { %5942 = vrsqrt.f32 %v4287_v4  ;;  %v4288_v12 = vadd.f32 1e-05, %v4280_v33  ;;  %v4281_v27 = vmul.f32 0.03125, %v4263_v29 }
0x1766   : > { %v4266_v34 = vpop.xlane.xlu1 %4265 }
0x1767   : > { %5944 = vrsqrt.f32 %v4288_v12  ;;  %v4289_v53 = vadd.f32 1e-05, %v4281_v27  ;;  %v4282_v13 = vmul.f32 0.03125, %v4266_v34  ;;  %v4443_v27 = vld [vmem:[#allocation2 + $0x388] sm:$0xff] }
0x1768   : > { %v4269_v60 = vpop.xlane.xlu0 %4268 }
0x1769   : > { %5946 = vrsqrt.f32 %v4289_v53  ;;  %v4290_v43 = vadd.f32 1e-05, %v4282_v13  ;;  %v4283_v9 = vmul.f32 0.03125, %v4269_v60 }
0x176a   : > { %v4272_v51 = vpop.xlane.xlu1 %4271 }
0x176b   : > { %5948 = vrsqrt.f32 %v4290_v43  ;;  %v4291_v20 = vadd.f32 1e-05, %v4283_v9  ;;  %v4284_v49 = vmul.f32 0.03125, %v4272_v51  ;;  %v4446_v51 = vld [vmem:[#allocation2 + $0x3a0] sm:$0xff] }
0x176c   : > { %v4275_v46 = vpop.xlane.xlu0 %4274 }
0x176d   : > { %5950 = vrsqrt.f32 %v4291_v20  ;;  %v4292_v28 = vadd.f32 1e-05, %v4284_v49  ;;  %v4285_v52 = vmul.f32 0.03125, %v4275_v46 }
0x176e   : > { %v4278_v5 = vpop.xlane.xlu1 %4277 }
0x176f   : > { %v5943_v6 = vpop.eup %5942  ;;  %5952 = vrsqrt.f32 %v4292_v28  ;;  %v4293_v62 = vadd.f32 1e-05, %v4285_v52  ;;  %v4286_v36 = vmul.f32 0.03125, %v4278_v5  ;;  %v4447_v28 = vld [vmem:[#allocation2 + $0x3a8] sm:$0xff]  ;;  %v4448_v52 = vld [vmem:[#allocation2 + $0x3b0] sm:$0xff]  ;;  %v4449_v5 = vld [vmem:[#allocation2 + $0x3b8] sm:$0xff] }
0x1770   : > { %v4303_v55 = vmul.f32 %v5943_v6, %v7099_v23  ;;  %v4450_v6 = vld [vmem:[#allocation2 + $0x3c0] sm:$0xff] }
0x1771   : > { %v5945_v18 = vpop.eup %5944  ;;  %5954 = vrsqrt.f32 %v4293_v62  ;;  %v4294_v44 = vadd.f32 1e-05, %v4286_v36  ;;  %v4451_v62 = vld [vmem:[#allocation2 + $0x3c8] sm:$0xff]  ;;  %v4452_v36 = vld [vmem:[#allocation2 + $0x3d0] sm:$0xff] }
0x1772   : > { %v4304_v19 = vmul.f32 %v5945_v18, %v7102_v31  ;;  %v4315_v21 = vmul.f32 %v5011_v57, %v4303_v55  ;;  %v4441_v31 = vld [vmem:[#allocation2 + $0x378] sm:$0xff]  ;;  %v4461_v55 = vpack.c.bf16 %v4452_v36, %v4451_v62 }
0x1773   : > { %v5947_v10 = vpop.eup %5946  ;;  %5956 = vrsqrt.f32 %v4294_v44  ;;  %v4456_v29 = vpack.c.bf16 %v4442_v35, %v4441_v31  ;;  %v4453_v18 = vld [vmem:[#allocation2 + $0x3d8] sm:$0xff]  ;;  %v4454_v44 = vld [vmem:[#allocation2 + $0x3e0] sm:$0xff] }
0x1774   : > { %v4305_v48 = vmul.f32 %v5947_v10, %v7107_v42  ;;  %v4316_v30 = vmul.f32 %v5011_v57, %v4304_v19  ;;  %v4327_v38 = vadd.f32 %v5012_v25, %v4315_v21  ;;  %v4462_v19 = vpack.c.bf16 %v4454_v44, %v4453_v18  ;;  %v5013_v21 = vld [vmem:[#allocation2 + $0x360] ss:$0 sm:$0xff] }
0x1775   : > { %v5949_v47 = vpop.eup %5948 }
0x1776   : > { %v4317_v17 = vmul.f32 %v5011_v57, %v4305_v48  ;;  %v4306_v8 = vmul.f32 %v5949_v47, %v7113_v16  ;;  %v4328_v37 = vadd.f32 %v5012_v25, %v4316_v30 }
0x1777   : > { %v5951_v11 = vpop.eup %5950 }
0x1778   : > { %v4318_v23 = vmul.f32 %v5011_v57, %v4306_v8  ;;  %v4307_v7 = vmul.f32 %v5951_v11, %v7119_v1  ;;  %v4335_v58 = vpack.c.bf16 %v4328_v37, %v4327_v38  ;;  %v4329_v42 = vadd.f32 %v5012_v25, %v4317_v17  ;;  %v4444_v1 = vld [vmem:[#allocation2 + $0x390] sm:$0xff] }
0x1779   : > { %v5953_v15 = vpop.eup %5952  ;;  %v4457_v9 = vpack.c.bf16 %v4444_v1, %v4443_v27 }
0x177a   : > { %v4308_v3 = vmul.f32 %v5953_v15, %v7125_v63  ;;  %5658 = vmatprep.mubr.msk.bf16.mxu1 %vm338_vm2, %v4335_v58  ;;  %v4330_v54 = vadd.f32 %v5012_v25, %v4318_v23  ;;  %v4319_v39 = vmul.f32 %v5011_v57, %v4307_v7 }
0x177b   : > { %v5955_v56 = vpop.eup %5954 }
0x177c   : > { %v4309_v16 = vmul.f32 %v5955_v56, %v7131_v40  ;;  %v4336_v4 = vpack.c.bf16 %v4330_v54, %v4329_v42  ;;  %v4320_v33 = vmul.f32 %v5011_v57, %v4308_v3  ;;  %v4331_v53 = vadd.f32 %v5012_v25, %v4319_v39  ;;  %v4445_v40 = vld [vmem:[#allocation2 + $0x398] sm:$0xff] }
0x177d   : > { %v5957_v12 = vpop.eup %5956 }
0x177e   : > { %v4310_v34 = vmul.f32 %v5957_v12, %v7137_v26  ;;  %5659 = vmatmul.mubr.msk.bf16.vlgmr.msra.gmra.mrb[124].mxu1 %vm338_vm2, %v4336_v4  ;;  %v4332_v63 = vadd.f32 %v5012_v25, %v4320_v33  ;;  %v4321_v13 = vmul.f32 %v5011_v57, %v4309_v16  ;;  %v4458_v26 = vpack.c.bf16 %v4446_v51, %v4445_v40 }
0x177f   : > { %5667 = vmatpush3.bf16.msra.mxu1 %v7146_v14  ;;  %v4459_v14 = vpack.c.bf16 %v4448_v52, %v4447_v28 }
0x1780   : > { %v4337_v60 = vpack.c.bf16 %v4332_v63, %v4331_v53  ;;  %v4322_v43 = vmul.f32 %v5011_v57, %v4310_v34  ;;  %5668 = vmatprep.subr.bf16.mxu1 %v4456_v29  ;;  %v4333_v20 = vadd.f32 %v5012_v25, %v4321_v13  ;;  %v4460_v57 = vpack.c.bf16 %v4450_v6, %v4449_v5  ;;  %v5018_v53 = vld [vmem:[#allocation2 + $0x3e8] ss:$0 sm:$0xff] }
0x1782   : > { %5662 = vmatprep.mubr.msk.bf16.mxu1 %vm338_vm2, %v4337_v60  ;;  %v4334_v49 = vadd.f32 %v5012_v25, %v4322_v43 }
0x1783   : > { %5669 = vmatpush3.bf16.msra.mxu1 %v4456_v29 }
0x1784   : > { %v4338_v46 = vpack.c.bf16 %v4334_v49, %v4333_v20  ;;  %5670 = vmatprep.subr.bf16.mxu1 %v4457_v9 }
0x1786   : > { %5663 = vmatmul.mubr.msk.bf16.gmra.mrb[128].mxu1 %vm338_vm2, %v4338_v46 }
0x1787   : > { %5671 = vmatpush3.bf16.msra.mxu1 %v4457_v9 }
0x1788   : > { %5672 = vmatprep.subr.bf16.mxu1 %v4458_v26 }
0x178b   : > { %5673 = vmatpush3.bf16.msra.mxu1 %v4458_v26 }
0x178c   : > { %5674 = vmatprep.subr.bf16.mxu1 %v4459_v14 }
0x178f   : > { %5675 = vmatpush3.bf16.msra.mxu1 %v4459_v14 }
0x1790   : > { %5676 = vmatprep.subr.bf16.mxu1 %v4460_v57 }
0x1793   : > { %5677 = vmatpush3.bf16.msra.mxu1 %v4460_v57 }
0x1794   : > { %5678 = vmatprep.subr.bf16.mxu1 %v4461_v55 }
0x1797   : > { %5679 = vmatpush3.bf16.msra.mxu1 %v4461_v55 }
0x1798   : > { %5680 = vmatprep.subr.bf16.mxu1 %v4462_v19 }
0x179b   : > { %5681 = vmatpush3.bf16.msra.mxu1 %v4462_v19 }
0x1851   : > { %v5660_v10 = vpop.f32.mrb[124].mxu1 }
0x1852   : > { %v4405_v25 = vadd.f32 %v5660_v10, %v5013_v21  ;;  %v4396_v48 = vpop.f32.mrb[125].mxu1 }
0x1853   : > { %v4397_v30 = vadd.f32 %v5013_v21, %v4396_v48  ;;  %v5661_v47 = vpop.f32.mrb[126].mxu1 }
0x1854   : > { %v4408_v17 = vadd.f32 %v5661_v47, %v5013_v21  ;;  %v4399_v8 = vpop.f32.mrb[127].mxu1  ;;  %v4429_v37 = vmax.f32 %v4405_v25, 0.0 }
0x1855   : > { %v4400_v38 = vadd.f32 %v5013_v21, %v4399_v8  ;;  %v4427_v23 = vmax.f32 %v4397_v30, 0.0 }
0x1856   : > { %v4430_v11 = vmax.f32 %v4408_v17, 0.0 }
0x1857   : > { %v4428_v7 = vmax.f32 %v4400_v38, 0.0 }
0x1858   : > { %v4436_v58 = vpack.c.bf16 %v4430_v11, %v4429_v37 }
0x1859   : > { %v4435_v15 = vpack.c.bf16 %v4428_v7, %v4427_v23  ;;  %v5664_v31 = vpop.f32.mrb[128].mxu1 }
0x185a   : > { %v4421_v35 = vadd.f32 %v5664_v31, %v5013_v21  ;;  %v4412_v3 = vpop.f32.mrb[129].mxu1 }
0x185b   : > { %v4413_v42 = vadd.f32 %v5013_v21, %v4412_v3  ;;  %v5665_v54 = vpop.f32.mrb[130].mxu1  ;;  %5682 = vmatprep.mubr.bf16.mxu1 %v4435_v15 }
0x185c   : > { %v4424_v39 = vadd.f32 %v5665_v54, %v5013_v21  ;;  %v4415_v56 = vpop.f32.mrb[131].mxu1  ;;  %5683 = vmatmul.mubr.bf16.vlgmr.msra.gmra.mrb[132].mxu1 %v4436_v58  ;;  %v4433_v4 = vmax.f32 %v4421_v35, 0.0 }
0x185d   : > { %v4416_v16 = vadd.f32 %v5013_v21, %v4415_v56  ;;  %v4431_v29 = vmax.f32 %v4413_v42, 0.0 }
0x185e   : > { %v4434_v33 = vmax.f32 %v4424_v39, 0.0 }
0x185f   : > { %v4432_v12 = vmax.f32 %v4416_v16, 0.0 }
0x1860   : > { %v4438_v27 = vpack.c.bf16 %v4434_v33, %v4433_v4 }
0x1861   : > { %v4437_v1 = vpack.c.bf16 %v4432_v12, %v4431_v29 }
0x1863   : > { %5686 = vmatprep.mubr.bf16.mxu1 %v4437_v1 }
0x1864   : > { %5687 = vmatmul.mubr.bf16.gmra.mrb[136].mxu1 %v4438_v27 }
0x192f   : > { %v5684_v34 = vpop.f32.mrb[132].mxu1 }
0x1930   : > { %v4530_v63 = vadd.f32 %v5684_v34, %v7064_v45  ;;  %v4497_v13 = vpop.f32.mrb[133].mxu1 }
0x1931   : > { %v4528_v60 = vadd.f32 %v4497_v13, %v7060_v0  ;;  %v5685_v43 = vpop.f32.mrb[134].mxu1 }
0x1932   : > { %v4543_v9 = vadd.f32 %v5018_v53, %v4530_v63  ;;  %v4531_v40 = vadd.f32 %v5685_v43, %v7070_v41  ;;  %v4500_v51 = vpop.f32.mrb[135].mxu1 }
0x1933   : > { %v4529_v20 = vadd.f32 %v4500_v51, %v7066_v61  ;;  %v4541_v49 = vadd.f32 %v5018_v53, %v4528_v60 }
0x1934   : > { %v4544_v46 = vadd.f32 %v5018_v53, %v4531_v40  ;;  %v4557_v26 = vsel %vm338_vm2, %v4543_v9, 0.0 }
0x1935   : > { %4558 = vadd.xlane.f32.xlu0 %v4557_v26  ;;  %v4542_v28 = vadd.f32 %v5018_v53, %v4529_v20  ;;  %v4551_v0 = vsel %vm338_vm2, %v4541_v49, 0.0 }
0x1936   : > { %v4560_v52 = vsel %vm338_vm2, %v4544_v46, 0.0 }
0x1937   : > { %4561 = vadd.xlane.f32.xlu1 %v4560_v52  ;;  %v5688_v45 = vpop.f32.mrb[136].mxu1  ;;  %v4554_v57 = vsel %vm338_vm2, %v4542_v28, 0.0 }
0x1938   : > { %v4513_v14 = vpop.f32.mrb[137].mxu1  ;;  %v4534_v5 = vadd.f32 %v5688_v45, %v7084_v50 }
0x1939   : > { %v4532_v41 = vadd.f32 %v4513_v14, %v7078_v2  ;;  %4552 = vadd.xlane.f32.xlu0 %v4551_v0  ;;  %v5689_v6 = vpop.f32.mrb[138].mxu1 }
0x193a   : > { %v4516_v61 = vpop.f32.mrb[139].mxu1  ;;  %v4535_v36 = vadd.f32 %v5689_v6, %v7090_v32  ;;  %v4547_v18 = vadd.f32 %v5018_v53, %v4534_v5 }
0x193b   : > { %v4545_v62 = vadd.f32 %v5018_v53, %v4532_v41  ;;  %v4533_v55 = vadd.f32 %v4516_v61, %v7086_v59  ;;  %4555 = vadd.xlane.f32.xlu1 %v4554_v57 }
0x193c   : > { %v4548_v21 = vadd.f32 %v5018_v53, %v4535_v36  ;;  %v4569_v2 = vsel %vm338_vm2, %v4547_v18, 0.0 }
0x193d   : > { %v4546_v44 = vadd.f32 %v5018_v53, %v4533_v55  ;;  %v4563_v19 = vsel %vm338_vm2, %v4545_v62, 0.0 }
0x193e   : > { %4564 = vadd.xlane.f32.xlu0 %v4563_v19  ;;  %v4572_v10 = vsel %vm338_vm2, %v4548_v21, 0.0 }
0x193f   : > { %v4566_v50 = vsel %vm338_vm2, %v4546_v44, 0.0 }
0x1940   : > { %4567 = vadd.xlane.f32.xlu1 %v4566_v50 }
0x1942   : > { %4570 = vadd.xlane.f32.xlu0 %v4569_v2 }
0x1944   : > { %4573 = vadd.xlane.f32.xlu1 %v4572_v10 }
0x19c2   : > { %v4559_v25 = vpop.xlane.xlu0 %4558 }
0x19c3   : > { %v4577_v32 = vmul.f32 0.03125, %v4559_v25 }
0x19c4   : > { %v4562_v48 = vpop.xlane.xlu1 %4561 }
0x19c5   : > { %v7178_v59 = vsub.f32 %v4543_v9, %v4577_v32  ;;  %v4578_v30 = vmul.f32 0.03125, %v4562_v48  ;;  %v5019_v32 = vld [vmem:[#allocation2 + $0x3f0] ss:$0 sm:$0xff] }
0x19c6   : > { %v4553_v47 = vpop.xlane.xlu0 %4552 }
0x19c7   : > { %v7180_v17 = vsub.f32 %v4544_v46, %v4578_v30  ;;  %v4575_v8 = vmul.f32 0.03125, %v4553_v47  ;;  %v4593_v38 = vmul.f32 %v7178_v59, %v7178_v59  ;;  %v4716_v46 = vld [vmem:[#allocation2 + $0x408] sm:$0x1] }
0x19c8   : > { %v4556_v37 = vpop.xlane.xlu1 %4555  ;;  %5710 = vpush %v4716_v46 }
0x19c9   : > { %v7184_v11 = vsub.f32 %v4541_v49, %v4575_v8  ;;  %v4576_v23 = vmul.f32 0.03125, %v4556_v37  ;;  %v4605_v7 = vsel %vm338_vm2, %v4593_v38, 0.0  ;;  %v4594_v58 = vmul.f32 %v7180_v17, %v7180_v17  ;;  %v5020_v38 = vld [vmem:[#allocation2 + $0x3f8] ss:$0 sm:$0xff] }
0x19ca   : > { %4606 = vadd.xlane.f32.xlu0 %v4605_v7 }
0x19cb   : > { %v7189_v15 = vsub.f32 %v4542_v28, %v4576_v23  ;;  %v4565_v31 = vpop.xlane.xlu0 %4564  ;;  %v4608_v35 = vsel %vm338_vm2, %v4594_v58, 0.0  ;;  %v4591_v3 = vmul.f32 %v7184_v11, %v7184_v11 }
0x19cc   : > { %v4579_v42 = vmul.f32 0.03125, %v4565_v31  ;;  %4609 = vadd.xlane.f32.xlu1 %v4608_v35  ;;  %v5021_v31 = vld [vmem:[#allocation2 + $0x400] ss:$0 sm:$0xff] }
0x19cd   : > { %v4568_v54 = vpop.xlane.xlu1 %4567  ;;  %v4599_v39 = vsel %vm338_vm2, %v4591_v3, 0.0  ;;  %v4592_v56 = vmul.f32 %v7189_v15, %v7189_v15 }
0x19ce   : > { %v7197_v16 = vsub.f32 %v4545_v62, %v4579_v42  ;;  %v4580_v4 = vmul.f32 0.03125, %v4568_v54  ;;  %4600 = vadd.xlane.f32.xlu0 %v4599_v39 }
0x19cf   : > { %v4571_v33 = vpop.xlane.xlu0 %4570  ;;  %v4602_v29 = vsel %vm338_vm2, %v4592_v56, 0.0 }
0x19d0   : > { %v7200_v12 = vsub.f32 %v4546_v44, %v4580_v4  ;;  %v4581_v27 = vmul.f32 0.03125, %v4571_v33  ;;  %4603 = vadd.xlane.f32.xlu1 %v4602_v29  ;;  %v4595_v1 = vmul.f32 %v7197_v16, %v7197_v16 }
0x19d1   : > { %v4574_v34 = vpop.xlane.xlu1 %4573 }
0x19d2   : > { %v7204_v53 = vsub.f32 %v4547_v18, %v4581_v27  ;;  %v4582_v63 = vmul.f32 0.03125, %v4574_v34  ;;  %v4611_v13 = vsel %vm338_vm2, %v4595_v1, 0.0  ;;  %v4596_v60 = vmul.f32 %v7200_v12, %v7200_v12 }
0x19d3   : > { %4612 = vadd.xlane.f32.xlu0 %v4611_v13 }
0x19d4   : > { %v7209_v43 = vsub.f32 %v4548_v21, %v4582_v63  ;;  %v4614_v9 = vsel %vm338_vm2, %v4596_v60, 0.0  ;;  %v4597_v40 = vmul.f32 %v7204_v53, %v7204_v53 }
0x19d5   : > { %4615 = vadd.xlane.f32.xlu1 %v4614_v9 }
0x19d6   : > { %v4617_v51 = vsel %vm338_vm2, %v4597_v40, 0.0  ;;  %v4598_v20 = vmul.f32 %v7209_v43, %v7209_v43 }
0x19d7   : > { %4618 = vadd.xlane.f32.xlu0 %v4617_v51 }
0x19d8   : > { %v4620_v49 = vsel %vm338_vm2, %v4598_v20, 0.0 }
0x19d9   : > { %4621 = vadd.xlane.f32.xlu1 %v4620_v49 }
0x19f9   : > { %s5711_s21 = spop %5710 }
0x1a57   : > { %v4607_v26 = vpop.xlane.xlu0 %4606 }
0x1a58   : > { %v4625_v28 = vmul.f32 0.03125, %v4607_v26 }
0x1a59   : > { %v4610_v52 = vpop.xlane.xlu1 %4609 }
0x1a5a   : > { %v4633_v45 = vadd.f32 1e-05, %v4625_v28  ;;  %v4626_v14 = vmul.f32 0.03125, %v4610_v52 }
0x1a5b   : > { %v4601_v0 = vpop.xlane.xlu0 %4600 }
0x1a5c   : > { %5958 = vrsqrt.f32 %v4633_v45  ;;  %v4634_v5 = vadd.f32 1e-05, %v4626_v14  ;;  %v4623_v41 = vmul.f32 0.03125, %v4601_v0 }
0x1a5d   : > { %v4604_v6 = vpop.xlane.xlu1 %4603 }
0x1a5e   : > { %5960 = vrsqrt.f32 %v4634_v5  ;;  %v4631_v61 = vadd.f32 1e-05, %v4623_v41  ;;  %v4624_v57 = vmul.f32 0.03125, %v4604_v6 }
0x1a60   : > { %5962 = vrsqrt.f32 %v4631_v61  ;;  %v4632_v62 = vadd.f32 1e-05, %v4624_v57  ;;  %v4613_v36 = vpop.xlane.xlu0 %4612 }
0x1a61   : > { %v4627_v55 = vmul.f32 0.03125, %v4613_v36 }
0x1a62   : > { %5964 = vrsqrt.f32 %v4632_v62  ;;  %v4616_v18 = vpop.xlane.xlu1 %4615 }
0x1a63   : > { %v4635_v44 = vadd.f32 1e-05, %v4627_v55  ;;  %v4628_v19 = vmul.f32 0.03125, %v4616_v18 }
0x1a64   : > { %v4619_v21 = vpop.xlane.xlu0 %4618 }
0x1a65   : > { %5966 = vrsqrt.f32 %v4635_v44  ;;  %v4636_v50 = vadd.f32 1e-05, %v4628_v19  ;;  %v4629_v2 = vmul.f32 0.03125, %v4619_v21  ;;  %v4741_v19 = vadd.s32 4294967288, %v6356_v24 }
0x1a66   : > { %v5959_v10 = vpop.eup %5958  ;;  %v4622_v25 = vpop.xlane.xlu1 %4621 }
0x1a67   : > { %5968 = vrsqrt.f32 %v4636_v50  ;;  %v4637_v48 = vadd.f32 1e-05, %v4629_v2  ;;  %v4630_v30 = vmul.f32 0.03125, %v4622_v25  ;;  %v4649_v47 = vmul.f32 %v5959_v10, %v7178_v59 }
0x1a68   : > { %v5961_v8 = vpop.eup %5960  ;;  %v4719_v50 = vstv %s5711_s21  ;;  %v4744_v25 = vsub.s32 %v4741_v19, %v6354_v22 }
0x1a69   : > { %5970 = vrsqrt.f32 %v4637_v48  ;;  %v4638_v37 = vadd.f32 1e-05, %v4630_v30  ;;  %v4661_v23 = vmul.f32 %v5019_v32, %v4649_v47  ;;  %v4650_v7 = vmul.f32 %v5961_v8, %v7180_v17 }
0x1a6a   : > { %v5963_v58 = vpop.eup %5962  ;;  %v4739_v8 = vsub.s32 %v6356_v24, %v6354_v22 }
0x1a6b   : > { %5972 = vrsqrt.f32 %v4638_v37  ;;  %v4673_v35 = vadd.f32 %v5020_v38, %v4661_v23  ;;  %v4662_v3 = vmul.f32 %v5019_v32, %v4650_v7  ;;  %v4647_v42 = vmul.f32 %v5963_v58, %v7184_v11 }
0x1a6c   : > { %v5965_v54 = vpop.eup %5964 }
0x1a6d   : > { %v4686_v39 = vmul.f32 %v5021_v31, %v4673_v35  ;;  %v4674_v56 = vadd.f32 %v5020_v38, %v4662_v3  ;;  %v4659_v4 = vmul.f32 %v5019_v32, %v4647_v42  ;;  %v4648_v59 = vmul.f32 %v5965_v54, %v7189_v15 }
0x1a6f   : > { %v5967_v33 = vpop.eup %5966  ;;  %v4698_v29 = vsel %vm338_vm2, %v4686_v39, 0.0  ;;  %v4687_v27 = vmul.f32 %v5021_v31, %v4674_v56  ;;  %v4671_v1 = vadd.f32 %v5020_v38, %v4659_v4  ;;  %v4660_v34 = vmul.f32 %v5019_v32, %v4648_v59 }
0x1a70   : > { %4699 = vadd.xlane.f32.xlu0 %v4698_v29  ;;  %v4651_v17 = vmul.f32 %v5967_v33, %v7197_v16 }
0x1a71   : > { %v5969_v63 = vpop.eup %5968  ;;  %v4701_v13 = vsel %vm338_vm2, %v4687_v27, 0.0  ;;  %v4684_v60 = vmul.f32 %v5021_v31, %v4671_v1  ;;  %v4672_v11 = vadd.f32 %v5020_v38, %v4660_v34 }
0x1a72   : > { %4702 = vadd.xlane.f32.xlu1 %v4701_v13  ;;  %v4663_v9 = vmul.f32 %v5019_v32, %v4651_v17  ;;  %v4652_v40 = vmul.f32 %v5969_v63, %v7200_v12 }
0x1a73   : > { %v5971_v51 = vpop.eup %5970  ;;  %v4692_v15 = vsel %vm338_vm2, %v4684_v60, 0.0  ;;  %v4685_v20 = vmul.f32 %v5021_v31, %v4672_v11 }
0x1a74   : > { %4693 = vadd.xlane.f32.xlu0 %v4692_v15  ;;  %v4675_v49 = vadd.f32 %v5020_v38, %v4663_v9  ;;  %v4664_v46 = vmul.f32 %v5019_v32, %v4652_v40  ;;  %v4653_v26 = vmul.f32 %v5971_v51, %v7204_v53 }
0x1a75   : > { %v5973_v28 = vpop.eup %5972  ;;  %v4695_v16 = vsel %vm338_vm2, %v4685_v20, 0.0 }
0x1a76   : > { %4696 = vadd.xlane.f32.xlu1 %v4695_v16  ;;  %v4688_v52 = vmul.f32 %v5021_v31, %v4675_v49  ;;  %v4676_v45 = vadd.f32 %v5020_v38, %v4664_v46  ;;  %v4665_v14 = vmul.f32 %v5019_v32, %v4653_v26  ;;  %v4654_v0 = vmul.f32 %v5973_v28, %v7209_v43 }
0x1a78   : > { %v4704_v12 = vsel %vm338_vm2, %v4688_v52, 0.0  ;;  %v4689_v5 = vmul.f32 %v5021_v31, %v4676_v45  ;;  %v4677_v41 = vadd.f32 %v5020_v38, %v4665_v14  ;;  %v4666_v6 = vmul.f32 %v5019_v32, %v4654_v0 }
0x1a79   : > { %4705 = vadd.xlane.f32.xlu0 %v4704_v12 }
0x1a7a   : > { %v4707_v61 = vsel %vm338_vm2, %v4689_v5, 0.0  ;;  %v4690_v57 = vmul.f32 %v5021_v31, %v4677_v41  ;;  %v4678_v53 = vadd.f32 %v5020_v38, %v4666_v6 }
0x1a7b   : > { %4708 = vadd.xlane.f32.xlu1 %v4707_v61 }
0x1a7c   : > { %v4710_v62 = vsel %vm338_vm2, %v4690_v57, 0.0  ;;  %v4691_v36 = vmul.f32 %v5021_v31, %v4678_v53 }
0x1a7d   : > { %4711 = vadd.xlane.f32.xlu0 %v4710_v62 }
0x1a7e   : > { %v4713_v55 = vsel %vm338_vm2, %v4691_v36, 0.0 }
0x1a7f   : > { %4714 = vadd.xlane.f32.xlu1 %v4713_v55 }
0x1afd   : > { %v4700_v43 = vpop.xlane.xlu0 %4699 }
0x1afe   : > { %v4723_v38 = vadd.f32 %v4719_v50, %v4700_v43 }
0x1aff   : > { %v4703_v18 = vpop.xlane.xlu1 %4702 }
0x1b00   : > { %v4724_v32 = vadd.f32 %v4719_v50, %v4703_v18  ;;  %v4751_v39 = vrot.slane %v4723_v38, %v4739_v8 }
0x1b01   : > { %v4694_v44 = vpop.xlane.xlu0 %4693 }
0x1b02   : > { %v4721_v48 = vadd.f32 %v4719_v50, %v4694_v44  ;;  %v4755_v58 = vrot.slane %v4724_v32, %v4744_v25 }
0x1b03   : > { %v4697_v21 = vpop.xlane.xlu1 %4696 }
0x1b04   : > { %v4722_v2 = vadd.f32 %v4719_v50, %v4697_v21  ;;  %v4740_v31 = vrot.slane %v4721_v48, %v4739_v8  ;;  %v4756_v24 = vsel %vm4746_vm7, %v4755_v58, %v4751_v39 }
0x1b06   : > { %v4706_v10 = vpop.xlane.xlu0 %4705  ;;  %v4745_v37 = vrot.slane %v4722_v2, %v4744_v25 }
0x1b07   : > { %v4725_v30 = vadd.f32 %v4719_v50, %v4706_v10 }
0x1b08   : > { %v4709_v47 = vpop.xlane.xlu1 %4708  ;;  %v4747_v56 = vsel %vm4746_vm7, %v4745_v37, %v4740_v31 }
0x1b09   : > { %v4726_v23 = vadd.f32 %v4719_v50, %v4709_v47  ;;  %v4760_v42 = vrot.slane %v4725_v30, %v4739_v8  ;;  %v4776_v29 = vsel %vm4775_vm8, %v4756_v24, %v4747_v56 }
0x1b0a   : > { %v4712_v7 = vpop.xlane.xlu0 %4711 }
0x1b0b   : > { %v4764_v35 = vrot.slane %v4726_v23, %v4744_v25  ;;  %v4727_v3 = vadd.f32 %v4719_v50, %v4712_v7 }
0x1b0c   : > { %v4715_v54 = vpop.xlane.xlu1 %4714 }
0x1b0d   : > { %v4728_v4 = vadd.f32 %v4719_v50, %v4715_v54  ;;  %v4765_v22 = vsel %vm4746_vm7, %v4764_v35, %v4760_v42  ;;  %v4769_v59 = vrot.slane %v4727_v3, %v4739_v8 }
0x1b0e   : > { %v4778_v27 = vsel %vm4777_vm9, %v4765_v22, %v4776_v29 }
0x1b0f   : > { %v4773_v33 = vrot.slane %v4728_v4, %v4744_v25 }
0x1b11   : > { %v4774_v1 = vsel %vm4746_vm7, %v4773_v33, %v4769_v59 }
0x1b12   : > { %v4780_v34 = vsel %vm4779_vm10, %v4774_v1, %v4778_v27 }
0x1b13   : > { %4783 = vst.msk [vmem:[%s154_s27] sm:$0xf] %vm4782_vm11, %v4780_v34 }
0x1b14   : > { %6015 = shalt.err (!%p6012_p7)
}
0x1b15   : > { %s6016_s8 = scalar_lea.hbm %s7252_s3, 64  ;;  %s6020_s17 = scalar_lea.hbm %s7298_s2, 128 }
0x1b16   : > { %p6017_p8 = scmp.ne.s32.totalorder %s7252_s3, %s6016_s8  ;;  %p6021_p1 = scmp.lt.u32.totalorder %s7252_s3, %s7298_s2 }
0x1b17   : > { %p6022_p0 = scmp.lt.u32.totalorder %s6020_s17, %s6016_s8  ;;  %p6024_p6 = scmp.lt.u32.totalorder %s6016_s8, %s7252_s3 }
0x1b18   : > { %p6018_p11 = pnand %p6017_p8, %p7313_p9 }
0x1b19   : > { %p6023_p5 = por %p6022_p0, %p6021_p1 }
0x1b1a   : > { %p6019_p13 = pneg %p6018_p11 }
0x1b1b   : > { %p6025_p10 = por %p6024_p6, %p6023_p5 }
0x1b1d   : > { %p6026_p12 = pnand %p6025_p10, %p6019_p13 }
0x1b1f   : > { %6029 = shalt.err (!%p6026_p12)
}
0x1b20   : > { %5716 = dma.vmem_to_hbm [thread:$0]  (%p7313_p9), %s7254_s28, 64, %s7252_s3, %s4785_s13  }
0x1b21 PF: > { %p5728_p2 = scmp.ge.s32.totalorder %s6068_s12, 2  ;;  %s4810_s21 = sand.u32 1, %s6056_s9  }
0x1b22   : > { %p7314_p3 = scmp.ne.s32.totalorder %s7303_s20, 0  ;;  %s4811_s24 = scalar_lea.sflag [#allocation4], %s4810_s21 }
0x1b24   : > { %p5723_p4 = pnand %p5728_p2, %p7314_p3 }
0x1b26   : > { %6051 = dma.done.wait (!%p5723_p4), %s4811_s24, 64  }
0x1b27   : > { %6053 = vsyncadd (!%p5723_p4), %s4811_s24, 4294967232  ;;  %p13_p7 = scmp.ge.s32.totalorder %s6116_s15, 4   ;;  %s7315_s9 = smov %s6060_s10 }
0x1b28   : > { %s7316_s10 = smov %s6064_s11  ;;  %s7317_s11 = smov %s6127_s18 }
0x1b29   : > { %s7318_s12 = smov %s6116_s15  ;;  %15 = sbr.rel (!%p13_p7) target bundleno = 4 (0x4), region = 68 }
0x1b30   :  { %4816 = vsyncpa [#allocation3], 1 }
0x1b31   :  { %4818 = vsyncpa [#allocation3 + $0x1], 1 }
0x1b32   :  { %4819 = vsyncpa [#allocation4], 1 }
0x1b33   :  { %4821 = vsyncpa [#allocation4 + $0x1], 1 }

</bundles_post_ra>
